<compile_context>
chip_gen: v7x
topology: tpu7x:2x2x1
jax: 0.10.0
libtpu: 0.0.40
codegen_flags: <defaults>
</compile_context>

<pallas_src>
import functools

import jax
import jax.numpy as jnp
from jax.experimental import pallas as pl
from jax.experimental.pallas import tpu as pltpu

LN_EPS = 1e-5


# -----------------------------------------------------------------------------
# Kernel
# -----------------------------------------------------------------------------
def _decoder_block_kernel(
    x_ref, mem_ref,
    ln1_w, ln1_b, qkv_wT, attn_proj_wT, attn_proj_b,
    lny_w, lny_b, ln2_w, ln2_b,
    ca_q_wT, ca_kv_wT, ca_proj_wT, ca_proj_b,
    ln3_w, ln3_b, fc1_wT, fc1_b, fc2_wT, fc2_b,
    o_ref,
    slab_ref,                      # VMEM (Bblk*Nq, D) f32; only used if Bblk>1
    *, num_heads: int, exact_gelu: bool,
):
    Bblk, Nq, D = x_ref.shape
    Nm = mem_ref.shape[1]
    Dh = D // num_heads
    f32 = jnp.float32
    bf16 = lambda v: v.astype(jnp.bfloat16)

    # Flatten batch block into the matmul M dimension (free relayout when the
    # sequence length is sublane-aligned; wrapper guarantees that for Bblk>1).
    if Bblk == 1:
        x = x_ref[0].astype(f32)          # (Nq, D) residual stream, f32
        mem = mem_ref[0].astype(f32)      # (Nm, D)
    else:
        x = x_ref[...].astype(f32).reshape(Bblk * Nq, D)
        mem = mem_ref[...].astype(f32).reshape(Bblk * Nm, D)

    def layernorm(v, w_r, b_r):
        # single pass: E[x], E[x^2] computed together (matches nn.LayerNorm 1e-5)
        mu = jnp.mean(v, axis=-1, keepdims=True)
        ms = jnp.mean(v * v, axis=-1, keepdims=True)
        var = jnp.maximum(ms - mu * mu, 0.0)
        return (v - mu) * jax.lax.rsqrt(var + LN_EPS) * w_r[...] + b_r[...]

    def mha(q16, k16, v16, n_kv, proj_wT16):
        """Multi-head attention + output projection (bias added by caller).

        q16/k16/v16: bf16, flattened (Bblk*N, D); q16 already carries the
        1/sqrt(Dh) scale (folded into the weights at prepare time).
        The per-head output is folded straight into the projection:
            concat_h(O_h) @ Wp == sum_h O_h @ Wp[h*Dh:(h+1)*Dh, :]
        so nothing sub-128-lane is ever stored and the projection does not
        wait on a scratch round trip.
        """
        def one_batch(b):
            qr = q16[b * Nq:(b + 1) * Nq, :]
            kr = k16[b * n_kv:(b + 1) * n_kv, :]
            vr = v16[b * n_kv:(b + 1) * n_kv, :]
            acc = None
            for h in range(num_heads):
                lo, hi = h * Dh, (h + 1) * Dh
                # scores (Nq, n_kv): bf16 MXU operands, f32 accumulation
                s = jax.lax.dot_general(
                    qr[:, lo:hi], kr[:, lo:hi], (((1,), (1,)), ((), ())),
                    preferred_element_type=f32)
                s = s - jnp.max(s, axis=-1, keepdims=True)
                p = jnp.exp(s)
                p = p * pl.reciprocal(jnp.sum(p, axis=-1, keepdims=True),
                                      approx=True)            # EUP, not VALU div
                oh = jnp.dot(bf16(p), vr[:, lo:hi],
                             preferred_element_type=f32)      # (Nq, Dh)
                c = jnp.dot(bf16(oh), proj_wT16[lo:hi, :],
                            preferred_element_type=f32)       # (Nq, D)
                acc = c if acc is None else acc + c
            return acc

        if Bblk == 1:
            return one_batch(0)                                # stays in vregs
        for b in range(Bblk):
            # lane-dense (D is a multiple of 128), sublane-aligned full-row store
            slab_ref[b * Nq:(b + 1) * Nq, :] = one_batch(b)
        return slab_ref[...]

    # ---------------- self attention -----------------------------------------
    x1 = layernorm(x, ln1_w, ln1_b)
    qkv = jnp.dot(bf16(x1), qkv_wT[...], preferred_element_type=f32)  # (R, 3D)
    q16 = bf16(qkv[:, :D])            # scale already folded into the weight
    k16 = bf16(qkv[:, D:2 * D])
    v16 = bf16(qkv[:, 2 * D:])
    sa = mha(q16, k16, v16, Nq, attn_proj_wT[...])
    x = x + sa + attn_proj_b[...]

    # ---------------- cross attention -----------------------------------------
    ym = layernorm(mem, lny_w, lny_b)                 # norm_mem=True
    x2 = layernorm(x, ln2_w, ln2_b)
    qc = jnp.dot(bf16(x2), ca_q_wT[...], preferred_element_type=f32)   # scaled
    kv = jnp.dot(bf16(ym), ca_kv_wT[...], preferred_element_type=f32)  # (Rm,2D)
    ca = mha(bf16(qc), bf16(kv[:, :D]), bf16(kv[:, D:]), Nm, ca_proj_wT[...])
    x = x + ca + ca_proj_b[...]

    # ---------------- MLP ------------------------------------------------------
    x3 = layernorm(x, ln3_w, ln3_b)
    h1 = jnp.dot(bf16(x3), fc1_wT[...], preferred_element_type=f32) + fc1_b[...]
    # exact erf GELU matches nn.GELU default; tanh form only as explicit opt-in
    h1 = jax.nn.gelu(h1, approximate=not exact_gelu)
    h2 = jnp.dot(bf16(h1), fc2_wT[...], preferred_element_type=f32) + fc2_b[...]
    x = x + h2

    if Bblk == 1:
        o_ref[0] = x.astype(o_ref.dtype)
    else:
        o_ref[...] = x.reshape(Bblk, Nq, D).astype(o_ref.dtype)


# -----------------------------------------------------------------------------
# One-time parameter preparation (do this at checkpoint load, not per forward)
# -----------------------------------------------------------------------------
def prepare_decoder_params(params, num_heads, weight_dtype=jnp.bfloat16):
    """Transpose nn.Linear weights (out,in)->(in,out), fold the attention scale
    into the q projections (in f32, before the bf16 cast), fuse cross-attn K/V,
    cast weights to bf16, reshape LN params / biases to (1, d) f32 rows."""
    D = params["qkv_w"].shape[1]
    scale = jnp.float32((D // num_heads) ** -0.5)

    t = lambda a: jnp.asarray(a, jnp.float32).T          # (in, out), f32
    w = lambda a: a.astype(weight_dtype)
    row = lambda a: jnp.asarray(a, jnp.float32).reshape(1, -1)

    qkv_wT = t(params["qkv_w"])                          # (D, 3D)
    qkv_wT = jnp.concatenate([qkv_wT[:, :D] * scale, qkv_wT[:, D:]], axis=1)
    ca_q_wT = t(params["wq"]) * scale                    # (D, D), scale folded
    ca_kv_wT = jnp.concatenate([t(params["wk"]), t(params["wv"])], axis=1)

    return (
        row(params["ln1_w"]), row(params["ln1_b"]),
        w(qkv_wT),
        w(t(params["attn_proj_w"])), row(params["attn_proj_b"]),
        row(params["lny_w"]), row(params["lny_b"]),
        row(params["ln2_w"]), row(params["ln2_b"]),
        w(ca_q_wT), w(ca_kv_wT),
        w(t(params["ca_proj_w"])), row(params["ca_proj_b"]),
        row(params["ln3_w"]), row(params["ln3_b"]),
        w(t(params["fc1_w"])), row(params["fc1_b"]),
        w(t(params["fc2_w"])), row(params["fc2_b"]),
    )


# -----------------------------------------------------------------------------
# Wrapper
# -----------------------------------------------------------------------------
def _pick_batch_block(B, Nq, Nm, target_rows=256, max_rows=2048):
    """Batch elements per grid step so the matmul M dim feeds the 256-wide MXU."""
    if Nq % 8 != 0 or Nm % 8 != 0:
        return 1          # flattening needs sublane-aligned sequence lengths
    divisors = [d for d in range(1, B + 1) if B % d == 0]
    for d in divisors:
        if target_rows <= d * Nq <= max_rows:
            return d
    ok = [d for d in divisors if d * Nq <= max_rows]
    return ok[-1] if ok else 1


def transformer_decoder_block(query_input, memory_input, prepared_weights, *,
                              num_heads, query_pos=None, memory_pos=None,
                              rope=None, batch_block=None, exact_gelu=True):
    """Returns (processed query, unchanged memory) — same contract as PyTorch."""
    # TODO(synk): RoPE not applied in-kernel; only correct for rope=None.
    assert rope is None, "kernel only implements the rope=None configuration"
    del query_pos, memory_pos  # only consumed by rope, which is None

    B, Nq, D = query_input.shape
    Bm, Nm, Dm = memory_input.shape
    assert Bm == B and Dm == D and D % num_heads == 0

    if batch_block is None:
        batch_block = _pick_batch_block(B, Nq, Nm)
    assert B % batch_block == 0
    if batch_block > 1:
        assert Nq % 8 == 0 and Nm % 8 == 0

    weight_bytes = sum(int(a.size) * jnp.dtype(a.dtype).itemsize
                       for a in prepared_weights)
    io_itemsize = jnp.dtype(query_input.dtype).itemsize
    io_block_bytes = batch_block * (2 * Nq + Nm) * D * io_itemsize
    scratch_bytes = batch_block * Nq * D * 4

    # Generation-aware VMEM budget: ~78% of physical capacity (≈50 MiB on v7x,
    # ≈100 MiB on v5e/v6e), never the whole chip.
    try:
        vmem_cap = int(pltpu.get_tpu_info().vmem_capacity_bytes)
    except Exception:
        vmem_cap = 64 * 2**20
    vmem_budget = int(0.78 * vmem_cap)

    grid = (B // batch_block,)

    def build_and_run(single_buffer_weights, use_exact_gelu):
        def weight_spec(a):
            nd = a.ndim
            kwargs = {}
            if single_buffer_weights:
                # constant index map across the grid -> double buffering is waste
                kwargs["pipeline_mode"] = pl.Buffered(1)
            return pl.BlockSpec(a.shape, lambda g, _nd=nd: (0,) * _nd, **kwargs)

        in_specs = [
            pl.BlockSpec((batch_block, Nq, D), lambda g: (g, 0, 0)),
            pl.BlockSpec((batch_block, Nm, D), lambda g: (g, 0, 0)),
        ] + [weight_spec(a) for a in prepared_weights]

        est = ((1 if single_buffer_weights else 2) * weight_bytes
               + 2 * io_block_bytes + scratch_bytes + 16 * 2**20)
        vmem_limit = max(min(est, vmem_budget), min(32 * 2**20, vmem_budget))

        out = pl.pallas_call(
            functools.partial(_decoder_block_kernel, num_heads=num_heads,
                              exact_gelu=use_exact_gelu),
            out_shape=jax.ShapeDtypeStruct((B, Nq, D), query_input.dtype),
            grid=grid,
            in_specs=in_specs,
            out_specs=pl.BlockSpec((batch_block, Nq, D), lambda g: (g, 0, 0)),
            scratch_shapes=[pltpu.VMEM((batch_block * Nq, D), jnp.float32)],
            compiler_params=pltpu.CompilerParams(
                dimension_semantics=("parallel",),
                vmem_limit_bytes=vmem_limit),
        )(query_input, memory_input, *prepared_weights)
        return jax.block_until_ready(out)

    # Graceful degradation across jax versions: (1) single-buffered weights +
    # exact GELU, (2) default buffering + exact GELU, (3) tanh GELU last resort.
    attempts = [(True, exact_gelu), (False, exact_gelu)]
    if exact_gelu:
        attempts.append((False, False))
    last_err = None
    for single_buf, gelu_exact in attempts:
        try:
            return build_and_run(single_buf, gelu_exact), memory_input
        except Exception as e:   # unsupported pipeline_mode / erf on this build
            last_err = e
    raise last_err


# -----------------------------------------------------------------------------
# Pure-JAX reference (mirrors the PyTorch forward) for a correctness check.
# -----------------------------------------------------------------------------
def reference_block(x, mem, params, *, num_heads):
    def ln(v, w, b):
        mu = v.mean(-1, keepdims=True)
        var = ((v - mu) ** 2).mean(-1, keepdims=True)
        return (v - mu) / jnp.sqrt(var + LN_EPS) * w + b

    def mha(q, k, v):
        B, N, D = q.shape
        Nk = k.shape[1]
        Dh = D // num_heads
        qh = q.reshape(B, N, num_heads, Dh).transpose(0, 2, 1, 3)
        kh = k.reshape(B, Nk, num_heads, Dh).transpose(0, 2, 1, 3)
        vh = v.reshape(B, Nk, num_heads, Dh).transpose(0, 2, 1, 3)
        s = jnp.einsum("bhqd,bhkd->bhqk", qh, kh) * (Dh ** -0.5)
        p = jax.nn.softmax(s, axis=-1)
        o = jnp.einsum("bhqk,bhkd->bhqd", p, vh)
        return o.transpose(0, 2, 1, 3).reshape(B, N, D)

    D = x.shape[-1]
    x1 = ln(x, params["ln1_w"], params["ln1_b"])
    qkv = x1 @ params["qkv_w"].T
    q, k, v = qkv[..., :D], qkv[..., D:2 * D], qkv[..., 2 * D:]
    x = x + (mha(q, k, v) @ params["attn_proj_w"].T + params["attn_proj_b"])

    ym = ln(mem, params["lny_w"], params["lny_b"])
    x2 = ln(x, params["ln2_w"], params["ln2_b"])
    qc, kc, vc = x2 @ params["wq"].T, ym @ params["wk"].T, ym @ params["wv"].T
    x = x + (mha(qc, kc, vc) @ params["ca_proj_w"].T + params["ca_proj_b"])

    x3 = ln(x, params["ln3_w"], params["ln3_b"])
    h = jax.nn.gelu(x3 @ params["fc1_w"].T + params["fc1_b"], approximate=False)
    x = x + (h @ params["fc2_w"].T + params["fc2_b"])
    return x, mem


# -----------------------------------------------------------------------------
# Main
# -----------------------------------------------------------------------------
if __name__ == "__main__":
    # Lane-dense small config: D multiple of 128, Nq/Nm multiples of 8.
    B, Nq, Nm, D, num_heads = 2, 16, 16, 128, 4
    mlp_ratio = 4.0
    Hd = int(D * mlp_ratio)

    key = jax.random.PRNGKey(0)
    ks = jax.random.split(key, 24)
    g = lambda k, shape: (0.02 * jax.random.normal(k, shape)).astype(jnp.float32)

    # Deterministic synthetic parameters (qkv_bias=False, module defaults).
    params = {
        "ln1_w": jnp.ones((D,), jnp.float32) + g(ks[0], (D,)),
        "ln1_b": g(ks[1], (D,)),
        "qkv_w": g(ks[2], (3 * D, D)),
        "attn_proj_w": g(ks[3], (D, D)),
        "attn_proj_b": g(ks[4], (D,)),
        "lny_w": jnp.ones((D,), jnp.float32) + g(ks[5], (D,)),
        "lny_b": g(ks[6], (D,)),
        "ln2_w": jnp.ones((D,), jnp.float32) + g(ks[7], (D,)),
        "ln2_b": g(ks[8], (D,)),
        "wq": g(ks[9], (D, D)),
        "wk": g(ks[10], (D, D)),
        "wv": g(ks[11], (D, D)),
        "ca_proj_w": g(ks[12], (D, D)),
        "ca_proj_b": g(ks[13], (D,)),
        "ln3_w": jnp.ones((D,), jnp.float32) + g(ks[14], (D,)),
        "ln3_b": g(ks[15], (D,)),
        "fc1_w": g(ks[16], (Hd, D)),
        "fc1_b": g(ks[17], (Hd,)),
        "fc2_w": g(ks[18], (D, Hd)),
        "fc2_b": g(ks[19], (D,)),
    }

    query_input = jax.random.normal(ks[20], (B, Nq, D), jnp.float32)
    memory_input = jax.random.normal(ks[21], (B, Nm, D), jnp.float32)

    prepared = prepare_decoder_params(params, num_heads)   # one-time (bf16, .T)

    out_q, out_mem = transformer_decoder_block(
        query_input, memory_input, prepared, num_heads=num_heads)
    out_q = jax.block_until_ready(out_q)

    ref_q, ref_mem = reference_block(
        query_input, memory_input, params, num_heads=num_heads)

    assert out_q.shape == (B, Nq, D)
    assert jnp.allclose(out_q, ref_q, atol=2e-2, rtol=2e-2), "mismatch vs reference"
    assert jnp.array_equal(out_mem, memory_input), "memory must pass through unchanged"

    print("KERNEL_OK")
</pallas_src>

<mosaic_0001>
module attributes {stable_mosaic.version = 11 : i64} {
  func.func @_decoder_block_kernel(%arg0: i32, %arg1: memref<2x16x128xf32, #tpu.memory_space<vmem>>, %arg2: memref<2x16x128xf32, #tpu.memory_space<vmem>>, %arg3: memref<1x128xf32, #tpu.memory_space<vmem>>, %arg4: memref<1x128xf32, #tpu.memory_space<vmem>>, %arg5: memref<128x384xbf16, #tpu.memory_space<vmem>>, %arg6: memref<128x128xbf16, #tpu.memory_space<vmem>>, %arg7: memref<1x128xf32, #tpu.memory_space<vmem>>, %arg8: memref<1x128xf32, #tpu.memory_space<vmem>>, %arg9: memref<1x128xf32, #tpu.memory_space<vmem>>, %arg10: memref<1x128xf32, #tpu.memory_space<vmem>>, %arg11: memref<1x128xf32, #tpu.memory_space<vmem>>, %arg12: memref<128x128xbf16, #tpu.memory_space<vmem>>, %arg13: memref<128x256xbf16, #tpu.memory_space<vmem>>, %arg14: memref<128x128xbf16, #tpu.memory_space<vmem>>, %arg15: memref<1x128xf32, #tpu.memory_space<vmem>>, %arg16: memref<1x128xf32, #tpu.memory_space<vmem>>, %arg17: memref<1x128xf32, #tpu.memory_space<vmem>>, %arg18: memref<128x512xbf16, #tpu.memory_space<vmem>>, %arg19: memref<1x512xf32, #tpu.memory_space<vmem>>, %arg20: memref<512x128xbf16, #tpu.memory_space<vmem>>, %arg21: memref<1x128xf32, #tpu.memory_space<vmem>>, %arg22: memref<2x16x128xf32, #tpu.memory_space<vmem>>, %arg23: memref<32x128xf32, #tpu.memory_space<vmem>>) attributes {dimension_semantics = [#tpu.dimension_semantics<parallel>], iteration_bounds = array<i64: 1>, scalar_prefetch = 0 : i64, scratch_operands = 1 : i64, tpu.core_type = #tpu.core_type<tc>, window_params = [{transform_indices = @transform_0, window_bounds = array<i64: 2, 16, 128>}, {transform_indices = @transform_1, window_bounds = array<i64: 2, 16, 128>}, {pipeline_mode = #tpu.pipeline_mode<synchronous>, transform_indices = @transform_2, window_bounds = array<i64: 1, 128>}, {pipeline_mode = #tpu.pipeline_mode<synchronous>, transform_indices = @transform_3, window_bounds = array<i64: 1, 128>}, {pipeline_mode = #tpu.pipeline_mode<synchronous>, transform_indices = @transform_4, window_bounds = array<i64: 128, 384>}, {pipeline_mode = #tpu.pipeline_mode<synchronous>, transform_indices = @transform_5, window_bounds = array<i64: 128, 128>}, {pipeline_mode = #tpu.pipeline_mode<synchronous>, transform_indices = @transform_6, window_bounds = array<i64: 1, 128>}, {pipeline_mode = #tpu.pipeline_mode<synchronous>, transform_indices = @transform_7, window_bounds = array<i64: 1, 128>}, {pipeline_mode = #tpu.pipeline_mode<synchronous>, transform_indices = @transform_8, window_bounds = array<i64: 1, 128>}, {pipeline_mode = #tpu.pipeline_mode<synchronous>, transform_indices = @transform_9, window_bounds = array<i64: 1, 128>}, {pipeline_mode = #tpu.pipeline_mode<synchronous>, transform_indices = @transform_10, window_bounds = array<i64: 1, 128>}, {pipeline_mode = #tpu.pipeline_mode<synchronous>, transform_indices = @transform_11, window_bounds = array<i64: 128, 128>}, {pipeline_mode = #tpu.pipeline_mode<synchronous>, transform_indices = @transform_12, window_bounds = array<i64: 128, 256>}, {pipeline_mode = #tpu.pipeline_mode<synchronous>, transform_indices = @transform_13, window_bounds = array<i64: 128, 128>}, {pipeline_mode = #tpu.pipeline_mode<synchronous>, transform_indices = @transform_14, window_bounds = array<i64: 1, 128>}, {pipeline_mode = #tpu.pipeline_mode<synchronous>, transform_indices = @transform_15, window_bounds = array<i64: 1, 128>}, {pipeline_mode = #tpu.pipeline_mode<synchronous>, transform_indices = @transform_16, window_bounds = array<i64: 1, 128>}, {pipeline_mode = #tpu.pipeline_mode<synchronous>, transform_indices = @transform_17, window_bounds = array<i64: 128, 512>}, {pipeline_mode = #tpu.pipeline_mode<synchronous>, transform_indices = @transform_18, window_bounds = array<i64: 1, 512>}, {pipeline_mode = #tpu.pipeline_mode<synchronous>, transform_indices = @transform_19, window_bounds = array<i64: 512, 128>}, {pipeline_mode = #tpu.pipeline_mode<synchronous>, transform_indices = @transform_20, window_bounds = array<i64: 1, 128>}, {transform_indices = @transform_21, window_bounds = array<i64: 2, 16, 128>}]} {
    %c0 = arith.constant 0 : index
    %c0_0 = arith.constant 0 : index
    %c0_1 = arith.constant 0 : index
    %0 = vector.load %arg1[%c0, %c0_0, %c0_1] : memref<2x16x128xf32, #tpu.memory_space<vmem>>, vector<2x16x128xf32>
    %1 = vector.shape_cast %0 : vector<2x16x128xf32> to vector<32x128xf32>
    %c0_2 = arith.constant 0 : index
    %c0_3 = arith.constant 0 : index
    %c0_4 = arith.constant 0 : index
    %2 = vector.load %arg2[%c0_2, %c0_3, %c0_4] : memref<2x16x128xf32, #tpu.memory_space<vmem>>, vector<2x16x128xf32>
    %3 = vector.shape_cast %2 : vector<2x16x128xf32> to vector<32x128xf32>
    %cst = arith.constant dense<0.000000e+00> : vector<32xf32>
    %4 = vector.multi_reduction <add>, %1, %cst [1] : vector<32x128xf32> to vector<32xf32>
    %5 = vector.shape_cast %4 : vector<32xf32> to vector<32x1xf32>
    %cst_5 = arith.constant 1.280000e+02 : f32
    %6 = vector.broadcast %cst_5 : f32 to vector<32x1xf32>
    %7 = arith.divf %5, %6 : vector<32x1xf32>
    %8 = arith.mulf %1, %1 : vector<32x128xf32>
    %cst_6 = arith.constant dense<0.000000e+00> : vector<32xf32>
    %9 = vector.multi_reduction <add>, %8, %cst_6 [1] : vector<32x128xf32> to vector<32xf32>
    %10 = vector.shape_cast %9 : vector<32xf32> to vector<32x1xf32>
    %cst_7 = arith.constant 1.280000e+02 : f32
    %11 = vector.broadcast %cst_7 : f32 to vector<32x1xf32>
    %12 = arith.divf %10, %11 : vector<32x1xf32>
    %13 = arith.mulf %7, %7 : vector<32x1xf32>
    %14 = arith.subf %12, %13 : vector<32x1xf32>
    %cst_8 = arith.constant 0.000000e+00 : f32
    %15 = vector.broadcast %cst_8 : f32 to vector<32x1xf32>
    %16 = arith.maximumf %14, %15 : vector<32x1xf32>
    %17 = vector.broadcast %7 : vector<32x1xf32> to vector<32x128xf32>
    %18 = arith.subf %1, %17 : vector<32x128xf32>
    %cst_9 = arith.constant 9.99999974E-6 : f32
    %19 = vector.broadcast %cst_9 : f32 to vector<32x1xf32>
    %20 = arith.addf %16, %19 : vector<32x1xf32>
    %21 = math.rsqrt %20 : vector<32x1xf32>
    %22 = vector.broadcast %21 : vector<32x1xf32> to vector<32x128xf32>
    %23 = arith.mulf %18, %22 : vector<32x128xf32>
    %c0_10 = arith.constant 0 : index
    %c0_11 = arith.constant 0 : index
    %24 = vector.load %arg3[%c0_10, %c0_11] : memref<1x128xf32, #tpu.memory_space<vmem>>, vector<1x128xf32>
    %25 = vector.broadcast %24 : vector<1x128xf32> to vector<32x128xf32>
    %26 = arith.mulf %23, %25 : vector<32x128xf32>
    %c0_12 = arith.constant 0 : index
    %c0_13 = arith.constant 0 : index
    %27 = vector.load %arg4[%c0_12, %c0_13] : memref<1x128xf32, #tpu.memory_space<vmem>>, vector<1x128xf32>
    %28 = vector.broadcast %27 : vector<1x128xf32> to vector<32x128xf32>
    %29 = arith.addf %26, %28 : vector<32x128xf32>
    %30 = arith.truncf %29 : vector<32x128xf32> to vector<32x128xbf16>
    %c0_14 = arith.constant 0 : index
    %c0_15 = arith.constant 0 : index
    %31 = vector.load %arg5[%c0_14, %c0_15] : memref<128x384xbf16, #tpu.memory_space<vmem>>, vector<128x384xbf16>
    %cst_16 = arith.constant dense<0.000000e+00> : vector<32x384xf32>
    %32 = tpu.matmul %30, %31, %cst_16 {dimension_numbers = #tpu.dot_dimension_numbers<[1], [0], [0], [1], [0, 0, 1, 1], [], []>} : vector<32x128xbf16>, vector<128x384xbf16>, vector<32x384xf32> -> vector<32x384xf32>
    %33 = vector.extract_strided_slice %32 {offsets = [0, 0], sizes = [32, 128], strides = [1, 1]} : vector<32x384xf32> to vector<32x128xf32>
    %34 = arith.truncf %33 : vector<32x128xf32> to vector<32x128xbf16>
    %35 = vector.extract_strided_slice %32 {offsets = [0, 128], sizes = [32, 128], strides = [1, 1]} : vector<32x384xf32> to vector<32x128xf32>
    %36 = arith.truncf %35 : vector<32x128xf32> to vector<32x128xbf16>
    %37 = vector.extract_strided_slice %32 {offsets = [0, 256], sizes = [32, 128], strides = [1, 1]} : vector<32x384xf32> to vector<32x128xf32>
    %38 = arith.truncf %37 : vector<32x128xf32> to vector<32x128xbf16>
    %c0_17 = arith.constant 0 : index
    %c0_18 = arith.constant 0 : index
    %39 = vector.load %arg6[%c0_17, %c0_18] : memref<128x128xbf16, #tpu.memory_space<vmem>>, vector<128x128xbf16>
    %40 = vector.extract_strided_slice %34 {offsets = [0, 0], sizes = [16, 128], strides = [1, 1]} : vector<32x128xbf16> to vector<16x128xbf16>
    %41 = vector.extract_strided_slice %36 {offsets = [0, 0], sizes = [16, 128], strides = [1, 1]} : vector<32x128xbf16> to vector<16x128xbf16>
    %42 = vector.extract_strided_slice %38 {offsets = [0, 0], sizes = [16, 128], strides = [1, 1]} : vector<32x128xbf16> to vector<16x128xbf16>
    %43 = vector.extract_strided_slice %40 {offsets = [0, 0], sizes = [16, 32], strides = [1, 1]} : vector<16x128xbf16> to vector<16x32xbf16>
    %44 = vector.extract_strided_slice %41 {offsets = [0, 0], sizes = [16, 32], strides = [1, 1]} : vector<16x128xbf16> to vector<16x32xbf16>
    %cst_19 = arith.constant dense<0.000000e+00> : vector<16x16xf32>
    %45 = tpu.matmul %43, %44, %cst_19 {dimension_numbers = #tpu.dot_dimension_numbers<[1], [1], [0], [0], [0, 0, 1, 0], [], []>} : vector<16x32xbf16>, vector<16x32xbf16>, vector<16x16xf32> -> vector<16x16xf32>
    %cst_20 = arith.constant dense<0xFF800000> : vector<16xf32>
    %46 = vector.multi_reduction <maximumf>, %45, %cst_20 [1] : vector<16x16xf32> to vector<16xf32>
    %47 = vector.shape_cast %46 : vector<16xf32> to vector<16x1xf32>
    %48 = vector.broadcast %47 : vector<16x1xf32> to vector<16x16xf32>
    %49 = arith.subf %45, %48 : vector<16x16xf32>
    %50 = math.exp %49 : vector<16x16xf32>
    %cst_21 = arith.constant dense<0.000000e+00> : vector<16xf32>
    %51 = vector.multi_reduction <add>, %50, %cst_21 [1] : vector<16x16xf32> to vector<16xf32>
    %52 = vector.shape_cast %51 : vector<16xf32> to vector<16x1xf32>
    %53 = tpu.reciprocal %52 {approx = true} : vector<16x1xf32> -> vector<16x1xf32>
    %54 = vector.broadcast %53 : vector<16x1xf32> to vector<16x16xf32>
    %55 = arith.mulf %50, %54 : vector<16x16xf32>
    %56 = arith.truncf %55 : vector<16x16xf32> to vector<16x16xbf16>
    %57 = vector.extract_strided_slice %42 {offsets = [0, 0], sizes = [16, 32], strides = [1, 1]} : vector<16x128xbf16> to vector<16x32xbf16>
    %cst_22 = arith.constant dense<0.000000e+00> : vector<16x32xf32>
    %58 = tpu.matmul %56, %57, %cst_22 {dimension_numbers = #tpu.dot_dimension_numbers<[1], [0], [0], [1], [0, 0, 1, 1], [], []>} : vector<16x16xbf16>, vector<16x32xbf16>, vector<16x32xf32> -> vector<16x32xf32>
    %59 = arith.truncf %58 : vector<16x32xf32> to vector<16x32xbf16>
    %60 = vector.extract_strided_slice %39 {offsets = [0, 0], sizes = [32, 128], strides = [1, 1]} : vector<128x128xbf16> to vector<32x128xbf16>
    %cst_23 = arith.constant dense<0.000000e+00> : vector<16x128xf32>
    %61 = tpu.matmul %59, %60, %cst_23 {dimension_numbers = #tpu.dot_dimension_numbers<[1], [0], [0], [1], [0, 0, 1, 1], [], []>} : vector<16x32xbf16>, vector<32x128xbf16>, vector<16x128xf32> -> vector<16x128xf32>
    %62 = vector.extract_strided_slice %40 {offsets = [0, 32], sizes = [16, 32], strides = [1, 1]} : vector<16x128xbf16> to vector<16x32xbf16>
    %63 = vector.extract_strided_slice %41 {offsets = [0, 32], sizes = [16, 32], strides = [1, 1]} : vector<16x128xbf16> to vector<16x32xbf16>
    %cst_24 = arith.constant dense<0.000000e+00> : vector<16x16xf32>
    %64 = tpu.matmul %62, %63, %cst_24 {dimension_numbers = #tpu.dot_dimension_numbers<[1], [1], [0], [0], [0, 0, 1, 0], [], []>} : vector<16x32xbf16>, vector<16x32xbf16>, vector<16x16xf32> -> vector<16x16xf32>
    %cst_25 = arith.constant dense<0xFF800000> : vector<16xf32>
    %65 = vector.multi_reduction <maximumf>, %64, %cst_25 [1] : vector<16x16xf32> to vector<16xf32>
    %66 = vector.shape_cast %65 : vector<16xf32> to vector<16x1xf32>
    %67 = vector.broadcast %66 : vector<16x1xf32> to vector<16x16xf32>
    %68 = arith.subf %64, %67 : vector<16x16xf32>
    %69 = math.exp %68 : vector<16x16xf32>
    %cst_26 = arith.constant dense<0.000000e+00> : vector<16xf32>
    %70 = vector.multi_reduction <add>, %69, %cst_26 [1] : vector<16x16xf32> to vector<16xf32>
    %71 = vector.shape_cast %70 : vector<16xf32> to vector<16x1xf32>
    %72 = tpu.reciprocal %71 {approx = true} : vector<16x1xf32> -> vector<16x1xf32>
    %73 = vector.broadcast %72 : vector<16x1xf32> to vector<16x16xf32>
    %74 = arith.mulf %69, %73 : vector<16x16xf32>
    %75 = arith.truncf %74 : vector<16x16xf32> to vector<16x16xbf16>
    %76 = vector.extract_strided_slice %42 {offsets = [0, 32], sizes = [16, 32], strides = [1, 1]} : vector<16x128xbf16> to vector<16x32xbf16>
    %cst_27 = arith.constant dense<0.000000e+00> : vector<16x32xf32>
    %77 = tpu.matmul %75, %76, %cst_27 {dimension_numbers = #tpu.dot_dimension_numbers<[1], [0], [0], [1], [0, 0, 1, 1], [], []>} : vector<16x16xbf16>, vector<16x32xbf16>, vector<16x32xf32> -> vector<16x32xf32>
    %78 = arith.truncf %77 : vector<16x32xf32> to vector<16x32xbf16>
    %79 = vector.extract_strided_slice %39 {offsets = [32, 0], sizes = [32, 128], strides = [1, 1]} : vector<128x128xbf16> to vector<32x128xbf16>
    %cst_28 = arith.constant dense<0.000000e+00> : vector<16x128xf32>
    %80 = tpu.matmul %78, %79, %cst_28 {dimension_numbers = #tpu.dot_dimension_numbers<[1], [0], [0], [1], [0, 0, 1, 1], [], []>} : vector<16x32xbf16>, vector<32x128xbf16>, vector<16x128xf32> -> vector<16x128xf32>
    %81 = arith.addf %61, %80 : vector<16x128xf32>
    %82 = vector.extract_strided_slice %40 {offsets = [0, 64], sizes = [16, 32], strides = [1, 1]} : vector<16x128xbf16> to vector<16x32xbf16>
    %83 = vector.extract_strided_slice %41 {offsets = [0, 64], sizes = [16, 32], strides = [1, 1]} : vector<16x128xbf16> to vector<16x32xbf16>
    %cst_29 = arith.constant dense<0.000000e+00> : vector<16x16xf32>
    %84 = tpu.matmul %82, %83, %cst_29 {dimension_numbers = #tpu.dot_dimension_numbers<[1], [1], [0], [0], [0, 0, 1, 0], [], []>} : vector<16x32xbf16>, vector<16x32xbf16>, vector<16x16xf32> -> vector<16x16xf32>
    %cst_30 = arith.constant dense<0xFF800000> : vector<16xf32>
    %85 = vector.multi_reduction <maximumf>, %84, %cst_30 [1] : vector<16x16xf32> to vector<16xf32>
    %86 = vector.shape_cast %85 : vector<16xf32> to vector<16x1xf32>
    %87 = vector.broadcast %86 : vector<16x1xf32> to vector<16x16xf32>
    %88 = arith.subf %84, %87 : vector<16x16xf32>
    %89 = math.exp %88 : vector<16x16xf32>
    %cst_31 = arith.constant dense<0.000000e+00> : vector<16xf32>
    %90 = vector.multi_reduction <add>, %89, %cst_31 [1] : vector<16x16xf32> to vector<16xf32>
    %91 = vector.shape_cast %90 : vector<16xf32> to vector<16x1xf32>
    %92 = tpu.reciprocal %91 {approx = true} : vector<16x1xf32> -> vector<16x1xf32>
    %93 = vector.broadcast %92 : vector<16x1xf32> to vector<16x16xf32>
    %94 = arith.mulf %89, %93 : vector<16x16xf32>
    %95 = arith.truncf %94 : vector<16x16xf32> to vector<16x16xbf16>
    %96 = vector.extract_strided_slice %42 {offsets = [0, 64], sizes = [16, 32], strides = [1, 1]} : vector<16x128xbf16> to vector<16x32xbf16>
    %cst_32 = arith.constant dense<0.000000e+00> : vector<16x32xf32>
    %97 = tpu.matmul %95, %96, %cst_32 {dimension_numbers = #tpu.dot_dimension_numbers<[1], [0], [0], [1], [0, 0, 1, 1], [], []>} : vector<16x16xbf16>, vector<16x32xbf16>, vector<16x32xf32> -> vector<16x32xf32>
    %98 = arith.truncf %97 : vector<16x32xf32> to vector<16x32xbf16>
    %99 = vector.extract_strided_slice %39 {offsets = [64, 0], sizes = [32, 128], strides = [1, 1]} : vector<128x128xbf16> to vector<32x128xbf16>
    %cst_33 = arith.constant dense<0.000000e+00> : vector<16x128xf32>
    %100 = tpu.matmul %98, %99, %cst_33 {dimension_numbers = #tpu.dot_dimension_numbers<[1], [0], [0], [1], [0, 0, 1, 1], [], []>} : vector<16x32xbf16>, vector<32x128xbf16>, vector<16x128xf32> -> vector<16x128xf32>
    %101 = arith.addf %81, %100 : vector<16x128xf32>
    %102 = vector.extract_strided_slice %40 {offsets = [0, 96], sizes = [16, 32], strides = [1, 1]} : vector<16x128xbf16> to vector<16x32xbf16>
    %103 = vector.extract_strided_slice %41 {offsets = [0, 96], sizes = [16, 32], strides = [1, 1]} : vector<16x128xbf16> to vector<16x32xbf16>
    %cst_34 = arith.constant dense<0.000000e+00> : vector<16x16xf32>
    %104 = tpu.matmul %102, %103, %cst_34 {dimension_numbers = #tpu.dot_dimension_numbers<[1], [1], [0], [0], [0, 0, 1, 0], [], []>} : vector<16x32xbf16>, vector<16x32xbf16>, vector<16x16xf32> -> vector<16x16xf32>
    %cst_35 = arith.constant dense<0xFF800000> : vector<16xf32>
    %105 = vector.multi_reduction <maximumf>, %104, %cst_35 [1] : vector<16x16xf32> to vector<16xf32>
    %106 = vector.shape_cast %105 : vector<16xf32> to vector<16x1xf32>
    %107 = vector.broadcast %106 : vector<16x1xf32> to vector<16x16xf32>
    %108 = arith.subf %104, %107 : vector<16x16xf32>
    %109 = math.exp %108 : vector<16x16xf32>
    %cst_36 = arith.constant dense<0.000000e+00> : vector<16xf32>
    %110 = vector.multi_reduction <add>, %109, %cst_36 [1] : vector<16x16xf32> to vector<16xf32>
    %111 = vector.shape_cast %110 : vector<16xf32> to vector<16x1xf32>
    %112 = tpu.reciprocal %111 {approx = true} : vector<16x1xf32> -> vector<16x1xf32>
    %113 = vector.broadcast %112 : vector<16x1xf32> to vector<16x16xf32>
    %114 = arith.mulf %109, %113 : vector<16x16xf32>
    %115 = arith.truncf %114 : vector<16x16xf32> to vector<16x16xbf16>
    %116 = vector.extract_strided_slice %42 {offsets = [0, 96], sizes = [16, 32], strides = [1, 1]} : vector<16x128xbf16> to vector<16x32xbf16>
    %cst_37 = arith.constant dense<0.000000e+00> : vector<16x32xf32>
    %117 = tpu.matmul %115, %116, %cst_37 {dimension_numbers = #tpu.dot_dimension_numbers<[1], [0], [0], [1], [0, 0, 1, 1], [], []>} : vector<16x16xbf16>, vector<16x32xbf16>, vector<16x32xf32> -> vector<16x32xf32>
    %118 = arith.truncf %117 : vector<16x32xf32> to vector<16x32xbf16>
    %119 = vector.extract_strided_slice %39 {offsets = [96, 0], sizes = [32, 128], strides = [1, 1]} : vector<128x128xbf16> to vector<32x128xbf16>
    %cst_38 = arith.constant dense<0.000000e+00> : vector<16x128xf32>
    %120 = tpu.matmul %118, %119, %cst_38 {dimension_numbers = #tpu.dot_dimension_numbers<[1], [0], [0], [1], [0, 0, 1, 1], [], []>} : vector<16x32xbf16>, vector<32x128xbf16>, vector<16x128xf32> -> vector<16x128xf32>
    %121 = arith.addf %101, %120 : vector<16x128xf32>
    %c0_39 = arith.constant 0 : index
    %c0_40 = arith.constant 0 : index
    %122 = vector.load %arg23[%c0_39, %c0_40] : memref<32x128xf32, #tpu.memory_space<vmem>>, vector<16x128xf32>
    tpu.vector_store %arg23[%c0_39, %c0_40], %121 {strides = array<i32>} : memref<32x128xf32, #tpu.memory_space<vmem>>, vector<16x128xf32>,
    %123 = vector.extract_strided_slice %34 {offsets = [16, 0], sizes = [16, 128], strides = [1, 1]} : vector<32x128xbf16> to vector<16x128xbf16>
    %124 = vector.extract_strided_slice %36 {offsets = [16, 0], sizes = [16, 128], strides = [1, 1]} : vector<32x128xbf16> to vector<16x128xbf16>
    %125 = vector.extract_strided_slice %38 {offsets = [16, 0], sizes = [16, 128], strides = [1, 1]} : vector<32x128xbf16> to vector<16x128xbf16>
    %126 = vector.extract_strided_slice %123 {offsets = [0, 0], sizes = [16, 32], strides = [1, 1]} : vector<16x128xbf16> to vector<16x32xbf16>
    %127 = vector.extract_strided_slice %124 {offsets = [0, 0], sizes = [16, 32], strides = [1, 1]} : vector<16x128xbf16> to vector<16x32xbf16>
    %cst_41 = arith.constant dense<0.000000e+00> : vector<16x16xf32>
    %128 = tpu.matmul %126, %127, %cst_41 {dimension_numbers = #tpu.dot_dimension_numbers<[1], [1], [0], [0], [0, 0, 1, 0], [], []>} : vector<16x32xbf16>, vector<16x32xbf16>, vector<16x16xf32> -> vector<16x16xf32>
    %cst_42 = arith.constant dense<0xFF800000> : vector<16xf32>
    %129 = vector.multi_reduction <maximumf>, %128, %cst_42 [1] : vector<16x16xf32> to vector<16xf32>
    %130 = vector.shape_cast %129 : vector<16xf32> to vector<16x1xf32>
    %131 = vector.broadcast %130 : vector<16x1xf32> to vector<16x16xf32>
    %132 = arith.subf %128, %131 : vector<16x16xf32>
    %133 = math.exp %132 : vector<16x16xf32>
    %cst_43 = arith.constant dense<0.000000e+00> : vector<16xf32>
    %134 = vector.multi_reduction <add>, %133, %cst_43 [1] : vector<16x16xf32> to vector<16xf32>
    %135 = vector.shape_cast %134 : vector<16xf32> to vector<16x1xf32>
    %136 = tpu.reciprocal %135 {approx = true} : vector<16x1xf32> -> vector<16x1xf32>
    %137 = vector.broadcast %136 : vector<16x1xf32> to vector<16x16xf32>
    %138 = arith.mulf %133, %137 : vector<16x16xf32>
    %139 = arith.truncf %138 : vector<16x16xf32> to vector<16x16xbf16>
    %140 = vector.extract_strided_slice %125 {offsets = [0, 0], sizes = [16, 32], strides = [1, 1]} : vector<16x128xbf16> to vector<16x32xbf16>
    %cst_44 = arith.constant dense<0.000000e+00> : vector<16x32xf32>
    %141 = tpu.matmul %139, %140, %cst_44 {dimension_numbers = #tpu.dot_dimension_numbers<[1], [0], [0], [1], [0, 0, 1, 1], [], []>} : vector<16x16xbf16>, vector<16x32xbf16>, vector<16x32xf32> -> vector<16x32xf32>
    %142 = arith.truncf %141 : vector<16x32xf32> to vector<16x32xbf16>
    %143 = vector.extract_strided_slice %39 {offsets = [0, 0], sizes = [32, 128], strides = [1, 1]} : vector<128x128xbf16> to vector<32x128xbf16>
    %cst_45 = arith.constant dense<0.000000e+00> : vector<16x128xf32>
    %144 = tpu.matmul %142, %143, %cst_45 {dimension_numbers = #tpu.dot_dimension_numbers<[1], [0], [0], [1], [0, 0, 1, 1], [], []>} : vector<16x32xbf16>, vector<32x128xbf16>, vector<16x128xf32> -> vector<16x128xf32>
    %145 = vector.extract_strided_slice %123 {offsets = [0, 32], sizes = [16, 32], strides = [1, 1]} : vector<16x128xbf16> to vector<16x32xbf16>
    %146 = vector.extract_strided_slice %124 {offsets = [0, 32], sizes = [16, 32], strides = [1, 1]} : vector<16x128xbf16> to vector<16x32xbf16>
    %cst_46 = arith.constant dense<0.000000e+00> : vector<16x16xf32>
    %147 = tpu.matmul %145, %146, %cst_46 {dimension_numbers = #tpu.dot_dimension_numbers<[1], [1], [0], [0], [0, 0, 1, 0], [], []>} : vector<16x32xbf16>, vector<16x32xbf16>, vector<16x16xf32> -> vector<16x16xf32>
    %cst_47 = arith.constant dense<0xFF800000> : vector<16xf32>
    %148 = vector.multi_reduction <maximumf>, %147, %cst_47 [1] : vector<16x16xf32> to vector<16xf32>
    %149 = vector.shape_cast %148 : vector<16xf32> to vector<16x1xf32>
    %150 = vector.broadcast %149 : vector<16x1xf32> to vector<16x16xf32>
    %151 = arith.subf %147, %150 : vector<16x16xf32>
    %152 = math.exp %151 : vector<16x16xf32>
    %cst_48 = arith.constant dense<0.000000e+00> : vector<16xf32>
    %153 = vector.multi_reduction <add>, %152, %cst_48 [1] : vector<16x16xf32> to vector<16xf32>
    %154 = vector.shape_cast %153 : vector<16xf32> to vector<16x1xf32>
    %155 = tpu.reciprocal %154 {approx = true} : vector<16x1xf32> -> vector<16x1xf32>
    %156 = vector.broadcast %155 : vector<16x1xf32> to vector<16x16xf32>
    %157 = arith.mulf %152, %156 : vector<16x16xf32>
    %158 = arith.truncf %157 : vector<16x16xf32> to vector<16x16xbf16>
    %159 = vector.extract_strided_slice %125 {offsets = [0, 32], sizes = [16, 32], strides = [1, 1]} : vector<16x128xbf16> to vector<16x32xbf16>
    %cst_49 = arith.constant dense<0.000000e+00> : vector<16x32xf32>
    %160 = tpu.matmul %158, %159, %cst_49 {dimension_numbers = #tpu.dot_dimension_numbers<[1], [0], [0], [1], [0, 0, 1, 1], [], []>} : vector<16x16xbf16>, vector<16x32xbf16>, vector<16x32xf32> -> vector<16x32xf32>
    %161 = arith.truncf %160 : vector<16x32xf32> to vector<16x32xbf16>
    %162 = vector.extract_strided_slice %39 {offsets = [32, 0], sizes = [32, 128], strides = [1, 1]} : vector<128x128xbf16> to vector<32x128xbf16>
    %cst_50 = arith.constant dense<0.000000e+00> : vector<16x128xf32>
    %163 = tpu.matmul %161, %162, %cst_50 {dimension_numbers = #tpu.dot_dimension_numbers<[1], [0], [0], [1], [0, 0, 1, 1], [], []>} : vector<16x32xbf16>, vector<32x128xbf16>, vector<16x128xf32> -> vector<16x128xf32>
    %164 = arith.addf %144, %163 : vector<16x128xf32>
    %165 = vector.extract_strided_slice %123 {offsets = [0, 64], sizes = [16, 32], strides = [1, 1]} : vector<16x128xbf16> to vector<16x32xbf16>
    %166 = vector.extract_strided_slice %124 {offsets = [0, 64], sizes = [16, 32], strides = [1, 1]} : vector<16x128xbf16> to vector<16x32xbf16>
    %cst_51 = arith.constant dense<0.000000e+00> : vector<16x16xf32>
    %167 = tpu.matmul %165, %166, %cst_51 {dimension_numbers = #tpu.dot_dimension_numbers<[1], [1], [0], [0], [0, 0, 1, 0], [], []>} : vector<16x32xbf16>, vector<16x32xbf16>, vector<16x16xf32> -> vector<16x16xf32>
    %cst_52 = arith.constant dense<0xFF800000> : vector<16xf32>
    %168 = vector.multi_reduction <maximumf>, %167, %cst_52 [1] : vector<16x16xf32> to vector<16xf32>
    %169 = vector.shape_cast %168 : vector<16xf32> to vector<16x1xf32>
    %170 = vector.broadcast %169 : vector<16x1xf32> to vector<16x16xf32>
    %171 = arith.subf %167, %170 : vector<16x16xf32>
    %172 = math.exp %171 : vector<16x16xf32>
    %cst_53 = arith.constant dense<0.000000e+00> : vector<16xf32>
    %173 = vector.multi_reduction <add>, %172, %cst_53 [1] : vector<16x16xf32> to vector<16xf32>
    %174 = vector.shape_cast %173 : vector<16xf32> to vector<16x1xf32>
    %175 = tpu.reciprocal %174 {approx = true} : vector<16x1xf32> -> vector<16x1xf32>
    %176 = vector.broadcast %175 : vector<16x1xf32> to vector<16x16xf32>
    %177 = arith.mulf %172, %176 : vector<16x16xf32>
    %178 = arith.truncf %177 : vector<16x16xf32> to vector<16x16xbf16>
    %179 = vector.extract_strided_slice %125 {offsets = [0, 64], sizes = [16, 32], strides = [1, 1]} : vector<16x128xbf16> to vector<16x32xbf16>
    %cst_54 = arith.constant dense<0.000000e+00> : vector<16x32xf32>
    %180 = tpu.matmul %178, %179, %cst_54 {dimension_numbers = #tpu.dot_dimension_numbers<[1], [0], [0], [1], [0, 0, 1, 1], [], []>} : vector<16x16xbf16>, vector<16x32xbf16>, vector<16x32xf32> -> vector<16x32xf32>
    %181 = arith.truncf %180 : vector<16x32xf32> to vector<16x32xbf16>
    %182 = vector.extract_strided_slice %39 {offsets = [64, 0], sizes = [32, 128], strides = [1, 1]} : vector<128x128xbf16> to vector<32x128xbf16>
    %cst_55 = arith.constant dense<0.000000e+00> : vector<16x128xf32>
    %183 = tpu.matmul %181, %182, %cst_55 {dimension_numbers = #tpu.dot_dimension_numbers<[1], [0], [0], [1], [0, 0, 1, 1], [], []>} : vector<16x32xbf16>, vector<32x128xbf16>, vector<16x128xf32> -> vector<16x128xf32>
    %184 = arith.addf %164, %183 : vector<16x128xf32>
    %185 = vector.extract_strided_slice %123 {offsets = [0, 96], sizes = [16, 32], strides = [1, 1]} : vector<16x128xbf16> to vector<16x32xbf16>
    %186 = vector.extract_strided_slice %124 {offsets = [0, 96], sizes = [16, 32], strides = [1, 1]} : vector<16x128xbf16> to vector<16x32xbf16>
    %cst_56 = arith.constant dense<0.000000e+00> : vector<16x16xf32>
    %187 = tpu.matmul %185, %186, %cst_56 {dimension_numbers = #tpu.dot_dimension_numbers<[1], [1], [0], [0], [0, 0, 1, 0], [], []>} : vector<16x32xbf16>, vector<16x32xbf16>, vector<16x16xf32> -> vector<16x16xf32>
    %cst_57 = arith.constant dense<0xFF800000> : vector<16xf32>
    %188 = vector.multi_reduction <maximumf>, %187, %cst_57 [1] : vector<16x16xf32> to vector<16xf32>
    %189 = vector.shape_cast %188 : vector<16xf32> to vector<16x1xf32>
    %190 = vector.broadcast %189 : vector<16x1xf32> to vector<16x16xf32>
    %191 = arith.subf %187, %190 : vector<16x16xf32>
    %192 = math.exp %191 : vector<16x16xf32>
    %cst_58 = arith.constant dense<0.000000e+00> : vector<16xf32>
    %193 = vector.multi_reduction <add>, %192, %cst_58 [1] : vector<16x16xf32> to vector<16xf32>
    %194 = vector.shape_cast %193 : vector<16xf32> to vector<16x1xf32>
    %195 = tpu.reciprocal %194 {approx = true} : vector<16x1xf32> -> vector<16x1xf32>
    %196 = vector.broadcast %195 : vector<16x1xf32> to vector<16x16xf32>
    %197 = arith.mulf %192, %196 : vector<16x16xf32>
    %198 = arith.truncf %197 : vector<16x16xf32> to vector<16x16xbf16>
    %199 = vector.extract_strided_slice %125 {offsets = [0, 96], sizes = [16, 32], strides = [1, 1]} : vector<16x128xbf16> to vector<16x32xbf16>
    %cst_59 = arith.constant dense<0.000000e+00> : vector<16x32xf32>
    %200 = tpu.matmul %198, %199, %cst_59 {dimension_numbers = #tpu.dot_dimension_numbers<[1], [0], [0], [1], [0, 0, 1, 1], [], []>} : vector<16x16xbf16>, vector<16x32xbf16>, vector<16x32xf32> -> vector<16x32xf32>
    %201 = arith.truncf %200 : vector<16x32xf32> to vector<16x32xbf16>
    %202 = vector.extract_strided_slice %39 {offsets = [96, 0], sizes = [32, 128], strides = [1, 1]} : vector<128x128xbf16> to vector<32x128xbf16>
    %cst_60 = arith.constant dense<0.000000e+00> : vector<16x128xf32>
    %203 = tpu.matmul %201, %202, %cst_60 {dimension_numbers = #tpu.dot_dimension_numbers<[1], [0], [0], [1], [0, 0, 1, 1], [], []>} : vector<16x32xbf16>, vector<32x128xbf16>, vector<16x128xf32> -> vector<16x128xf32>
    %204 = arith.addf %184, %203 : vector<16x128xf32>
    %c16 = arith.constant 16 : index
    %c0_61 = arith.constant 0 : index
    %205 = vector.load %arg23[%c16, %c0_61] : memref<32x128xf32, #tpu.memory_space<vmem>>, vector<16x128xf32>
    tpu.vector_store %arg23[%c16, %c0_61], %204 {strides = array<i32>} : memref<32x128xf32, #tpu.memory_space<vmem>>, vector<16x128xf32>,
    %c0_62 = arith.constant 0 : index
    %c0_63 = arith.constant 0 : index
    %206 = vector.load %arg23[%c0_62, %c0_63] : memref<32x128xf32, #tpu.memory_space<vmem>>, vector<32x128xf32>
    %207 = arith.addf %1, %206 : vector<32x128xf32>
    %c0_64 = arith.constant 0 : index
    %c0_65 = arith.constant 0 : index
    %208 = vector.load %arg7[%c0_64, %c0_65] : memref<1x128xf32, #tpu.memory_space<vmem>>, vector<1x128xf32>
    %209 = vector.broadcast %208 : vector<1x128xf32> to vector<32x128xf32>
    %210 = arith.addf %207, %209 : vector<32x128xf32>
    %cst_66 = arith.constant dense<0.000000e+00> : vector<32xf32>
    %211 = vector.multi_reduction <add>, %3, %cst_66 [1] : vector<32x128xf32> to vector<32xf32>
    %212 = vector.shape_cast %211 : vector<32xf32> to vector<32x1xf32>
    %cst_67 = arith.constant 1.280000e+02 : f32
    %213 = vector.broadcast %cst_67 : f32 to vector<32x1xf32>
    %214 = arith.divf %212, %213 : vector<32x1xf32>
    %215 = arith.mulf %3, %3 : vector<32x128xf32>
    %cst_68 = arith.constant dense<0.000000e+00> : vector<32xf32>
    %216 = vector.multi_reduction <add>, %215, %cst_68 [1] : vector<32x128xf32> to vector<32xf32>
    %217 = vector.shape_cast %216 : vector<32xf32> to vector<32x1xf32>
    %cst_69 = arith.constant 1.280000e+02 : f32
    %218 = vector.broadcast %cst_69 : f32 to vector<32x1xf32>
    %219 = arith.divf %217, %218 : vector<32x1xf32>
    %220 = arith.mulf %214, %214 : vector<32x1xf32>
    %221 = arith.subf %219, %220 : vector<32x1xf32>
    %cst_70 = arith.constant 0.000000e+00 : f32
    %222 = vector.broadcast %cst_70 : f32 to vector<32x1xf32>
    %223 = arith.maximumf %221, %222 : vector<32x1xf32>
    %224 = vector.broadcast %214 : vector<32x1xf32> to vector<32x128xf32>
    %225 = arith.subf %3, %224 : vector<32x128xf32>
    %cst_71 = arith.constant 9.99999974E-6 : f32
    %226 = vector.broadcast %cst_71 : f32 to vector<32x1xf32>
    %227 = arith.addf %223, %226 : vector<32x1xf32>
    %228 = math.rsqrt %227 : vector<32x1xf32>
    %229 = vector.broadcast %228 : vector<32x1xf32> to vector<32x128xf32>
    %230 = arith.mulf %225, %229 : vector<32x128xf32>
    %c0_72 = arith.constant 0 : index
    %c0_73 = arith.constant 0 : index
    %231 = vector.load %arg8[%c0_72, %c0_73] : memref<1x128xf32, #tpu.memory_space<vmem>>, vector<1x128xf32>
    %232 = vector.broadcast %231 : vector<1x128xf32> to vector<32x128xf32>
    %233 = arith.mulf %230, %232 : vector<32x128xf32>
    %c0_74 = arith.constant 0 : index
    %c0_75 = arith.constant 0 : index
    %234 = vector.load %arg9[%c0_74, %c0_75] : memref<1x128xf32, #tpu.memory_space<vmem>>, vector<1x128xf32>
    %235 = vector.broadcast %234 : vector<1x128xf32> to vector<32x128xf32>
    %236 = arith.addf %233, %235 : vector<32x128xf32>
    %cst_76 = arith.constant dense<0.000000e+00> : vector<32xf32>
    %237 = vector.multi_reduction <add>, %210, %cst_76 [1] : vector<32x128xf32> to vector<32xf32>
    %238 = vector.shape_cast %237 : vector<32xf32> to vector<32x1xf32>
    %cst_77 = arith.constant 1.280000e+02 : f32
    %239 = vector.broadcast %cst_77 : f32 to vector<32x1xf32>
    %240 = arith.divf %238, %239 : vector<32x1xf32>
    %241 = arith.mulf %210, %210 : vector<32x128xf32>
    %cst_78 = arith.constant dense<0.000000e+00> : vector<32xf32>
    %242 = vector.multi_reduction <add>, %241, %cst_78 [1] : vector<32x128xf32> to vector<32xf32>
    %243 = vector.shape_cast %242 : vector<32xf32> to vector<32x1xf32>
    %cst_79 = arith.constant 1.280000e+02 : f32
    %244 = vector.broadcast %cst_79 : f32 to vector<32x1xf32>
    %245 = arith.divf %243, %244 : vector<32x1xf32>
    %246 = arith.mulf %240, %240 : vector<32x1xf32>
    %247 = arith.subf %245, %246 : vector<32x1xf32>
    %cst_80 = arith.constant 0.000000e+00 : f32
    %248 = vector.broadcast %cst_80 : f32 to vector<32x1xf32>
    %249 = arith.maximumf %247, %248 : vector<32x1xf32>
    %250 = vector.broadcast %240 : vector<32x1xf32> to vector<32x128xf32>
    %251 = arith.subf %210, %250 : vector<32x128xf32>
    %cst_81 = arith.constant 9.99999974E-6 : f32
    %252 = vector.broadcast %cst_81 : f32 to vector<32x1xf32>
    %253 = arith.addf %249, %252 : vector<32x1xf32>
    %254 = math.rsqrt %253 : vector<32x1xf32>
    %255 = vector.broadcast %254 : vector<32x1xf32> to vector<32x128xf32>
    %256 = arith.mulf %251, %255 : vector<32x128xf32>
    %c0_82 = arith.constant 0 : index
    %c0_83 = arith.constant 0 : index
    %257 = vector.load %arg10[%c0_82, %c0_83] : memref<1x128xf32, #tpu.memory_space<vmem>>, vector<1x128xf32>
    %258 = vector.broadcast %257 : vector<1x128xf32> to vector<32x128xf32>
    %259 = arith.mulf %256, %258 : vector<32x128xf32>
    %c0_84 = arith.constant 0 : index
    %c0_85 = arith.constant 0 : index
    %260 = vector.load %arg11[%c0_84, %c0_85] : memref<1x128xf32, #tpu.memory_space<vmem>>, vector<1x128xf32>
    %261 = vector.broadcast %260 : vector<1x128xf32> to vector<32x128xf32>
    %262 = arith.addf %259, %261 : vector<32x128xf32>
    %263 = arith.truncf %262 : vector<32x128xf32> to vector<32x128xbf16>
    %c0_86 = arith.constant 0 : index
    %c0_87 = arith.constant 0 : index
    %264 = vector.load %arg12[%c0_86, %c0_87] : memref<128x128xbf16, #tpu.memory_space<vmem>>, vector<128x128xbf16>
    %cst_88 = arith.constant dense<0.000000e+00> : vector<32x128xf32>
    %265 = tpu.matmul %263, %264, %cst_88 {dimension_numbers = #tpu.dot_dimension_numbers<[1], [0], [0], [1], [0, 0, 1, 1], [], []>} : vector<32x128xbf16>, vector<128x128xbf16>, vector<32x128xf32> -> vector<32x128xf32>
    %266 = arith.truncf %236 : vector<32x128xf32> to vector<32x128xbf16>
    %c0_89 = arith.constant 0 : index
    %c0_90 = arith.constant 0 : index
    %267 = vector.load %arg13[%c0_89, %c0_90] : memref<128x256xbf16, #tpu.memory_space<vmem>>, vector<128x256xbf16>
    %cst_91 = arith.constant dense<0.000000e+00> : vector<32x256xf32>
    %268 = tpu.matmul %266, %267, %cst_91 {dimension_numbers = #tpu.dot_dimension_numbers<[1], [0], [0], [1], [0, 0, 1, 1], [], []>} : vector<32x128xbf16>, vector<128x256xbf16>, vector<32x256xf32> -> vector<32x256xf32>
    %269 = arith.truncf %265 : vector<32x128xf32> to vector<32x128xbf16>
    %270 = vector.extract_strided_slice %268 {offsets = [0, 0], sizes = [32, 128], strides = [1, 1]} : vector<32x256xf32> to vector<32x128xf32>
    %271 = arith.truncf %270 : vector<32x128xf32> to vector<32x128xbf16>
    %272 = vector.extract_strided_slice %268 {offsets = [0, 128], sizes = [32, 128], strides = [1, 1]} : vector<32x256xf32> to vector<32x128xf32>
    %273 = arith.truncf %272 : vector<32x128xf32> to vector<32x128xbf16>
    %c0_92 = arith.constant 0 : index
    %c0_93 = arith.constant 0 : index
    %274 = vector.load %arg14[%c0_92, %c0_93] : memref<128x128xbf16, #tpu.memory_space<vmem>>, vector<128x128xbf16>
    %275 = vector.extract_strided_slice %269 {offsets = [0, 0], sizes = [16, 128], strides = [1, 1]} : vector<32x128xbf16> to vector<16x128xbf16>
    %276 = vector.extract_strided_slice %271 {offsets = [0, 0], sizes = [16, 128], strides = [1, 1]} : vector<32x128xbf16> to vector<16x128xbf16>
    %277 = vector.extract_strided_slice %273 {offsets = [0, 0], sizes = [16, 128], strides = [1, 1]} : vector<32x128xbf16> to vector<16x128xbf16>
    %278 = vector.extract_strided_slice %275 {offsets = [0, 0], sizes = [16, 32], strides = [1, 1]} : vector<16x128xbf16> to vector<16x32xbf16>
    %279 = vector.extract_strided_slice %276 {offsets = [0, 0], sizes = [16, 32], strides = [1, 1]} : vector<16x128xbf16> to vector<16x32xbf16>
    %cst_94 = arith.constant dense<0.000000e+00> : vector<16x16xf32>
    %280 = tpu.matmul %278, %279, %cst_94 {dimension_numbers = #tpu.dot_dimension_numbers<[1], [1], [0], [0], [0, 0, 1, 0], [], []>} : vector<16x32xbf16>, vector<16x32xbf16>, vector<16x16xf32> -> vector<16x16xf32>
    %cst_95 = arith.constant dense<0xFF800000> : vector<16xf32>
    %281 = vector.multi_reduction <maximumf>, %280, %cst_95 [1] : vector<16x16xf32> to vector<16xf32>
    %282 = vector.shape_cast %281 : vector<16xf32> to vector<16x1xf32>
    %283 = vector.broadcast %282 : vector<16x1xf32> to vector<16x16xf32>
    %284 = arith.subf %280, %283 : vector<16x16xf32>
    %285 = math.exp %284 : vector<16x16xf32>
    %cst_96 = arith.constant dense<0.000000e+00> : vector<16xf32>
    %286 = vector.multi_reduction <add>, %285, %cst_96 [1] : vector<16x16xf32> to vector<16xf32>
    %287 = vector.shape_cast %286 : vector<16xf32> to vector<16x1xf32>
    %288 = tpu.reciprocal %287 {approx = true} : vector<16x1xf32> -> vector<16x1xf32>
    %289 = vector.broadcast %288 : vector<16x1xf32> to vector<16x16xf32>
    %290 = arith.mulf %285, %289 : vector<16x16xf32>
    %291 = arith.truncf %290 : vector<16x16xf32> to vector<16x16xbf16>
    %292 = vector.extract_strided_slice %277 {offsets = [0, 0], sizes = [16, 32], strides = [1, 1]} : vector<16x128xbf16> to vector<16x32xbf16>
    %cst_97 = arith.constant dense<0.000000e+00> : vector<16x32xf32>
    %293 = tpu.matmul %291, %292, %cst_97 {dimension_numbers = #tpu.dot_dimension_numbers<[1], [0], [0], [1], [0, 0, 1, 1], [], []>} : vector<16x16xbf16>, vector<16x32xbf16>, vector<16x32xf32> -> vector<16x32xf32>
    %294 = arith.truncf %293 : vector<16x32xf32> to vector<16x32xbf16>
    %295 = vector.extract_strided_slice %274 {offsets = [0, 0], sizes = [32, 128], strides = [1, 1]} : vector<128x128xbf16> to vector<32x128xbf16>
    %cst_98 = arith.constant dense<0.000000e+00> : vector<16x128xf32>
    %296 = tpu.matmul %294, %295, %cst_98 {dimension_numbers = #tpu.dot_dimension_numbers<[1], [0], [0], [1], [0, 0, 1, 1], [], []>} : vector<16x32xbf16>, vector<32x128xbf16>, vector<16x128xf32> -> vector<16x128xf32>
    %297 = vector.extract_strided_slice %275 {offsets = [0, 32], sizes = [16, 32], strides = [1, 1]} : vector<16x128xbf16> to vector<16x32xbf16>
    %298 = vector.extract_strided_slice %276 {offsets = [0, 32], sizes = [16, 32], strides = [1, 1]} : vector<16x128xbf16> to vector<16x32xbf16>
    %cst_99 = arith.constant dense<0.000000e+00> : vector<16x16xf32>
    %299 = tpu.matmul %297, %298, %cst_99 {dimension_numbers = #tpu.dot_dimension_numbers<[1], [1], [0], [0], [0, 0, 1, 0], [], []>} : vector<16x32xbf16>, vector<16x32xbf16>, vector<16x16xf32> -> vector<16x16xf32>
    %cst_100 = arith.constant dense<0xFF800000> : vector<16xf32>
    %300 = vector.multi_reduction <maximumf>, %299, %cst_100 [1] : vector<16x16xf32> to vector<16xf32>
    %301 = vector.shape_cast %300 : vector<16xf32> to vector<16x1xf32>
    %302 = vector.broadcast %301 : vector<16x1xf32> to vector<16x16xf32>
    %303 = arith.subf %299, %302 : vector<16x16xf32>
    %304 = math.exp %303 : vector<16x16xf32>
    %cst_101 = arith.constant dense<0.000000e+00> : vector<16xf32>
    %305 = vector.multi_reduction <add>, %304, %cst_101 [1] : vector<16x16xf32> to vector<16xf32>
    %306 = vector.shape_cast %305 : vector<16xf32> to vector<16x1xf32>
    %307 = tpu.reciprocal %306 {approx = true} : vector<16x1xf32> -> vector<16x1xf32>
    %308 = vector.broadcast %307 : vector<16x1xf32> to vector<16x16xf32>
    %309 = arith.mulf %304, %308 : vector<16x16xf32>
    %310 = arith.truncf %309 : vector<16x16xf32> to vector<16x16xbf16>
    %311 = vector.extract_strided_slice %277 {offsets = [0, 32], sizes = [16, 32], strides = [1, 1]} : vector<16x128xbf16> to vector<16x32xbf16>
    %cst_102 = arith.constant dense<0.000000e+00> : vector<16x32xf32>
    %312 = tpu.matmul %310, %311, %cst_102 {dimension_numbers = #tpu.dot_dimension_numbers<[1], [0], [0], [1], [0, 0, 1, 1], [], []>} : vector<16x16xbf16>, vector<16x32xbf16>, vector<16x32xf32> -> vector<16x32xf32>
    %313 = arith.truncf %312 : vector<16x32xf32> to vector<16x32xbf16>
    %314 = vector.extract_strided_slice %274 {offsets = [32, 0], sizes = [32, 128], strides = [1, 1]} : vector<128x128xbf16> to vector<32x128xbf16>
    %cst_103 = arith.constant dense<0.000000e+00> : vector<16x128xf32>
    %315 = tpu.matmul %313, %314, %cst_103 {dimension_numbers = #tpu.dot_dimension_numbers<[1], [0], [0], [1], [0, 0, 1, 1], [], []>} : vector<16x32xbf16>, vector<32x128xbf16>, vector<16x128xf32> -> vector<16x128xf32>
    %316 = arith.addf %296, %315 : vector<16x128xf32>
    %317 = vector.extract_strided_slice %275 {offsets = [0, 64], sizes = [16, 32], strides = [1, 1]} : vector<16x128xbf16> to vector<16x32xbf16>
    %318 = vector.extract_strided_slice %276 {offsets = [0, 64], sizes = [16, 32], strides = [1, 1]} : vector<16x128xbf16> to vector<16x32xbf16>
    %cst_104 = arith.constant dense<0.000000e+00> : vector<16x16xf32>
    %319 = tpu.matmul %317, %318, %cst_104 {dimension_numbers = #tpu.dot_dimension_numbers<[1], [1], [0], [0], [0, 0, 1, 0], [], []>} : vector<16x32xbf16>, vector<16x32xbf16>, vector<16x16xf32> -> vector<16x16xf32>
    %cst_105 = arith.constant dense<0xFF800000> : vector<16xf32>
    %320 = vector.multi_reduction <maximumf>, %319, %cst_105 [1] : vector<16x16xf32> to vector<16xf32>
    %321 = vector.shape_cast %320 : vector<16xf32> to vector<16x1xf32>
    %322 = vector.broadcast %321 : vector<16x1xf32> to vector<16x16xf32>
    %323 = arith.subf %319, %322 : vector<16x16xf32>
    %324 = math.exp %323 : vector<16x16xf32>
    %cst_106 = arith.constant dense<0.000000e+00> : vector<16xf32>
    %325 = vector.multi_reduction <add>, %324, %cst_106 [1] : vector<16x16xf32> to vector<16xf32>
    %326 = vector.shape_cast %325 : vector<16xf32> to vector<16x1xf32>
    %327 = tpu.reciprocal %326 {approx = true} : vector<16x1xf32> -> vector<16x1xf32>
    %328 = vector.broadcast %327 : vector<16x1xf32> to vector<16x16xf32>
    %329 = arith.mulf %324, %328 : vector<16x16xf32>
    %330 = arith.truncf %329 : vector<16x16xf32> to vector<16x16xbf16>
    %331 = vector.extract_strided_slice %277 {offsets = [0, 64], sizes = [16, 32], strides = [1, 1]} : vector<16x128xbf16> to vector<16x32xbf16>
    %cst_107 = arith.constant dense<0.000000e+00> : vector<16x32xf32>
    %332 = tpu.matmul %330, %331, %cst_107 {dimension_numbers = #tpu.dot_dimension_numbers<[1], [0], [0], [1], [0, 0, 1, 1], [], []>} : vector<16x16xbf16>, vector<16x32xbf16>, vector<16x32xf32> -> vector<16x32xf32>
    %333 = arith.truncf %332 : vector<16x32xf32> to vector<16x32xbf16>
    %334 = vector.extract_strided_slice %274 {offsets = [64, 0], sizes = [32, 128], strides = [1, 1]} : vector<128x128xbf16> to vector<32x128xbf16>
    %cst_108 = arith.constant dense<0.000000e+00> : vector<16x128xf32>
    %335 = tpu.matmul %333, %334, %cst_108 {dimension_numbers = #tpu.dot_dimension_numbers<[1], [0], [0], [1], [0, 0, 1, 1], [], []>} : vector<16x32xbf16>, vector<32x128xbf16>, vector<16x128xf32> -> vector<16x128xf32>
    %336 = arith.addf %316, %335 : vector<16x128xf32>
    %337 = vector.extract_strided_slice %275 {offsets = [0, 96], sizes = [16, 32], strides = [1, 1]} : vector<16x128xbf16> to vector<16x32xbf16>
    %338 = vector.extract_strided_slice %276 {offsets = [0, 96], sizes = [16, 32], strides = [1, 1]} : vector<16x128xbf16> to vector<16x32xbf16>
    %cst_109 = arith.constant dense<0.000000e+00> : vector<16x16xf32>
    %339 = tpu.matmul %337, %338, %cst_109 {dimension_numbers = #tpu.dot_dimension_numbers<[1], [1], [0], [0], [0, 0, 1, 0], [], []>} : vector<16x32xbf16>, vector<16x32xbf16>, vector<16x16xf32> -> vector<16x16xf32>
    %cst_110 = arith.constant dense<0xFF800000> : vector<16xf32>
    %340 = vector.multi_reduction <maximumf>, %339, %cst_110 [1] : vector<16x16xf32> to vector<16xf32>
    %341 = vector.shape_cast %340 : vector<16xf32> to vector<16x1xf32>
    %342 = vector.broadcast %341 : vector<16x1xf32> to vector<16x16xf32>
    %343 = arith.subf %339, %342 : vector<16x16xf32>
    %344 = math.exp %343 : vector<16x16xf32>
    %cst_111 = arith.constant dense<0.000000e+00> : vector<16xf32>
    %345 = vector.multi_reduction <add>, %344, %cst_111 [1] : vector<16x16xf32> to vector<16xf32>
    %346 = vector.shape_cast %345 : vector<16xf32> to vector<16x1xf32>
    %347 = tpu.reciprocal %346 {approx = true} : vector<16x1xf32> -> vector<16x1xf32>
    %348 = vector.broadcast %347 : vector<16x1xf32> to vector<16x16xf32>
    %349 = arith.mulf %344, %348 : vector<16x16xf32>
    %350 = arith.truncf %349 : vector<16x16xf32> to vector<16x16xbf16>
    %351 = vector.extract_strided_slice %277 {offsets = [0, 96], sizes = [16, 32], strides = [1, 1]} : vector<16x128xbf16> to vector<16x32xbf16>
    %cst_112 = arith.constant dense<0.000000e+00> : vector<16x32xf32>
    %352 = tpu.matmul %350, %351, %cst_112 {dimension_numbers = #tpu.dot_dimension_numbers<[1], [0], [0], [1], [0, 0, 1, 1], [], []>} : vector<16x16xbf16>, vector<16x32xbf16>, vector<16x32xf32> -> vector<16x32xf32>
    %353 = arith.truncf %352 : vector<16x32xf32> to vector<16x32xbf16>
    %354 = vector.extract_strided_slice %274 {offsets = [96, 0], sizes = [32, 128], strides = [1, 1]} : vector<128x128xbf16> to vector<32x128xbf16>
    %cst_113 = arith.constant dense<0.000000e+00> : vector<16x128xf32>
    %355 = tpu.matmul %353, %354, %cst_113 {dimension_numbers = #tpu.dot_dimension_numbers<[1], [0], [0], [1], [0, 0, 1, 1], [], []>} : vector<16x32xbf16>, vector<32x128xbf16>, vector<16x128xf32> -> vector<16x128xf32>
    %356 = arith.addf %336, %355 : vector<16x128xf32>
    %c0_114 = arith.constant 0 : index
    %c0_115 = arith.constant 0 : index
    %357 = vector.load %arg23[%c0_114, %c0_115] : memref<32x128xf32, #tpu.memory_space<vmem>>, vector<16x128xf32>
    tpu.vector_store %arg23[%c0_114, %c0_115], %356 {strides = array<i32>} : memref<32x128xf32, #tpu.memory_space<vmem>>, vector<16x128xf32>,
    %358 = vector.extract_strided_slice %269 {offsets = [16, 0], sizes = [16, 128], strides = [1, 1]} : vector<32x128xbf16> to vector<16x128xbf16>
    %359 = vector.extract_strided_slice %271 {offsets = [16, 0], sizes = [16, 128], strides = [1, 1]} : vector<32x128xbf16> to vector<16x128xbf16>
    %360 = vector.extract_strided_slice %273 {offsets = [16, 0], sizes = [16, 128], strides = [1, 1]} : vector<32x128xbf16> to vector<16x128xbf16>
    %361 = vector.extract_strided_slice %358 {offsets = [0, 0], sizes = [16, 32], strides = [1, 1]} : vector<16x128xbf16> to vector<16x32xbf16>
    %362 = vector.extract_strided_slice %359 {offsets = [0, 0], sizes = [16, 32], strides = [1, 1]} : vector<16x128xbf16> to vector<16x32xbf16>
    %cst_116 = arith.constant dense<0.000000e+00> : vector<16x16xf32>
    %363 = tpu.matmul %361, %362, %cst_116 {dimension_numbers = #tpu.dot_dimension_numbers<[1], [1], [0], [0], [0, 0, 1, 0], [], []>} : vector<16x32xbf16>, vector<16x32xbf16>, vector<16x16xf32> -> vector<16x16xf32>
    %cst_117 = arith.constant dense<0xFF800000> : vector<16xf32>
    %364 = vector.multi_reduction <maximumf>, %363, %cst_117 [1] : vector<16x16xf32> to vector<16xf32>
    %365 = vector.shape_cast %364 : vector<16xf32> to vector<16x1xf32>
    %366 = vector.broadcast %365 : vector<16x1xf32> to vector<16x16xf32>
    %367 = arith.subf %363, %366 : vector<16x16xf32>
    %368 = math.exp %367 : vector<16x16xf32>
    %cst_118 = arith.constant dense<0.000000e+00> : vector<16xf32>
    %369 = vector.multi_reduction <add>, %368, %cst_118 [1] : vector<16x16xf32> to vector<16xf32>
    %370 = vector.shape_cast %369 : vector<16xf32> to vector<16x1xf32>
    %371 = tpu.reciprocal %370 {approx = true} : vector<16x1xf32> -> vector<16x1xf32>
    %372 = vector.broadcast %371 : vector<16x1xf32> to vector<16x16xf32>
    %373 = arith.mulf %368, %372 : vector<16x16xf32>
    %374 = arith.truncf %373 : vector<16x16xf32> to vector<16x16xbf16>
    %375 = vector.extract_strided_slice %360 {offsets = [0, 0], sizes = [16, 32], strides = [1, 1]} : vector<16x128xbf16> to vector<16x32xbf16>
    %cst_119 = arith.constant dense<0.000000e+00> : vector<16x32xf32>
    %376 = tpu.matmul %374, %375, %cst_119 {dimension_numbers = #tpu.dot_dimension_numbers<[1], [0], [0], [1], [0, 0, 1, 1], [], []>} : vector<16x16xbf16>, vector<16x32xbf16>, vector<16x32xf32> -> vector<16x32xf32>
    %377 = arith.truncf %376 : vector<16x32xf32> to vector<16x32xbf16>
    %378 = vector.extract_strided_slice %274 {offsets = [0, 0], sizes = [32, 128], strides = [1, 1]} : vector<128x128xbf16> to vector<32x128xbf16>
    %cst_120 = arith.constant dense<0.000000e+00> : vector<16x128xf32>
    %379 = tpu.matmul %377, %378, %cst_120 {dimension_numbers = #tpu.dot_dimension_numbers<[1], [0], [0], [1], [0, 0, 1, 1], [], []>} : vector<16x32xbf16>, vector<32x128xbf16>, vector<16x128xf32> -> vector<16x128xf32>
    %380 = vector.extract_strided_slice %358 {offsets = [0, 32], sizes = [16, 32], strides = [1, 1]} : vector<16x128xbf16> to vector<16x32xbf16>
    %381 = vector.extract_strided_slice %359 {offsets = [0, 32], sizes = [16, 32], strides = [1, 1]} : vector<16x128xbf16> to vector<16x32xbf16>
    %cst_121 = arith.constant dense<0.000000e+00> : vector<16x16xf32>
    %382 = tpu.matmul %380, %381, %cst_121 {dimension_numbers = #tpu.dot_dimension_numbers<[1], [1], [0], [0], [0, 0, 1, 0], [], []>} : vector<16x32xbf16>, vector<16x32xbf16>, vector<16x16xf32> -> vector<16x16xf32>
    %cst_122 = arith.constant dense<0xFF800000> : vector<16xf32>
    %383 = vector.multi_reduction <maximumf>, %382, %cst_122 [1] : vector<16x16xf32> to vector<16xf32>
    %384 = vector.shape_cast %383 : vector<16xf32> to vector<16x1xf32>
    %385 = vector.broadcast %384 : vector<16x1xf32> to vector<16x16xf32>
    %386 = arith.subf %382, %385 : vector<16x16xf32>
    %387 = math.exp %386 : vector<16x16xf32>
    %cst_123 = arith.constant dense<0.000000e+00> : vector<16xf32>
    %388 = vector.multi_reduction <add>, %387, %cst_123 [1] : vector<16x16xf32> to vector<16xf32>
    %389 = vector.shape_cast %388 : vector<16xf32> to vector<16x1xf32>
    %390 = tpu.reciprocal %389 {approx = true} : vector<16x1xf32> -> vector<16x1xf32>
    %391 = vector.broadcast %390 : vector<16x1xf32> to vector<16x16xf32>
    %392 = arith.mulf %387, %391 : vector<16x16xf32>
    %393 = arith.truncf %392 : vector<16x16xf32> to vector<16x16xbf16>
    %394 = vector.extract_strided_slice %360 {offsets = [0, 32], sizes = [16, 32], strides = [1, 1]} : vector<16x128xbf16> to vector<16x32xbf16>
    %cst_124 = arith.constant dense<0.000000e+00> : vector<16x32xf32>
    %395 = tpu.matmul %393, %394, %cst_124 {dimension_numbers = #tpu.dot_dimension_numbers<[1], [0], [0], [1], [0, 0, 1, 1], [], []>} : vector<16x16xbf16>, vector<16x32xbf16>, vector<16x32xf32> -> vector<16x32xf32>
    %396 = arith.truncf %395 : vector<16x32xf32> to vector<16x32xbf16>
    %397 = vector.extract_strided_slice %274 {offsets = [32, 0], sizes = [32, 128], strides = [1, 1]} : vector<128x128xbf16> to vector<32x128xbf16>
    %cst_125 = arith.constant dense<0.000000e+00> : vector<16x128xf32>
    %398 = tpu.matmul %396, %397, %cst_125 {dimension_numbers = #tpu.dot_dimension_numbers<[1], [0], [0], [1], [0, 0, 1, 1], [], []>} : vector<16x32xbf16>, vector<32x128xbf16>, vector<16x128xf32> -> vector<16x128xf32>
    %399 = arith.addf %379, %398 : vector<16x128xf32>
    %400 = vector.extract_strided_slice %358 {offsets = [0, 64], sizes = [16, 32], strides = [1, 1]} : vector<16x128xbf16> to vector<16x32xbf16>
    %401 = vector.extract_strided_slice %359 {offsets = [0, 64], sizes = [16, 32], strides = [1, 1]} : vector<16x128xbf16> to vector<16x32xbf16>
    %cst_126 = arith.constant dense<0.000000e+00> : vector<16x16xf32>
    %402 = tpu.matmul %400, %401, %cst_126 {dimension_numbers = #tpu.dot_dimension_numbers<[1], [1], [0], [0], [0, 0, 1, 0], [], []>} : vector<16x32xbf16>, vector<16x32xbf16>, vector<16x16xf32> -> vector<16x16xf32>
    %cst_127 = arith.constant dense<0xFF800000> : vector<16xf32>
    %403 = vector.multi_reduction <maximumf>, %402, %cst_127 [1] : vector<16x16xf32> to vector<16xf32>
    %404 = vector.shape_cast %403 : vector<16xf32> to vector<16x1xf32>
    %405 = vector.broadcast %404 : vector<16x1xf32> to vector<16x16xf32>
    %406 = arith.subf %402, %405 : vector<16x16xf32>
    %407 = math.exp %406 : vector<16x16xf32>
    %cst_128 = arith.constant dense<0.000000e+00> : vector<16xf32>
    %408 = vector.multi_reduction <add>, %407, %cst_128 [1] : vector<16x16xf32> to vector<16xf32>
    %409 = vector.shape_cast %408 : vector<16xf32> to vector<16x1xf32>
    %410 = tpu.reciprocal %409 {approx = true} : vector<16x1xf32> -> vector<16x1xf32>
    %411 = vector.broadcast %410 : vector<16x1xf32> to vector<16x16xf32>
    %412 = arith.mulf %407, %411 : vector<16x16xf32>
    %413 = arith.truncf %412 : vector<16x16xf32> to vector<16x16xbf16>
    %414 = vector.extract_strided_slice %360 {offsets = [0, 64], sizes = [16, 32], strides = [1, 1]} : vector<16x128xbf16> to vector<16x32xbf16>
    %cst_129 = arith.constant dense<0.000000e+00> : vector<16x32xf32>
    %415 = tpu.matmul %413, %414, %cst_129 {dimension_numbers = #tpu.dot_dimension_numbers<[1], [0], [0], [1], [0, 0, 1, 1], [], []>} : vector<16x16xbf16>, vector<16x32xbf16>, vector<16x32xf32> -> vector<16x32xf32>
    %416 = arith.truncf %415 : vector<16x32xf32> to vector<16x32xbf16>
    %417 = vector.extract_strided_slice %274 {offsets = [64, 0], sizes = [32, 128], strides = [1, 1]} : vector<128x128xbf16> to vector<32x128xbf16>
    %cst_130 = arith.constant dense<0.000000e+00> : vector<16x128xf32>
    %418 = tpu.matmul %416, %417, %cst_130 {dimension_numbers = #tpu.dot_dimension_numbers<[1], [0], [0], [1], [0, 0, 1, 1], [], []>} : vector<16x32xbf16>, vector<32x128xbf16>, vector<16x128xf32> -> vector<16x128xf32>
    %419 = arith.addf %399, %418 : vector<16x128xf32>
    %420 = vector.extract_strided_slice %358 {offsets = [0, 96], sizes = [16, 32], strides = [1, 1]} : vector<16x128xbf16> to vector<16x32xbf16>
    %421 = vector.extract_strided_slice %359 {offsets = [0, 96], sizes = [16, 32], strides = [1, 1]} : vector<16x128xbf16> to vector<16x32xbf16>
    %cst_131 = arith.constant dense<0.000000e+00> : vector<16x16xf32>
    %422 = tpu.matmul %420, %421, %cst_131 {dimension_numbers = #tpu.dot_dimension_numbers<[1], [1], [0], [0], [0, 0, 1, 0], [], []>} : vector<16x32xbf16>, vector<16x32xbf16>, vector<16x16xf32> -> vector<16x16xf32>
    %cst_132 = arith.constant dense<0xFF800000> : vector<16xf32>
    %423 = vector.multi_reduction <maximumf>, %422, %cst_132 [1] : vector<16x16xf32> to vector<16xf32>
    %424 = vector.shape_cast %423 : vector<16xf32> to vector<16x1xf32>
    %425 = vector.broadcast %424 : vector<16x1xf32> to vector<16x16xf32>
    %426 = arith.subf %422, %425 : vector<16x16xf32>
    %427 = math.exp %426 : vector<16x16xf32>
    %cst_133 = arith.constant dense<0.000000e+00> : vector<16xf32>
    %428 = vector.multi_reduction <add>, %427, %cst_133 [1] : vector<16x16xf32> to vector<16xf32>
    %429 = vector.shape_cast %428 : vector<16xf32> to vector<16x1xf32>
    %430 = tpu.reciprocal %429 {approx = true} : vector<16x1xf32> -> vector<16x1xf32>
    %431 = vector.broadcast %430 : vector<16x1xf32> to vector<16x16xf32>
    %432 = arith.mulf %427, %431 : vector<16x16xf32>
    %433 = arith.truncf %432 : vector<16x16xf32> to vector<16x16xbf16>
    %434 = vector.extract_strided_slice %360 {offsets = [0, 96], sizes = [16, 32], strides = [1, 1]} : vector<16x128xbf16> to vector<16x32xbf16>
    %cst_134 = arith.constant dense<0.000000e+00> : vector<16x32xf32>
    %435 = tpu.matmul %433, %434, %cst_134 {dimension_numbers = #tpu.dot_dimension_numbers<[1], [0], [0], [1], [0, 0, 1, 1], [], []>} : vector<16x16xbf16>, vector<16x32xbf16>, vector<16x32xf32> -> vector<16x32xf32>
    %436 = arith.truncf %435 : vector<16x32xf32> to vector<16x32xbf16>
    %437 = vector.extract_strided_slice %274 {offsets = [96, 0], sizes = [32, 128], strides = [1, 1]} : vector<128x128xbf16> to vector<32x128xbf16>
    %cst_135 = arith.constant dense<0.000000e+00> : vector<16x128xf32>
    %438 = tpu.matmul %436, %437, %cst_135 {dimension_numbers = #tpu.dot_dimension_numbers<[1], [0], [0], [1], [0, 0, 1, 1], [], []>} : vector<16x32xbf16>, vector<32x128xbf16>, vector<16x128xf32> -> vector<16x128xf32>
    %439 = arith.addf %419, %438 : vector<16x128xf32>
    %c16_136 = arith.constant 16 : index
    %c0_137 = arith.constant 0 : index
    %440 = vector.load %arg23[%c16_136, %c0_137] : memref<32x128xf32, #tpu.memory_space<vmem>>, vector<16x128xf32>
    tpu.vector_store %arg23[%c16_136, %c0_137], %439 {strides = array<i32>} : memref<32x128xf32, #tpu.memory_space<vmem>>, vector<16x128xf32>,
    %c0_138 = arith.constant 0 : index
    %c0_139 = arith.constant 0 : index
    %441 = vector.load %arg23[%c0_138, %c0_139] : memref<32x128xf32, #tpu.memory_space<vmem>>, vector<32x128xf32>
    %442 = arith.addf %210, %441 : vector<32x128xf32>
    %c0_140 = arith.constant 0 : index
    %c0_141 = arith.constant 0 : index
    %443 = vector.load %arg15[%c0_140, %c0_141] : memref<1x128xf32, #tpu.memory_space<vmem>>, vector<1x128xf32>
    %444 = vector.broadcast %443 : vector<1x128xf32> to vector<32x128xf32>
    %445 = arith.addf %442, %444 : vector<32x128xf32>
    %cst_142 = arith.constant dense<0.000000e+00> : vector<32xf32>
    %446 = vector.multi_reduction <add>, %445, %cst_142 [1] : vector<32x128xf32> to vector<32xf32>
    %447 = vector.shape_cast %446 : vector<32xf32> to vector<32x1xf32>
    %cst_143 = arith.constant 1.280000e+02 : f32
    %448 = vector.broadcast %cst_143 : f32 to vector<32x1xf32>
    %449 = arith.divf %447, %448 : vector<32x1xf32>
    %450 = arith.mulf %445, %445 : vector<32x128xf32>
    %cst_144 = arith.constant dense<0.000000e+00> : vector<32xf32>
    %451 = vector.multi_reduction <add>, %450, %cst_144 [1] : vector<32x128xf32> to vector<32xf32>
    %452 = vector.shape_cast %451 : vector<32xf32> to vector<32x1xf32>
    %cst_145 = arith.constant 1.280000e+02 : f32
    %453 = vector.broadcast %cst_145 : f32 to vector<32x1xf32>
    %454 = arith.divf %452, %453 : vector<32x1xf32>
    %455 = arith.mulf %449, %449 : vector<32x1xf32>
    %456 = arith.subf %454, %455 : vector<32x1xf32>
    %cst_146 = arith.constant 0.000000e+00 : f32
    %457 = vector.broadcast %cst_146 : f32 to vector<32x1xf32>
    %458 = arith.maximumf %456, %457 : vector<32x1xf32>
    %459 = vector.broadcast %449 : vector<32x1xf32> to vector<32x128xf32>
    %460 = arith.subf %445, %459 : vector<32x128xf32>
    %cst_147 = arith.constant 9.99999974E-6 : f32
    %461 = vector.broadcast %cst_147 : f32 to vector<32x1xf32>
    %462 = arith.addf %458, %461 : vector<32x1xf32>
    %463 = math.rsqrt %462 : vector<32x1xf32>
    %464 = vector.broadcast %463 : vector<32x1xf32> to vector<32x128xf32>
    %465 = arith.mulf %460, %464 : vector<32x128xf32>
    %c0_148 = arith.constant 0 : index
    %c0_149 = arith.constant 0 : index
    %466 = vector.load %arg16[%c0_148, %c0_149] : memref<1x128xf32, #tpu.memory_space<vmem>>, vector<1x128xf32>
    %467 = vector.broadcast %466 : vector<1x128xf32> to vector<32x128xf32>
    %468 = arith.mulf %465, %467 : vector<32x128xf32>
    %c0_150 = arith.constant 0 : index
    %c0_151 = arith.constant 0 : index
    %469 = vector.load %arg17[%c0_150, %c0_151] : memref<1x128xf32, #tpu.memory_space<vmem>>, vector<1x128xf32>
    %470 = vector.broadcast %469 : vector<1x128xf32> to vector<32x128xf32>
    %471 = arith.addf %468, %470 : vector<32x128xf32>
    %472 = arith.truncf %471 : vector<32x128xf32> to vector<32x128xbf16>
    %c0_152 = arith.constant 0 : index
    %c0_153 = arith.constant 0 : index
    %473 = vector.load %arg18[%c0_152, %c0_153] : memref<128x512xbf16, #tpu.memory_space<vmem>>, vector<128x512xbf16>
    %cst_154 = arith.constant dense<0.000000e+00> : vector<32x512xf32>
    %474 = tpu.matmul %472, %473, %cst_154 {dimension_numbers = #tpu.dot_dimension_numbers<[1], [0], [0], [1], [0, 0, 1, 1], [], []>} : vector<32x128xbf16>, vector<128x512xbf16>, vector<32x512xf32> -> vector<32x512xf32>
    %c0_155 = arith.constant 0 : index
    %c0_156 = arith.constant 0 : index
    %475 = vector.load %arg19[%c0_155, %c0_156] : memref<1x512xf32, #tpu.memory_space<vmem>>, vector<1x512xf32>
    %476 = vector.broadcast %475 : vector<1x512xf32> to vector<32x512xf32>
    %477 = arith.addf %474, %476 : vector<32x512xf32>
    %478 = arith.mulf %477, %477 : vector<32x512xf32>
    %479 = arith.mulf %477, %478 : vector<32x512xf32>
    %cst_157 = arith.constant 4.471500e-02 : f32
    %480 = vector.broadcast %cst_157 : f32 to vector<32x512xf32>
    %481 = arith.mulf %480, %479 : vector<32x512xf32>
    %482 = arith.addf %477, %481 : vector<32x512xf32>
    %cst_158 = arith.constant 0.797884583 : f32
    %483 = vector.broadcast %cst_158 : f32 to vector<32x512xf32>
    %484 = arith.mulf %483, %482 : vector<32x512xf32>
    %485 = math.tanh %484 : vector<32x512xf32>
    %cst_159 = arith.constant 1.000000e+00 : f32
    %486 = vector.broadcast %cst_159 : f32 to vector<32x512xf32>
    %487 = arith.addf %486, %485 : vector<32x512xf32>
    %cst_160 = arith.constant 5.000000e-01 : f32
    %488 = vector.broadcast %cst_160 : f32 to vector<32x512xf32>
    %489 = arith.mulf %488, %487 : vector<32x512xf32>
    %490 = arith.mulf %477, %489 : vector<32x512xf32>
    %491 = arith.truncf %490 : vector<32x512xf32> to vector<32x512xbf16>
    %c0_161 = arith.constant 0 : index
    %c0_162 = arith.constant 0 : index
    %492 = vector.load %arg20[%c0_161, %c0_162] : memref<512x128xbf16, #tpu.memory_space<vmem>>, vector<512x128xbf16>
    %cst_163 = arith.constant dense<0.000000e+00> : vector<32x128xf32>
    %493 = tpu.matmul %491, %492, %cst_163 {dimension_numbers = #tpu.dot_dimension_numbers<[1], [0], [0], [1], [0, 0, 1, 1], [], []>} : vector<32x512xbf16>, vector<512x128xbf16>, vector<32x128xf32> -> vector<32x128xf32>
    %c0_164 = arith.constant 0 : index
    %c0_165 = arith.constant 0 : index
    %494 = vector.load %arg21[%c0_164, %c0_165] : memref<1x128xf32, #tpu.memory_space<vmem>>, vector<1x128xf32>
    %495 = vector.broadcast %494 : vector<1x128xf32> to vector<32x128xf32>
    %496 = arith.addf %493, %495 : vector<32x128xf32>
    %497 = arith.addf %445, %496 : vector<32x128xf32>
    %498 = vector.shape_cast %497 : vector<32x128xf32> to vector<2x16x128xf32>
    %c0_166 = arith.constant 0 : index
    %c0_167 = arith.constant 0 : index
    %c0_168 = arith.constant 0 : index
    %499 = vector.load %arg22[%c0_166, %c0_167, %c0_168] : memref<2x16x128xf32, #tpu.memory_space<vmem>>, vector<2x16x128xf32>
    tpu.vector_store %arg22[%c0_166, %c0_167, %c0_168], %498 {strides = array<i32>} : memref<2x16x128xf32, #tpu.memory_space<vmem>>, vector<2x16x128xf32>,
    return
  }
  func.func @transform_0(%arg0: i32) -> (i32, i32, i32) {
    %c0_i32 = arith.constant 0 : i32
    %c0_i32_0 = arith.constant 0 : i32
    %c0_i32_1 = arith.constant 0 : i32
    return %arg0, %c0_i32, %c0_i32_0 : i32, i32, i32
  }
  func.func @transform_1(%arg0: i32) -> (i32, i32, i32) {
    %c0_i32 = arith.constant 0 : i32
    %c0_i32_0 = arith.constant 0 : i32
    %c0_i32_1 = arith.constant 0 : i32
    return %arg0, %c0_i32, %c0_i32_0 : i32, i32, i32
  }
  func.func @transform_2(%arg0: i32) -> (i32, i32) {
    %c0_i32 = arith.constant 0 : i32
    %c0_i32_0 = arith.constant 0 : i32
    %c0_i32_1 = arith.constant 0 : i32
    return %c0_i32, %c0_i32_0 : i32, i32
  }
  func.func @transform_3(%arg0: i32) -> (i32, i32) {
    %c0_i32 = arith.constant 0 : i32
    %c0_i32_0 = arith.constant 0 : i32
    %c0_i32_1 = arith.constant 0 : i32
    return %c0_i32, %c0_i32_0 : i32, i32
  }
  func.func @transform_4(%arg0: i32) -> (i32, i32) {
    %c0_i32 = arith.constant 0 : i32
    %c0_i32_0 = arith.constant 0 : i32
    %c0_i32_1 = arith.constant 0 : i32
    return %c0_i32, %c0_i32_0 : i32, i32
  }
  func.func @transform_5(%arg0: i32) -> (i32, i32) {
    %c0_i32 = arith.constant 0 : i32
    %c0_i32_0 = arith.constant 0 : i32
    %c0_i32_1 = arith.constant 0 : i32
    return %c0_i32, %c0_i32_0 : i32, i32
  }
  func.func @transform_6(%arg0: i32) -> (i32, i32) {
    %c0_i32 = arith.constant 0 : i32
    %c0_i32_0 = arith.constant 0 : i32
    %c0_i32_1 = arith.constant 0 : i32
    return %c0_i32, %c0_i32_0 : i32, i32
  }
  func.func @transform_7(%arg0: i32) -> (i32, i32) {
    %c0_i32 = arith.constant 0 : i32
    %c0_i32_0 = arith.constant 0 : i32
    %c0_i32_1 = arith.constant 0 : i32
    return %c0_i32, %c0_i32_0 : i32, i32
  }
  func.func @transform_8(%arg0: i32) -> (i32, i32) {
    %c0_i32 = arith.constant 0 : i32
    %c0_i32_0 = arith.constant 0 : i32
    %c0_i32_1 = arith.constant 0 : i32
    return %c0_i32, %c0_i32_0 : i32, i32
  }
  func.func @transform_9(%arg0: i32) -> (i32, i32) {
    %c0_i32 = arith.constant 0 : i32
    %c0_i32_0 = arith.constant 0 : i32
    %c0_i32_1 = arith.constant 0 : i32
    return %c0_i32, %c0_i32_0 : i32, i32
  }
  func.func @transform_10(%arg0: i32) -> (i32, i32) {
    %c0_i32 = arith.constant 0 : i32
    %c0_i32_0 = arith.constant 0 : i32
    %c0_i32_1 = arith.constant 0 : i32
    return %c0_i32, %c0_i32_0 : i32, i32
  }
  func.func @transform_11(%arg0: i32) -> (i32, i32) {
    %c0_i32 = arith.constant 0 : i32
    %c0_i32_0 = arith.constant 0 : i32
    %c0_i32_1 = arith.constant 0 : i32
    return %c0_i32, %c0_i32_0 : i32, i32
  }
  func.func @transform_12(%arg0: i32) -> (i32, i32) {
    %c0_i32 = arith.constant 0 : i32
    %c0_i32_0 = arith.constant 0 : i32
    %c0_i32_1 = arith.constant 0 : i32
    return %c0_i32, %c0_i32_0 : i32, i32
  }
  func.func @transform_13(%arg0: i32) -> (i32, i32) {
    %c0_i32 = arith.constant 0 : i32
    %c0_i32_0 = arith.constant 0 : i32
    %c0_i32_1 = arith.constant 0 : i32
    return %c0_i32, %c0_i32_0 : i32, i32
  }
  func.func @transform_14(%arg0: i32) -> (i32, i32) {
    %c0_i32 = arith.constant 0 : i32
    %c0_i32_0 = arith.constant 0 : i32
    %c0_i32_1 = arith.constant 0 : i32
    return %c0_i32, %c0_i32_0 : i32, i32
  }
  func.func @transform_15(%arg0: i32) -> (i32, i32) {
    %c0_i32 = arith.constant 0 : i32
    %c0_i32_0 = arith.constant 0 : i32
    %c0_i32_1 = arith.constant 0 : i32
    return %c0_i32, %c0_i32_0 : i32, i32
  }
  func.func @transform_16(%arg0: i32) -> (i32, i32) {
    %c0_i32 = arith.constant 0 : i32
    %c0_i32_0 = arith.constant 0 : i32
    %c0_i32_1 = arith.constant 0 : i32
    return %c0_i32, %c0_i32_0 : i32, i32
  }
  func.func @transform_17(%arg0: i32) -> (i32, i32) {
    %c0_i32 = arith.constant 0 : i32
    %c0_i32_0 = arith.constant 0 : i32
    %c0_i32_1 = arith.constant 0 : i32
    return %c0_i32, %c0_i32_0 : i32, i32
  }
  func.func @transform_18(%arg0: i32) -> (i32, i32) {
    %c0_i32 = arith.constant 0 : i32
    %c0_i32_0 = arith.constant 0 : i32
    %c0_i32_1 = arith.constant 0 : i32
    return %c0_i32, %c0_i32_0 : i32, i32
  }
  func.func @transform_19(%arg0: i32) -> (i32, i32) {
    %c0_i32 = arith.constant 0 : i32
    %c0_i32_0 = arith.constant 0 : i32
    %c0_i32_1 = arith.constant 0 : i32
    return %c0_i32, %c0_i32_0 : i32, i32
  }
  func.func @transform_20(%arg0: i32) -> (i32, i32) {
    %c0_i32 = arith.constant 0 : i32
    %c0_i32_0 = arith.constant 0 : i32
    %c0_i32_1 = arith.constant 0 : i32
    return %c0_i32, %c0_i32_0 : i32, i32
  }
  func.func @transform_21(%arg0: i32) -> (i32, i32, i32) {
    %c0_i32 = arith.constant 0 : i32
    %c0_i32_0 = arith.constant 0 : i32
    %c0_i32_1 = arith.constant 0 : i32
    return %arg0, %c0_i32, %c0_i32_0 : i32, i32, i32
  }
}

</mosaic_0001>

<bundles_post_ra>
// kernel: tpu_custom_call.1
= control target key start
LH: loop header
LB: loop body
LE: loop exit
PB: predicated region body
PF: predicated region fallthrough
CT: control target
= control target key end

     0   :  { %s7272_s0 = inlined_call_operand.hbm [shape: f32[2,16,128], index: 0, kind: input, shape index: {}]   ;;  %s7273_s1 = inlined_call_operand.hbm [shape: f32[2,16,128], index: 1, kind: input, shape index: {}]   ;;  %s7274_s2 = inlined_call_operand.vmem [shape: f32[1,128], index: 2, kind: input, shape index: {}]   ;;  %s7275_s3 = inlined_call_operand.vmem [shape: f32[1,128], index: 3, kind: input, shape index: {}]   ;;  %s7276_s4 = inlined_call_operand.hbm [shape: bf16[128,384], index: 4, kind: input, shape index: {}]   ;;  %s7277_s5 = inlined_call_operand.hbm [shape: bf16[128,128], index: 5, kind: input, shape index: {}]   ;;  %s7278_s6 = inlined_call_operand.vmem [shape: f32[1,128], index: 6, kind: input, shape index: {}]   ;;  %s7279_s7 = inlined_call_operand.vmem [shape: f32[1,128], index: 7, kind: input, shape index: {}]   ;;  %s7280_s8 = inlined_call_operand.vmem [shape: f32[1,128], index: 8, kind: input, shape index: {}]   ;;  %s7281_s9 = inlined_call_operand.vmem [shape: f32[1,128], index: 9, kind: input, shape index: {}]   ;;  %s7282_s10 = inlined_call_operand.vmem [shape: f32[1,128], index: 10, kind: input, shape index: {}]   ;;  %s7283_s11 = inlined_call_operand.hbm [shape: bf16[128,128], index: 11, kind: input, shape index: {}]   ;;  %s7284_s12 = inlined_call_operand.hbm [shape: bf16[128,256], index: 12, kind: input, shape index: {}]   ;;  %s7285_s13 = inlined_call_operand.hbm [shape: bf16[128,128], index: 13, kind: input, shape index: {}]   ;;  %s7286_s14 = inlined_call_operand.vmem [shape: f32[1,128], index: 14, kind: input, shape index: {}]   ;;  %s7287_s15 = inlined_call_operand.vmem [shape: f32[1,128], index: 15, kind: input, shape index: {}]   ;;  %s7288_s16 = inlined_call_operand.vmem [shape: f32[1,128], index: 16, kind: input, shape index: {}]   ;;  %s7289_s17 = inlined_call_operand.hbm [shape: bf16[128,512], index: 17, kind: input, shape index: {}]   ;;  %s7290_s18 = inlined_call_operand.vmem [shape: f32[1,512], index: 18, kind: input, shape index: {}]   ;;  %s7291_s19 = inlined_call_operand.hbm [shape: bf16[512,128], index: 19, kind: input, shape index: {}]   ;;  %s7292_s20 = inlined_call_operand.vmem [shape: f32[1,128], index: 20, kind: input, shape index: {}]   ;;  %s7293_s21 = inlined_call_operand.hbm [shape: f32[2,16,128], index: 21, kind: output, shape index: {}]  }
   0x1   :  { %7307 = sst [smem:[#allocation25_spill]] %s7272_s0 }
   0x2   :  { %7308 = sst [smem:[#allocation26_spill]] %s7273_s1 }
   0x3   :  { %7309 = sst [smem:[#allocation27_spill]] %s7274_s2 }
   0x4   :  { %7310 = sst [smem:[#allocation28_spill]] %s7275_s3 }
   0x5   :  { %7311 = sst [smem:[#allocation29_spill]] %s7276_s4 }
   0x6   :  { %7312 = sst [smem:[#allocation30_spill]] %s7277_s5 }
   0x7   :  { %7313 = sst [smem:[#allocation31_spill]] %s7290_s18 }
   0x8   :  { %7314 = sst [smem:[#allocation32_spill]] %s7292_s20 }
   0x9   :  { %7315 = sst [smem:[#allocation33_spill]] %s7293_s21 }
   0xa   :  { %26 = vsyncpa [#allocation4], 0 }
   0xb   :  { %27 = vsyncpa [#allocation7], 0 }
   0xc   :  { %28 = vsyncpa [#allocation10], 0 }
   0xd   :  { %29 = vsyncpa [#allocation13], 0 }
   0xe   :  { %30 = vsyncpa [#allocation16], 0 }
   0xf   :  { %31 = vsyncpa [#allocation5], 0  ;;  %s6097_s2 = smov [#allocation6]   ;;  %s6098_s26 = smov [#allocation9]  }
  0x10   :  { %s49_s25 = sshll.u32 %s6097_s2, 4  ;;  %s77_s27 = sshll.u32 %s6098_s26, 4  ;;  %s50_s25 = int_to_ptr.vmem [resolvable:$true] %s49_s25  ;;  %s6230_s27 = int_to_ptr.vmem [resolvable:$true] %s77_s27 }
  0x11   :  { %s7316_s29 = sld [smem:[#allocation26_spill]] }
  0x17   :  { %s5865_s0 = scalar_lea.hbm %s7316_s29, 512 }
  0x18   :  { %p5866_p0 = scmp.ne.s32.totalorder %s7316_s29, %s5865_s0  ;;  %p5869_p1 = scmp.lt.u32.totalorder %s5865_s0, %s7316_s29 }
  0x1a   :  { %p5871_p2 = pnand %p5869_p1, %p5866_p0 }
  0x1c   :  { %5874 = shalt.err (!%p5871_p2)
}
  0x1d   :  { %s5875_s23 = scalar_lea.vmem %s50_s25, 512  ;;  %p5880_p4 = scmp.lt.s32.totalorder %s50_s25, %s50_s25 }
  0x1e   :  { %p5876_p3 = scmp.ne.s32.totalorder %s50_s25, %s5875_s23  ;;  %p5881_p5 = scmp.lt.s32.totalorder %s5875_s23, %s5875_s23 }
  0x20   :  { %p5882_p6 = por %p5881_p5, %p5880_p4 }
  0x22   :  { %p5883_p7 = pnand %p5882_p6, %p5876_p3 }
  0x24   :  { %5886 = shalt.err (!%p5883_p7)
}
  0x25   :  { %s7299_s1 = smov 128   ;;  %s7301_s24 = smov 8  }
  0x26   :  { %55 = dma.hbm_to_vmem [thread:$0]  %s7316_s29, 512, %s50_s25, [#allocation7], %s7299_s1, %s7299_s1, %s7301_s24  }
  0x27   :  { %s7317_s0 = sld [smem:[#allocation30_spill]] }
  0x2d   :  { %s5887_s4 = scalar_lea.hbm %s7317_s0, 1024 }
  0x2e   :  { %p5888_p8 = scmp.ne.s32.totalorder %s7317_s0, %s5887_s4  ;;  %p5891_p9 = scmp.lt.u32.totalorder %s5887_s4, %s7317_s0 }
  0x30   :  { %p5893_p10 = pnand %p5891_p9, %p5888_p8 }
  0x32   :  { %5896 = shalt.err (!%p5893_p10)
}
  0x33   :  { %s5897_s21 = scalar_lea.vmem %s6230_s27, 1024  ;;  %p5902_p12 = scmp.lt.s32.totalorder %s6230_s27, %s6230_s27 }
  0x34   :  { %p5898_p11 = scmp.ne.s32.totalorder %s6230_s27, %s5897_s21  ;;  %p5903_p13 = scmp.lt.s32.totalorder %s5897_s21, %s5897_s21 }
  0x36   :  { %p5904_p0 = por %p5903_p13, %p5902_p12 }
  0x38   :  { %p5905_p1 = pnand %p5904_p0, %p5898_p11 }
  0x3a   :  { %5908 = shalt.err (!%p5905_p1)
}
  0x3b   :  { %s7303_s25 = smov 64   ;;  %s7305_s29 = smov 4  }
  0x3c   :  { %83 = dma.hbm_to_vmem [thread:$0]  %s7317_s0, 1024, %s6230_s27, [#allocation10], %s7303_s25, %s7303_s25, %s7305_s29  }
  0x3d   :  { %s6103_s3 = smov [#allocation12]   ;;  %s6104_s4 = smov [#allocation15]  }
  0x3e   :  { %s111_s28 = sshll.u32 %s6103_s3, 4  ;;  %s141_s30 = sshll.u32 %s6104_s4, 4  ;;  %s112_s28 = int_to_ptr.vmem [resolvable:$true] %s111_s28  ;;  %s6267_s30 = int_to_ptr.vmem [resolvable:$true] %s141_s30 }
  0x3f   :  { %s5909_s22 = scalar_lea.hbm %s7284_s12, 2048 }
  0x40   :  { %p5910_p2 = scmp.ne.s32.totalorder %s7284_s12, %s5909_s22  ;;  %p5913_p3 = scmp.lt.u32.totalorder %s5909_s22, %s7284_s12 }
  0x42   :  { %p5915_p4 = pnand %p5913_p3, %p5910_p2 }
  0x44   :  { %5918 = shalt.err (!%p5915_p4)
}
  0x45   :  { %s5919_s27 = scalar_lea.vmem %s112_s28, 2048  ;;  %p5924_p6 = scmp.lt.s32.totalorder %s112_s28, %s112_s28 }
  0x46   :  { %p5920_p5 = scmp.ne.s32.totalorder %s112_s28, %s5919_s27  ;;  %p5925_p7 = scmp.lt.s32.totalorder %s5919_s27, %s5919_s27 }
  0x48   :  { %p5926_p8 = por %p5925_p7, %p5924_p6 }
  0x4a   :  { %p5927_p9 = pnand %p5926_p8, %p5920_p5 }
  0x4c   :  { %5930 = shalt.err (!%p5927_p9)
}
  0x4d   :  { %s7318_s0 = smov 8   ;;  %s7319_s2 = smov 128  }
  0x4e   :  { %117 = dma.hbm_to_vmem [thread:$0]  %s7284_s12, 2048, %s112_s28, [#allocation13], %s7319_s2, %s7319_s2, %s7318_s0  }
  0x4f   :  { %s5931_s20 = scalar_lea.hbm %s7289_s17, 4096 }
  0x50   :  { %p5932_p10 = scmp.ne.s32.totalorder %s7289_s17, %s5931_s20  ;;  %p5935_p11 = scmp.lt.u32.totalorder %s5931_s20, %s7289_s17 }
  0x52   :  { %p5937_p12 = pnand %p5935_p11, %p5932_p10 }
  0x54   :  { %5940 = shalt.err (!%p5937_p12)
}
  0x55   :  { %s5941_s23 = scalar_lea.vmem %s6267_s30, 4096  ;;  %p5946_p0 = scmp.lt.s32.totalorder %s6267_s30, %s6267_s30 }
  0x56   :  { %p5942_p13 = scmp.ne.s32.totalorder %s6267_s30, %s5941_s23  ;;  %p5947_p1 = scmp.lt.s32.totalorder %s5941_s23, %s5941_s23 }
  0x58   :  { %p5948_p2 = por %p5947_p1, %p5946_p0 }
  0x5a   :  { %p5949_p3 = pnand %p5948_p2, %p5942_p13 }
  0x5c   :  { %5952 = shalt.err (!%p5949_p3)
}
  0x5d   :  { %s6105_s12 = smov 256   ;;  %s6106_s28 = smov 16  }
  0x5e   :  { %147 = dma.hbm_to_vmem [thread:$0]  %s7289_s17, 4096, %s6267_s30, [#allocation16], %s6105_s12, %s6105_s12, %s6106_s28  }
  0x5f   :  { %s6107_s3 = smov [#allocation3]   ;;  %s6108_s4 = smov [#allocation8]  }
  0x60   :  { %s37_s1 = sshll.u32 %s6107_s3, 4  ;;  %s65_s20 = sshll.u32 %s6108_s4, 4  ;;  %s38_s1 = int_to_ptr.vmem [resolvable:$true] %s37_s1  ;;  %s6301_s20 = int_to_ptr.vmem [resolvable:$true] %s65_s20 }
  0x61   :  { %s7320_s5 = sld [smem:[#allocation25_spill]] }
  0x67   :  { %s5953_s22 = scalar_lea.hbm %s7320_s5, 512 }
  0x68   :  { %p5954_p4 = scmp.ne.s32.totalorder %s7320_s5, %s5953_s22  ;;  %p5957_p5 = scmp.lt.u32.totalorder %s5953_s22, %s7320_s5 }
  0x6a   :  { %p5959_p6 = pnand %p5957_p5, %p5954_p4 }
  0x6c   :  { %5962 = shalt.err (!%p5959_p6)
}
  0x6d   :  { %s5963_s17 = scalar_lea.vmem %s38_s1, 512  ;;  %p5968_p8 = scmp.lt.s32.totalorder %s38_s1, %s38_s1 }
  0x6e   :  { %p5964_p7 = scmp.ne.s32.totalorder %s38_s1, %s5963_s17  ;;  %p5969_p9 = scmp.lt.s32.totalorder %s5963_s17, %s5963_s17 }
  0x70   :  { %p5970_p10 = por %p5969_p9, %p5968_p8 }
  0x72   :  { %p5971_p11 = pnand %p5970_p10, %p5964_p7 }
  0x74   :  { %5974 = shalt.err (!%p5971_p11)
}
  0x75   :  { %43 = dma.hbm_to_vmem [thread:$0]  %s7320_s5, 512, %s38_s1, [#allocation4], %s7319_s2, %s7319_s2, %s7318_s0  }
  0x76   :  { %s7321_s18 = sld [smem:[#allocation29_spill]] }
  0x7c   :  { %s5975_s29 = scalar_lea.hbm %s7321_s18, 3072 }
  0x7d   :  { %p5976_p12 = scmp.ne.s32.totalorder %s7321_s18, %s5975_s29  ;;  %p5979_p13 = scmp.lt.u32.totalorder %s5975_s29, %s7321_s18 }
  0x7f   :  { %p5981_p0 = pnand %p5979_p13, %p5976_p12 }
  0x81   :  { %5984 = shalt.err (!%p5981_p0)
}
  0x82   :  { %s5985_s24 = scalar_lea.vmem %s6301_s20, 3072  ;;  %p5990_p2 = scmp.lt.s32.totalorder %s6301_s20, %s6301_s20 }
  0x83   :  { %p5986_p1 = scmp.ne.s32.totalorder %s6301_s20, %s5985_s24  ;;  %p5991_p3 = scmp.lt.s32.totalorder %s5985_s24, %s5985_s24 }
  0x85   :  { %p5992_p4 = por %p5991_p3, %p5990_p2 }
  0x87   :  { %p5993_p5 = pnand %p5992_p4, %p5986_p1 }
  0x89   :  { %5996 = shalt.err (!%p5993_p5)
}
  0x8a   :  { %s6109_s1 = smov 192   ;;  %s6110_s21 = smov 12  }
  0x8b   :  { %71 = dma.hbm_to_vmem [thread:$0]  %s7321_s18, 3072, %s6301_s20, [#allocation7], %s6109_s1, %s6109_s1, %s6110_s21  }
  0x8c   :  { %s6111_s23 = smov [#allocation11]   ;;  %s6112_s30 = smov [#allocation14]  }
  0x8d   :  { %s99_s17 = sshll.u32 %s6111_s23, 4  ;;  %s123_s12 = sshll.u32 %s6112_s30, 4  ;;  %s100_s17 = int_to_ptr.vmem [resolvable:$true] %s99_s17  ;;  %s6335_s12 = int_to_ptr.vmem [resolvable:$true] %s123_s12 }
  0x8e   :  { %s5997_s29 = scalar_lea.hbm %s7283_s11, 1024 }
  0x8f   :  { %p5998_p6 = scmp.ne.s32.totalorder %s7283_s11, %s5997_s29  ;;  %p6001_p7 = scmp.lt.u32.totalorder %s5997_s29, %s7283_s11 }
  0x91   :  { %p6003_p8 = pnand %p6001_p7, %p5998_p6 }
  0x93   :  { %6006 = shalt.err (!%p6003_p8)
}
  0x94   :  { %s6007_s20 = scalar_lea.vmem %s100_s17, 1024  ;;  %p6012_p10 = scmp.lt.s32.totalorder %s100_s17, %s100_s17 }
  0x95   :  { %p6008_p9 = scmp.ne.s32.totalorder %s100_s17, %s6007_s20  ;;  %p6013_p11 = scmp.lt.s32.totalorder %s6007_s20, %s6007_s20 }
  0x97   :  { %p6014_p12 = por %p6013_p11, %p6012_p10 }
  0x99   :  { %p6015_p13 = pnand %p6014_p12, %p6008_p9 }
  0x9b   :  { %6018 = shalt.err (!%p6015_p13)
}
  0x9c   :  { %s7322_s18 = smov 4   ;;  %s7323_s24 = smov 64  }
  0x9d   :  { %105 = dma.hbm_to_vmem [thread:$0]  %s7283_s11, 1024, %s100_s17, [#allocation10], %s7323_s24, %s7323_s24, %s7322_s18  }
  0x9e   :  { %s6019_s23 = scalar_lea.hbm %s7285_s13, 1024 }
  0x9f   :  { %p6020_p0 = scmp.ne.s32.totalorder %s7285_s13, %s6019_s23  ;;  %p6023_p1 = scmp.lt.u32.totalorder %s6019_s23, %s7285_s13 }
  0xa1   :  { %p6025_p2 = pnand %p6023_p1, %p6020_p0 }
  0xa3   :  { %6028 = shalt.err (!%p6025_p2)
}
  0xa4   :  { %s6029_s27 = scalar_lea.vmem %s6335_s12, 1024  ;;  %p6034_p4 = scmp.lt.s32.totalorder %s6335_s12, %s6335_s12 }
  0xa5   :  { %p6030_p3 = scmp.ne.s32.totalorder %s6335_s12, %s6029_s27  ;;  %p6035_p5 = scmp.lt.s32.totalorder %s6029_s27, %s6029_s27 }
  0xa7   :  { %p6036_p6 = por %p6035_p5, %p6034_p4 }
  0xa9   :  { %p6037_p7 = pnand %p6036_p6, %p6030_p3 }
  0xab   :  { %6040 = shalt.err (!%p6037_p7)
}
  0xac   :  { %129 = dma.hbm_to_vmem [thread:$0]  %s7285_s13, 1024, %s6335_s12, [#allocation13], %s7323_s24, %s7323_s24, %s7322_s18  }
  0xad   :  { %s6113_s26 = smov [#allocation17]   ;;  %s6041_s1 = scalar_lea.hbm %s7291_s19, 4096 }
  0xae   :  { %s155_s3 = sshll.u32 %s6113_s26, 4  ;;  %p6042_p8 = scmp.ne.s32.totalorder %s7291_s19, %s6041_s1  ;;  %s156_s3 = int_to_ptr.vmem [resolvable:$true] %s155_s3 }
  0xaf   :  { %p6045_p9 = scmp.lt.u32.totalorder %s6041_s1, %s7291_s19 }
  0xb1   :  { %p6047_p10 = pnand %p6045_p9, %p6042_p8 }
  0xb3   :  { %6050 = shalt.err (!%p6047_p10)
}
  0xb4   :  { %s6051_s30 = scalar_lea.vmem %s156_s3, 4096  ;;  %p6056_p12 = scmp.lt.s32.totalorder %s156_s3, %s156_s3 }
  0xb5   :  { %p6052_p11 = scmp.ne.s32.totalorder %s156_s3, %s6051_s30  ;;  %p6057_p13 = scmp.lt.s32.totalorder %s6051_s30, %s6051_s30 }
  0xb7   :  { %p6058_p0 = por %p6057_p13, %p6056_p12 }
  0xb9   :  { %p6059_p1 = pnand %p6058_p0, %p6052_p11 }
  0xbb   :  { %6062 = shalt.err (!%p6059_p1)
}
  0xbc   :  { %161 = dma.hbm_to_vmem [thread:$0]  %s7291_s19, 4096, %s156_s3, [#allocation16], %s7323_s24, %s7323_s24, %s7322_s18  }
  0xbd   :  { %6085 = dma.done.wait [#allocation4], 512  }
  0xbe   :  { %6086 = vsyncadd [#allocation4], 4294966784 }
  0xbf   :  { %6087 = dma.done.wait [#allocation7], 3584  }
  0xc0   :  { %6088 = vsyncadd [#allocation7], 4294963712 }
  0xc1   :  { %6089 = dma.done.wait [#allocation10], 2048  }
  0xc2   :  { %6090 = vsyncadd [#allocation10], 4294965248 }
  0xc3   :  { %6091 = dma.done.wait [#allocation13], 3072  }
  0xc4   :  { %6092 = vsyncadd [#allocation13], 4294964224 }
  0xc5   :  { %6093 = dma.done.wait [#allocation16], 8192  }
  0xc6   :  { %6094 = vsyncadd [#allocation16], 4294959104  ;;  %v6387_v0 = vld [vmem:[#allocation3] sm:$0xff]  ;;  %v6389_v1 = vld [vmem:[#allocation3 + $0x8] sm:$0xff]  ;;  %v6114_v17 = vmov 0   ;;  %s7324_s25 = sld [smem:[#allocation27_spill]] }
  0xc7   :  { %200 = vadd.xlane.f32.xlu0 %v6387_v0  ;;  %v213_v2 = vmul.f32 %v6387_v0, %v6387_v0  ;;  %v214_v3 = vmul.f32 %v6389_v1, %v6389_v1  ;;  %v5509_v4 = vld [vmem:[#allocation8 + $0x4] ss:$12 sps:$4 sm:$0xff]   ;;  %v5511_v5 = vld [vmem:[#allocation8] ss:$12 sps:$4 sm:$0xff]   ;;  %v5512_v6 = vld [vmem:[#allocation8 + $0x1c] ss:$12 sps:$4 sm:$0xff]   ;;  %473 = vmatprep.mubr.bf16.mxu0 %v6114_v17 }
  0xc8   :  { %441 = vmatprep.subr.bf16.mxu0 %v5509_v4  ;;  %v5514_v7 = vld [vmem:[#allocation8 + $0x18] ss:$12 sps:$4 sm:$0xff]   ;;  %v5515_v8 = vld [vmem:[#allocation8 + $0x34] ss:$12 sps:$4 sm:$0xff]   ;;  %v5517_v9 = vld [vmem:[#allocation8 + $0x30] ss:$12 sps:$4 sm:$0xff]  }
  0xc9   :  { %217 = vadd.xlane.f32.xlu1 %v213_v2  ;;  %442 = vmatpush1.bf16.msra.mxu0 %v5511_v5  ;;  %v5518_v10 = vld [vmem:[#allocation8 + $0x4c] ss:$12 sps:$4 sm:$0xff]   ;;  %v5520_v11 = vld [vmem:[#allocation8 + $0x48] ss:$12 sps:$4 sm:$0xff]   ;;  %v5521_v12 = vld [vmem:[#allocation8 + $0x64] ss:$12 sps:$4 sm:$0xff]  }
  0xca   :  { %443 = vmatprep.subr.bf16.mxu0 %v5512_v6  ;;  %v5523_v13 = vld [vmem:[#allocation8 + $0x60] ss:$12 sps:$4 sm:$0xff]   ;;  %v5524_v14 = vld [vmem:[#allocation8 + $0x7c] ss:$12 sps:$4 sm:$0xff]   ;;  %v5526_v15 = vld [vmem:[#allocation8 + $0x78] ss:$12 sps:$4 sm:$0xff]  }
  0xcb   :  { %202 = vadd.xlane.f32.xlu0 %v6389_v1  ;;  %v5527_v16 = vld [vmem:[#allocation8 + $0x94] ss:$12 sps:$4 sm:$0xff]   ;;  %v5529_v18 = vld [vmem:[#allocation8 + $0x90] ss:$12 sps:$4 sm:$0xff]   ;;  %v5530_v19 = vld [vmem:[#allocation8 + $0xac] ss:$12 sps:$4 sm:$0xff]  }
  0xcc   :  { %v5532_v20 = vld [vmem:[#allocation8 + $0xa8] ss:$12 sps:$4 sm:$0xff]   ;;  %v6400_v22 = vld [vmem:[#allocation3 + $0x18] sm:$0xff]  ;;  %v5534_v26 = vld [vmem:[#allocation8 + $0x20] ss:$12 sps:$4 sm:$0xff]   ;;  %s7325_s27 = sld [smem:[#allocation28_spill]] }
  0xcd   :  { %219 = vadd.xlane.f32.xlu1 %v214_v3  ;;  %444 = vmatpush1.bf16.msra.mxu0 %v5514_v7  ;;  %v6398_v21 = vld [vmem:[#allocation3 + $0x10] sm:$0xff]  ;;  %v216_v25 = vmul.f32 %v6400_v22, %v6400_v22  ;;  %v5535_v27 = vld [vmem:[#allocation8 + $0x38] ss:$12 sps:$4 sm:$0xff]   ;;  %v5538_v30 = vld [vmem:[#allocation8 + $0x80] ss:$12 sps:$4 sm:$0xff]   ;;  %vm6116_vm0 = vmmov 0  }
  0xce   :  { %445 = vmatprep.subr.bf16.mxu0 %v5515_v8  ;;  %v5533_v23 = vld [vmem:[#allocation8 + $0x8] ss:$12 sps:$4 sm:$0xff]   ;;  %v215_v24 = vmul.f32 %v6398_v21, %v6398_v21  ;;  %v5536_v28 = vld [vmem:[#allocation8 + $0x50] ss:$12 sps:$4 sm:$0xff]   ;;  %v5539_v31 = vld [vmem:[#allocation8 + $0x98] ss:$12 sps:$4 sm:$0xff]  }
  0xcf   :  { %204 = vadd.xlane.f32.xlu0 %v6398_v21  ;;  %5126 = vmatprep.subr.bf16.mxu1 %v5533_v23  ;;  %v5537_v29 = vld [vmem:[#allocation8 + $0x68] ss:$12 sps:$4 sm:$0xff]   ;;  %v5540_v32 = vld [vmem:[#allocation8 + $0xb0] ss:$12 sps:$4 sm:$0xff]   ;;  %v4751_v52 = vld [vmem:[%s7324_s25] ss:$0 sm:$0xff] }
  0xd0   :  { %5127 = vmatpush3.bf16.msra.mxu1 %v5533_v23  ;;  %vm565_vm1 = vcmask 261120   ;;  %s6117_s11 = smov 96   ;;  %vm613_vm2 = vcmask 130048   ;;  %s6118_s17 = smov 32  }
  0xd1   :  { %446 = vmatpush1.bf16.msra.mxu0 %v5517_v9  ;;  %206 = vadd.xlane.f32.xlu1 %v6400_v22  ;;  %s7326_s30 = sld [smem:[#allocation31_spill]]  ;;  %s7327_s19 = sld [smem:[#allocation32_spill]] }
  0xd2   :  { %447 = vmatprep.subr.bf16.mxu0 %v5518_v10  ;;  %5128 = vmatprep.subr.bf16.mxu1 %v5534_v26  ;;  %v4752_v57 = vld [vmem:[%s7325_s27] ss:$0 sm:$0xff]  ;;  %s6119_s18 = smov [#allocation18]  }
  0xd3   :  { %221 = vadd.xlane.f32.xlu0 %v215_v24  ;;  %s4735_s25 = sshll.u32 %s6119_s18, 4  ;;  %s4736_s25 = int_to_ptr.vmem [resolvable:$true] %s4735_s25 }
  0xd4   :  { %5129 = vmatpush3.bf16.msra.mxu1 %v5534_v26  ;;  %s6063_s28 = scalar_lea.vmem %s4736_s25, 512  ;;  %p6068_p3 = scmp.lt.s32.totalorder %s4736_s25, %s4736_s25 }
  0xd5   :  { %448 = vmatpush1.bf16.msra.mxu0 %v5520_v11  ;;  %223 = vadd.xlane.f32.xlu1 %v216_v25  ;;  %p6064_p2 = scmp.ne.s32.totalorder %s4736_s25, %s6063_s28  ;;  %p6069_p4 = scmp.lt.s32.totalorder %s6063_s28, %s6063_s28 }
  0xd6   :  { %449 = vmatprep.subr.bf16.mxu0 %v5521_v12  ;;  %5130 = vmatprep.subr.bf16.mxu1 %v5535_v27 }
  0xd7   :  { %p6070_p5 = por %p6069_p4, %p6068_p3 }
  0xd8   :  { %5131 = vmatpush3.bf16.msra.mxu1 %v5535_v27 }
  0xd9   :  { %450 = vmatpush1.bf16.msra.mxu0 %v5523_v13  ;;  %5132 = vmatprep.subr.bf16.mxu1 %v5536_v28  ;;  %p6071_p6 = pnand %p6070_p5, %p6064_p2 }
  0xda   :  { %451 = vmatprep.subr.bf16.mxu0 %v5524_v14 }
  0xdc   :  { %5133 = vmatpush3.bf16.msra.mxu1 %v5536_v28  ;;  %v6115_v28 = vmov 0.0  }
  0xdd   :  { %452 = vmatpush1.bf16.msra.mxu0 %v5526_v15  ;;  %5134 = vmatprep.subr.bf16.mxu1 %v5537_v29 }
  0xde   :  { %453 = vmatprep.subr.bf16.mxu0 %v5527_v16 }
  0xe0   :  { %5135 = vmatpush3.bf16.msra.mxu1 %v5537_v29 }
  0xe1   :  { %454 = vmatpush1.bf16.msra.mxu0 %v5529_v18  ;;  %5136 = vmatprep.subr.bf16.mxu1 %v5538_v30 }
  0xe2   :  { %455 = vmatprep.subr.bf16.mxu0 %v5530_v19 }
  0xe4   :  { %5137 = vmatpush3.bf16.msra.mxu1 %v5538_v30 }
  0xe5   :  { %456 = vmatpush1.bf16.msra.mxu0 %v5532_v20  ;;  %5138 = vmatprep.subr.bf16.mxu1 %v5539_v31 }
  0xe6   :  { %5152 = vmatprep.subr.bf16.mxu0 %v6115_v28 }
  0xe8   :  { %5139 = vmatpush3.bf16.msra.mxu1 %v5539_v31 }
  0xe9   :  { %5140 = vmatprep.subr.bf16.mxu1 %v5540_v32 }
  0xec   :  { %5141 = vmatpush3.bf16.msra.mxu1 %v5540_v32 }
  0xed   :  { %5146 = vmatprep.subr.bf16.mxu1 %v6115_v28 }
 0x154   :  { %v201_v33 = vpop.xlane.xlu0 %200 }
 0x155   :  { %v209_v34 = vmul.f32 0.0078125, %v201_v33 }
 0x156   :  { %v218_v35 = vpop.xlane.xlu1 %217 }
 0x157   :  { %v229_v36 = vmul.f32 %v209_v34, %v209_v34  ;;  %v225_v37 = vmul.f32 0.0078125, %v218_v35  ;;  %v241_v49 = vsub.f32 %v6387_v0, %v209_v34 }
 0x158   :  { %v203_v38 = vpop.xlane.xlu0 %202 }
 0x159   :  { %v233_v39 = vsub.f32 %v225_v37, %v229_v36  ;;  %v210_v40 = vmul.f32 0.0078125, %v203_v38 }
 0x15a   :  { %v220_v41 = vpop.xlane.xlu1 %219 }
 0x15b   :  { %v237_v42 = vmax.f32 %v233_v39, 0.0  ;;  %v230_v43 = vmul.f32 %v210_v40, %v210_v40  ;;  %v226_v44 = vmul.f32 0.0078125, %v220_v41  ;;  %v242_v53 = vsub.f32 %v6389_v1, %v210_v40 }
 0x15c   :  { %v205_v62 = vpop.xlane.xlu0 %204 }
 0x15d   :  { %v245_v45 = vadd.f32 1e-05, %v237_v42  ;;  %v234_v46 = vsub.f32 %v226_v44, %v230_v43  ;;  %v211_v0 = vmul.f32 0.0078125, %v205_v62 }
 0x15e   :  { %v207_v63 = vpop.xlane.xlu1 %206 }
 0x15f   :  { %5669 = vrsqrt.f32 %v245_v45  ;;  %v238_v47 = vmax.f32 %v234_v46, 0.0  ;;  %v212_v2 = vmul.f32 0.0078125, %v207_v63  ;;  %v231_v4 = vmul.f32 %v211_v0, %v211_v0 }
 0x160   :  { %v222_v1 = vpop.xlane.xlu0 %221  ;;  %v243_v15 = vsub.f32 %v6398_v21, %v211_v0 }
 0x161   :  { %v246_v48 = vadd.f32 1e-05, %v238_v47  ;;  %v227_v5 = vmul.f32 0.0078125, %v222_v1  ;;  %v232_v6 = vmul.f32 %v212_v2, %v212_v2  ;;  %v244_v16 = vsub.f32 %v6400_v22, %v212_v2 }
 0x162   :  { %v224_v3 = vpop.xlane.xlu1 %223 }
 0x163   :  { %5671 = vrsqrt.f32 %v246_v48  ;;  %v228_v7 = vmul.f32 0.0078125, %v224_v3  ;;  %v235_v8 = vsub.f32 %v227_v5, %v231_v4 }
 0x165   :  { %v236_v9 = vsub.f32 %v228_v7, %v232_v6  ;;  %v239_v10 = vmax.f32 %v235_v8, 0.0 }
 0x167   :  { %v240_v11 = vmax.f32 %v236_v9, 0.0  ;;  %v247_v12 = vadd.f32 1e-05, %v239_v10 }
 0x169   :  { %v5670_v50 = vpop.eup %5669  ;;  %v248_v13 = vadd.f32 1e-05, %v240_v11  ;;  %5673 = vrsqrt.f32 %v247_v12 }
 0x16a   :  { %v253_v51 = vmul.f32 %v5670_v50, %v241_v49 }
 0x16b   :  { %5675 = vrsqrt.f32 %v248_v13 }
 0x16c   :  { %v264_v56 = vmul.f32 %v4751_v52, %v253_v51 }
 0x16d   :  { %v5672_v54 = vpop.eup %5671 }
 0x16e   :  { %v254_v55 = vmul.f32 %v5672_v54, %v242_v53  ;;  %v275_v59 = vadd.f32 %v4752_v57, %v264_v56 }
 0x170   :  { %v265_v58 = vmul.f32 %v4751_v52, %v254_v55 }
 0x172   :  { %v276_v60 = vadd.f32 %v4752_v57, %v265_v58 }
 0x173   :  { %v5674_v14 = vpop.eup %5673 }
 0x174   :  { %v279_v61 = vpack.c.bf16 %v276_v60, %v275_v59  ;;  %v255_v19 = vmul.f32 %v5674_v14, %v243_v15 }
 0x175   :  { %v5676_v18 = vpop.eup %5675 }
 0x176   :  { %474 = vmatmul.mubr.bf16.vlgmr.msra.gmra.mrb[0].mxu0 %v279_v61  ;;  %5142 = vmatprep.mubr.bf16.mxu1 %v279_v61  ;;  %v256_v20 = vmul.f32 %v5676_v18, %v244_v16  ;;  %v266_v23 = vmul.f32 %v4751_v52, %v255_v19 }
 0x177   :  { %483 = vmatprep.mubr.bf16.mxu0 %v6114_v17 }
 0x178   :  { %v267_v24 = vmul.f32 %v4751_v52, %v256_v20  ;;  %v277_v25 = vadd.f32 %v4752_v57, %v266_v23 }
 0x17a   :  { %v278_v26 = vadd.f32 %v4752_v57, %v267_v24 }
 0x17c   :  { %v280_v27 = vpack.c.bf16 %v278_v26, %v277_v25 }
 0x17e   :  { %5143 = vmatmul.mubr.bf16.vlgmr.msra.gmra.mrb[0].mxu1 %v280_v27  ;;  %484 = vmatmul.mubr.bf16.gmra.mrb[4].mxu0 %v280_v27  ;;  %v6472_v27 = vld [vmem:[#allocation9 + $0x10] sm:$0xff]  }
 0x17f   :  { %5148 = vmatprep.mubr.msk.bf16.mxu1 %vm6116_vm0, %v6115_v28  ;;  %5154 = vmatprep.mubr.msk.bf16.mxu0 %vm6116_vm0, %v6115_v28 }
 0x249   :  { %v475_v21 = vpop.f32.mrb[0].mxu0 }
 0x24a   :  { %v477_v22 = vpop.f32.mrb[1].mxu0 }
 0x24b   :  { %v479_v29 = vpop.f32.mrb[2].mxu0 }
 0x24c   :  { %v6425_v30 = vpack.c.bf16 %v479_v29, %v475_v21  ;;  %v481_v31 = vpop.f32.mrb[3].mxu0  ;;  %v6475_v21 = vld [vmem:[#allocation9 + $0x18] sm:$0xff]  }
 0x24d   :  { %v6427_v32 = vpack.c.bf16 %v481_v31, %v477_v22 }
 0x24e   :  { %683 = vrot.lane.b32.xlu1 %v6425_v30, %s6117_s11 }
 0x24f   :  { %686 = vrot.lane.b32.xlu0 %v6427_v32, %s6117_s11  ;;  %v570_v33 = vsel %vm565_vm1, %v6427_v32, 0 }
 0x250   :  { %5147 = vmatpush3.bf16.xpose.msra.mxu1 %v570_v33 }
 0x251   :  { %5158 = vmatprep.subr.bf16.mxu1 %v6115_v28  ;;  %v5144_v34 = vpop.f32.mrb[0].mxu1  ;;  %v485_v40 = vpop.f32.mrb[4].mxu0 }
 0x252   :  { %v528_v35 = vpop.f32.mrb[1].mxu1  ;;  %v487_v41 = vpop.f32.mrb[5].mxu0 }
 0x253   :  { %v5145_v36 = vpop.f32.mrb[2].mxu1  ;;  %v489_v42 = vpop.f32.mrb[6].mxu0 }
 0x254   :  { %v6440_v37 = vpack.c.bf16 %v5145_v36, %v5144_v34  ;;  %v531_v38 = vpop.f32.mrb[3].mxu1  ;;  %v6446_v43 = vpack.c.bf16 %v489_v42, %v485_v40  ;;  %v491_v44 = vpop.f32.mrb[7].mxu0 }
 0x255   :  { %v6442_v39 = vpack.c.bf16 %v531_v38, %v528_v35  ;;  %v6448_v45 = vpack.c.bf16 %v491_v44, %v487_v41  ;;  %v6481_v38 = vld [vmem:[#allocation9] sm:$0xff]   ;;  %v6485_v41 = vld [vmem:[#allocation9 + $0x8] sm:$0xff]  }
 0x257   :  { %5149 = vmatmul.mubr.msk.bf16.vlgmr.msra.gmra.mrb[4].mxu1 %vm565_vm1, %v6425_v30  ;;  %5153 = vmatpush3.bf16.msra.mxu0 %v6442_v39 }
 0x258   :  { %5160 = vmatprep.mubr.msk.bf16.mxu1 %vm6116_vm0, %v6115_v28  ;;  %5164 = vmatprep.subr.bf16.mxu0 %v6115_v28 }
 0x2c0   :  { %v684_v48 = vpop.permute.xlu1 %683 }
 0x2c1   :  { %v687_v46 = vpop.permute.xlu0 %686 }
 0x2c2   :  { %v692_v47 = vsel %vm565_vm1, %v687_v46, 0 }
 0x2c3   :  { %5159 = vmatpush3.bf16.xpose.msra.mxu1 %v692_v47 }
 0x2c4   :  { %5170 = vmatprep.subr.bf16.mxu1 %v6115_v28 }
 0x2ca   :  { %5161 = vmatmul.mubr.msk.bf16.vlgmr.msra.gmra.mrb[8].mxu1 %vm565_vm1, %v684_v48 }
 0x2cb   :  { %5174 = vmatprep.mubr.msk.bf16.mxu1 %vm6116_vm0, %v6115_v28  ;;  %5171 = vmatpush3.bf16.msra.mxu1 %v6472_v27 }
 0x2cc   :  { %5172 = vmatprep.subr.bf16.mxu1 %v6115_v28 }
 0x2cf   :  { %5173 = vmatpush3.bf16.msra.mxu1 %v6475_v21 }
 0x2d0   :  { %5186 = vmatprep.subr.bf16.mxu1 %v6115_v28 }
 0x32a   :  { %v606_v49 = vpop.f32.mrb[4].mxu1 }
 0x32b   :  { %v5150_v50 = vpop.f32.mrb[5].mxu1  ;;  %v614_v51 = vsel %vm613_vm2, %v606_v49, -inf }
 0x32c   :  { %615 = vmax.xlane.f32.xlu1 %v614_v51  ;;  %v609_v52 = vpop.f32.mrb[6].mxu1 }
 0x32d   :  { %v5151_v53 = vpop.f32.mrb[7].mxu1  ;;  %v617_v54 = vsel %vm613_vm2, %v609_v52, -inf }
 0x32e   :  { %618 = vmax.xlane.f32.xlu0 %v617_v54 }
 0x39d   :  { %v728_v55 = vpop.f32.mrb[8].mxu1 }
 0x39e   :  { %v5162_v56 = vpop.f32.mrb[9].mxu1  ;;  %v735_v57 = vsel %vm613_vm2, %v728_v55, -inf }
 0x39f   :  { %736 = vmax.xlane.f32.xlu0 %v735_v57  ;;  %v731_v58 = vpop.f32.mrb[10].mxu1 }
 0x3a0   :  { %v5163_v59 = vpop.f32.mrb[11].mxu1  ;;  %v738_v60 = vsel %vm613_vm2, %v731_v58, -inf }
 0x3a1   :  { %739 = vmax.xlane.f32.xlu1 %v738_v60 }
 0x3b9   :  { %v616_v61 = vpop.xlane.xlu1 %615 }
 0x3ba   :  { %v620_v62 = vsub.f32 %v606_v49, %v616_v61 }
 0x3bb   :  { %v619_v63 = vpop.xlane.xlu0 %618 }
 0x3bc   :  { %v622_v0 = vmul.f32 1.442695, %v620_v62  ;;  %v621_v2 = vsub.f32 %v609_v52, %v619_v63 }
 0x3be   :  { %5677 = vpow2.f32 %v622_v0  ;;  %v624_v1 = vmul.f32 1.442695, %v621_v2 }
 0x3c0   :  { %5679 = vpow2.f32 %v624_v1 }
 0x3c8   :  { %v5678_v3 = vpop.eup %5677 }
 0x3c9   :  { %v626_v4 = vsel %vm613_vm2, %v5678_v3, 0.0 }
 0x3ca   :  { %v5680_v5 = vpop.eup %5679  ;;  %627 = vadd.xlane.f32.xlu0 %v626_v4 }
 0x3cb   :  { %v629_v6 = vsel %vm613_vm2, %v5680_v5, 0.0 }
 0x3cc   :  { %630 = vadd.xlane.f32.xlu1 %v629_v6 }
 0x42c   :  { %v737_v7 = vpop.xlane.xlu0 %736 }
 0x42d   :  { %v741_v8 = vsub.f32 %v728_v55, %v737_v7 }
 0x42e   :  { %v740_v9 = vpop.xlane.xlu1 %739 }
 0x42f   :  { %v743_v10 = vmul.f32 1.442695, %v741_v8  ;;  %v742_v11 = vsub.f32 %v731_v58, %v740_v9 }
 0x431   :  { %5681 = vpow2.f32 %v743_v10  ;;  %v745_v12 = vmul.f32 1.442695, %v742_v11 }
 0x433   :  { %5683 = vpow2.f32 %v745_v12 }
 0x43b   :  { %v5682_v13 = vpop.eup %5681 }
 0x43c   :  { %v747_v14 = vsel %vm613_vm2, %v5682_v13, 0.0 }
 0x43d   :  { %v5684_v15 = vpop.eup %5683  ;;  %748 = vadd.xlane.f32.xlu0 %v747_v14 }
 0x43e   :  { %v750_v16 = vsel %vm613_vm2, %v5684_v15, 0.0 }
 0x43f   :  { %751 = vadd.xlane.f32.xlu1 %v750_v16 }
 0x450   :  { %921 = vrot.lane.b32.xlu1 %v6427_v32, %s7323_s24 }
 0x453   :  { %759 = vrot.lane.b32.xlu0 %v6442_v39, %s6117_s11 }
 0x454   :  { %919 = vrot.lane.b32.xlu1 %v6425_v30, %s7323_s24 }
 0x457   :  { %v628_v18 = vpop.xlane.xlu0 %627 }
 0x458   :  { %5685 = vrcp.f32 %v628_v18 }
 0x459   :  { %v631_v19 = vpop.xlane.xlu1 %630 }
 0x45a   :  { %5687 = vrcp.f32 %v631_v19 }
 0x462   :  { %v5686_v20 = vpop.eup %5685 }
 0x463   :  { %v634_v24 = vmul.f32 %v5686_v20, %v5678_v3 }
 0x464   :  { %v5688_v23 = vpop.eup %5687 }
 0x465   :  { %v635_v25 = vmul.f32 %v5688_v23, %v5680_v5 }
 0x467   :  { %v636_v26 = vpack.c.bf16 %v635_v25, %v634_v24 }
 0x469   :  { %5155 = vmatmul.mubr.msk.bf16.vlgmr.msra.gmra.mrb[8].mxu0 %vm613_vm2, %v636_v26 }
 0x46a   :  { %5166 = vmatprep.mubr.msk.bf16.mxu0 %vm6116_vm0, %v6115_v28 }
 0x4ca   :  { %v749_v22 = vpop.xlane.xlu0 %748 }
 0x4cb   :  { %5689 = vrcp.f32 %v749_v22 }
 0x4cc   :  { %v752_v29 = vpop.xlane.xlu1 %751 }
 0x4cd   :  { %5691 = vrcp.f32 %v752_v29 }
 0x4ce   :  { %v760_v31 = vpop.permute.xlu0 %759 }
 0x4cf   :  { %5165 = vmatpush3.bf16.msra.mxu0 %v760_v31 }
 0x4d0   :  { %5178 = vmatprep.subr.bf16.mxu0 %v6115_v28  ;;  %v922_v51 = vpop.permute.xlu1 %921 }
 0x4d1   :  { %v927_v55 = vsel %vm565_vm1, %v922_v51, 0 }
 0x4d4   :  { %v920_v56 = vpop.permute.xlu1 %919 }
 0x4d5   :  { %v5690_v33 = vpop.eup %5689 }
 0x4d6   :  { %v755_v35 = vmul.f32 %v5690_v33, %v5682_v13 }
 0x4d7   :  { %v5692_v34 = vpop.eup %5691 }
 0x4d8   :  { %v756_v36 = vmul.f32 %v5692_v34, %v5684_v15 }
 0x4da   :  { %v757_v40 = vpack.c.bf16 %v756_v36, %v755_v35  ;;  %v6530_v35 = vld [vmem:[#allocation9 + $0x28] sm:$0xff]  }
 0x4dc   :  { %5167 = vmatmul.mubr.msk.bf16.vlgmr.msra.gmra.mrb[12].mxu0 %vm613_vm2, %v757_v40 }
 0x4dd   :  { %5179 = vmatpush3.bf16.msra.mxu0 %v6481_v38  ;;  %5182 = vmatprep.mubr.msk.bf16.mxu0 %vm6116_vm0, %v6115_v28 }
 0x4de   :  { %5180 = vmatprep.subr.bf16.mxu0 %v6115_v28 }
 0x4e1   :  { %5181 = vmatpush3.bf16.msra.mxu0 %v6485_v41 }
 0x4e2   :  { %5192 = vmatprep.subr.bf16.mxu0 %v6115_v28 }
 0x53c   :  { %v674_v42 = vpop.f32.mrb[8].mxu0 }
 0x53d   :  { %v5156_v44 = vpop.f32.mrb[9].mxu0 }
 0x53e   :  { %v677_v46 = vpop.f32.mrb[10].mxu0 }
 0x53f   :  { %v681_v47 = vpack.c.bf16 %v677_v46, %v674_v42  ;;  %v5157_v48 = vpop.f32.mrb[11].mxu0 }
 0x541   :  { %5183 = vmatmul.mubr.msk.bf16.vlgmr.msra.gmra.mrb[16].mxu0 %vm565_vm1, %v681_v47 }
 0x542   :  { %5194 = vmatprep.mubr.msk.bf16.mxu0 %vm6116_vm0, %v6115_v28 }
 0x5af   :  { %v799_v49 = vpop.f32.mrb[12].mxu0 }
 0x5b0   :  { %v5168_v50 = vpop.f32.mrb[13].mxu0 }
 0x5b1   :  { %v802_v52 = vpop.f32.mrb[14].mxu0 }
 0x5b2   :  { %v806_v53 = vpack.c.bf16 %v802_v52, %v799_v49  ;;  %v5169_v54 = vpop.f32.mrb[15].mxu0 }
 0x5b4   :  { %5175 = vmatmul.mubr.msk.bf16.vlgmr.msra.gmra.mrb[12].mxu1 %vm565_vm1, %v806_v53 }
 0x5b5   :  { %5187 = vmatpush3.bf16.xpose.msra.mxu1 %v927_v55  ;;  %5188 = vmatprep.mubr.msk.bf16.mxu1 %vm6116_vm0, %v6115_v28 }
 0x5b6   :  { %5198 = vmatprep.subr.bf16.mxu1 %v6115_v28 }
 0x5bc   :  { %5189 = vmatmul.mubr.msk.bf16.vlgmr.msra.gmra.mrb[16].mxu1 %vm565_vm1, %v920_v56 }
 0x5bd   :  { %5202 = vmatprep.mubr.msk.bf16.mxu1 %vm6116_vm0, %v6115_v28 }
 0x614   :  { %v912_v57 = vpop.f32.mrb[16].mxu0 }
 0x615   :  { %v5184_v58 = vpop.f32.mrb[17].mxu0 }
 0x616   :  { %v915_v59 = vpop.f32.mrb[18].mxu0 }
 0x617   :  { %v5185_v60 = vpop.f32.mrb[19].mxu0 }
 0x687   :  { %v856_v61 = vpop.f32.mrb[12].mxu1 }
 0x688   :  { %v6503_v62 = vadd.f32 %v912_v57, %v856_v61  ;;  %v5176_v63 = vpop.f32.mrb[13].mxu1 }
 0x689   :  { %v859_v0 = vpop.f32.mrb[14].mxu1 }
 0x68a   :  { %v6505_v2 = vadd.f32 %v915_v59, %v859_v0  ;;  %v5177_v1 = vpop.f32.mrb[15].mxu1  ;;  %v6547_v0 = vld [vmem:[#allocation9 + $0x30] sm:$0xff]  }
 0x68f   :  { %v963_v3 = vpop.f32.mrb[16].mxu1 }
 0x690   :  { %v5190_v4 = vpop.f32.mrb[17].mxu1  ;;  %v970_v5 = vsel %vm613_vm2, %v963_v3, -inf }
 0x691   :  { %971 = vmax.xlane.f32.xlu1 %v970_v5  ;;  %v966_v6 = vpop.f32.mrb[18].mxu1 }
 0x692   :  { %v5191_v7 = vpop.f32.mrb[19].mxu1  ;;  %v973_v8 = vsel %vm613_vm2, %v966_v6, -inf }
 0x693   :  { %974 = vmax.xlane.f32.xlu0 %v973_v8 }
 0x6a2   :  { %993 = vrot.lane.b32.xlu1 %v6442_v39, %s7323_s24 }
 0x6a6   :  { %1099 = vrot.lane.b32.xlu1 %v6425_v30, %s6118_s17  ;;  %v6518_v30 = vld [vmem:[#allocation9 + $0x20] sm:$0xff]  }
 0x6a7   :  { %5199 = vmatpush3.bf16.msra.mxu1 %v6518_v30 }
 0x6a8   :  { %5200 = vmatprep.subr.bf16.mxu1 %v6115_v28 }
 0x6ab   :  { %5201 = vmatpush3.bf16.msra.mxu1 %v6530_v35 }
 0x6ac   :  { %5212 = vmatprep.subr.bf16.mxu1 %v6115_v28 }
 0x71e   :  { %v972_v9 = vpop.xlane.xlu1 %971 }
 0x71f   :  { %v976_v10 = vsub.f32 %v963_v3, %v972_v9 }
 0x720   :  { %v975_v11 = vpop.xlane.xlu0 %974 }
 0x721   :  { %v978_v12 = vmul.f32 1.442695, %v976_v10  ;;  %v977_v13 = vsub.f32 %v966_v6, %v975_v11 }
 0x722   :  { %v994_v14 = vpop.permute.xlu1 %993 }
 0x723   :  { %5693 = vpow2.f32 %v978_v12  ;;  %v980_v15 = vmul.f32 1.442695, %v977_v13  ;;  %5193 = vmatpush3.bf16.msra.mxu0 %v994_v14 }
 0x724   :  { %5206 = vmatprep.subr.bf16.mxu0 %v6115_v28 }
 0x725   :  { %5695 = vpow2.f32 %v980_v15 }
 0x72d   :  { %v5694_v16 = vpop.eup %5693 }
 0x72e   :  { %v982_v18 = vsel %vm613_vm2, %v5694_v16, 0.0 }
 0x72f   :  { %v5696_v19 = vpop.eup %5695  ;;  %983 = vadd.xlane.f32.xlu0 %v982_v18  ;;  %v6577_v18 = vld [vmem:[#allocation9 + $0x38] sm:$0xff]  }
 0x730   :  { %v985_v20 = vsel %vm613_vm2, %v5696_v19, 0.0 }
 0x733   :  { %986 = vadd.xlane.f32.xlu0 %v985_v20 }
 0x749   :  { %1101 = vrot.lane.b32.xlu0 %v6427_v32, %s6118_s17  ;;  %v1100_v32 = vpop.permute.xlu1 %1099 }
 0x7bc   :  { %v984_v23 = vpop.xlane.xlu0 %983 }
 0x7bd   :  { %5697 = vrcp.f32 %v984_v23 }
 0x7c0   :  { %v987_v24 = vpop.xlane.xlu0 %986 }
 0x7c1   :  { %5699 = vrcp.f32 %v987_v24 }
 0x7c4   :  { %v1102_v31 = vpop.permute.xlu0 %1101 }
 0x7c5   :  { %v1107_v34 = vsel %vm565_vm1, %v1102_v31, 0 }
 0x7c7   :  { %v5698_v25 = vpop.eup %5697 }
 0x7c8   :  { %v990_v22 = vmul.f32 %v5698_v25, %v5694_v16 }
 0x7cb   :  { %v5700_v26 = vpop.eup %5699 }
 0x7cc   :  { %v991_v29 = vmul.f32 %v5700_v26, %v5696_v19 }
 0x7ce   :  { %v992_v33 = vpack.c.bf16 %v991_v29, %v990_v22 }
 0x7d0   :  { %5195 = vmatmul.mubr.msk.bf16.vlgmr.msra.gmra.mrb[20].mxu0 %vm613_vm2, %v992_v33 }
 0x7d1   :  { %5207 = vmatpush3.bf16.xpose.msra.mxu0 %v1107_v34  ;;  %5208 = vmatprep.mubr.msk.bf16.mxu0 %vm6116_vm0, %v6115_v28 }
 0x7d2   :  { %5218 = vmatprep.subr.bf16.mxu0 %v6115_v28 }
 0x7d8   :  { %5209 = vmatmul.mubr.msk.bf16.vlgmr.msra.gmra.mrb[24].mxu0 %vm565_vm1, %v1100_v32 }
 0x7d9   :  { %5222 = vmatprep.mubr.msk.bf16.mxu0 %vm6116_vm0, %v6115_v28  ;;  %5219 = vmatpush3.bf16.msra.mxu0 %v6547_v0 }
 0x7da   :  { %5220 = vmatprep.subr.bf16.mxu0 %v6115_v28 }
 0x7dd   :  { %5221 = vmatpush3.bf16.msra.mxu0 %v6577_v18 }
 0x7de   :  { %5232 = vmatprep.subr.bf16.mxu0 %v6115_v28 }
 0x8a3   :  { %v1033_v36 = vpop.f32.mrb[20].mxu0 }
 0x8a4   :  { %v5196_v40 = vpop.f32.mrb[21].mxu0 }
 0x8a5   :  { %v1036_v42 = vpop.f32.mrb[22].mxu0 }
 0x8a6   :  { %v1040_v44 = vpack.c.bf16 %v1036_v42, %v1033_v36  ;;  %v5197_v46 = vpop.f32.mrb[23].mxu0 }
 0x8a8   :  { %5203 = vmatmul.mubr.msk.bf16.vlgmr.msra.gmra.mrb[20].mxu1 %vm565_vm1, %v1040_v44 }
 0x8a9   :  { %5214 = vmatprep.mubr.msk.bf16.mxu1 %vm6116_vm0, %v6115_v28 }
 0x8ab   :  { %v1143_v47 = vpop.f32.mrb[24].mxu0 }
 0x8ac   :  { %v5210_v48 = vpop.f32.mrb[25].mxu0  ;;  %v1150_v49 = vsel %vm613_vm2, %v1143_v47, -inf }
 0x8ad   :  { %1151 = vmax.xlane.f32.xlu1 %v1150_v49  ;;  %v1146_v50 = vpop.f32.mrb[26].mxu0 }
 0x8ae   :  { %v5211_v51 = vpop.f32.mrb[27].mxu0  ;;  %v1153_v52 = vsel %vm613_vm2, %v1146_v50, -inf }
 0x8af   :  { %1154 = vmax.xlane.f32.xlu0 %v1153_v52 }
 0x93a   :  { %v1152_v53 = vpop.xlane.xlu1 %1151 }
 0x93b   :  { %v1156_v54 = vsub.f32 %v1143_v47, %v1152_v53 }
 0x93c   :  { %v1155_v55 = vpop.xlane.xlu0 %1154 }
 0x93d   :  { %v1158_v56 = vmul.f32 1.442695, %v1156_v54  ;;  %v1157_v57 = vsub.f32 %v1146_v50, %v1155_v55 }
 0x93f   :  { %5701 = vpow2.f32 %v1158_v56  ;;  %v1160_v58 = vmul.f32 1.442695, %v1157_v57 }
 0x941   :  { %5703 = vpow2.f32 %v1160_v58 }
 0x949   :  { %v5702_v59 = vpop.eup %5701 }
 0x94a   :  { %v1162_v60 = vsel %vm613_vm2, %v5702_v59, 0.0 }
 0x94b   :  { %v5704_v61 = vpop.eup %5703  ;;  %1163 = vadd.xlane.f32.xlu0 %v1162_v60 }
 0x94c   :  { %v1165_v63 = vsel %vm613_vm2, %v5704_v61, 0.0 }
 0x94d   :  { %1166 = vadd.xlane.f32.xlu1 %v1165_v63 }
 0x95e   :  { %1400 = vrot.lane.b32.xlu1 %v6448_v45, %s6117_s11 }
 0x961   :  { %1173 = vrot.lane.b32.xlu0 %v6442_v39, %s6118_s17 }
 0x962   :  { %1397 = vrot.lane.b32.xlu1 %v6446_v43, %s6117_s11 }
 0x97b   :  { %v1090_v1 = vpop.f32.mrb[20].mxu1 }
 0x97c   :  { %v6550_v3 = vadd.f32 %v1090_v1, %v6503_v62  ;;  %v5204_v4 = vpop.f32.mrb[21].mxu1 }
 0x97d   :  { %v1093_v5 = vpop.f32.mrb[22].mxu1 }
 0x97e   :  { %v6555_v6 = vadd.f32 %v1093_v5, %v6505_v2  ;;  %v5205_v7 = vpop.f32.mrb[23].mxu1  ;;  %v1285_v2 = vsel %vm565_vm1, %v6448_v45, 0 }
 0x9d8   :  { %v1164_v39 = vpop.xlane.xlu0 %1163 }
 0x9d9   :  { %5705 = vrcp.f32 %v1164_v39 }
 0x9da   :  { %v1167_v8 = vpop.xlane.xlu1 %1166 }
 0x9db   :  { %5707 = vrcp.f32 %v1167_v8 }
 0x9dc   :  { %v1174_v9 = vpop.permute.xlu0 %1173 }
 0x9dd   :  { %5213 = vmatpush3.bf16.msra.mxu1 %v1174_v9 }
 0x9de   :  { %5226 = vmatprep.subr.bf16.mxu1 %v6115_v28  ;;  %v1401_v14 = vpop.permute.xlu1 %1400 }
 0x9df   :  { %v1406_v15 = vsel %vm565_vm1, %v1401_v14, 0 }
 0x9e2   :  { %v1398_v16 = vpop.permute.xlu1 %1397 }
 0x9e3   :  { %v5706_v62 = vpop.eup %5705 }
 0x9e4   :  { %v1170_v11 = vmul.f32 %v5706_v62, %v5702_v59 }
 0x9e5   :  { %v5708_v10 = vpop.eup %5707 }
 0x9e6   :  { %v1171_v12 = vmul.f32 %v5708_v10, %v5704_v61 }
 0x9e8   :  { %v1172_v13 = vpack.c.bf16 %v1171_v12, %v1170_v11 }
 0x9ea   :  { %5215 = vmatmul.mubr.msk.bf16.vlgmr.msra.gmra.mrb[24].mxu1 %vm613_vm2, %v1172_v13 }
 0x9eb   :  { %5227 = vmatpush3.bf16.xpose.msra.mxu1 %v1285_v2  ;;  %5228 = vmatprep.mubr.msk.bf16.mxu1 %vm6116_vm0, %v6115_v28 }
 0x9ec   :  { %5238 = vmatprep.subr.bf16.mxu1 %v6115_v28 }
 0x9f2   :  { %5229 = vmatmul.mubr.msk.bf16.vlgmr.msra.gmra.mrb[28].mxu1 %vm565_vm1, %v6446_v43 }
 0x9f3   :  { %5239 = vmatpush3.bf16.xpose.msra.mxu1 %v1406_v15  ;;  %5240 = vmatprep.mubr.msk.bf16.mxu1 %vm6116_vm0, %v6115_v28 }
 0x9f4   :  { %5250 = vmatprep.subr.bf16.mxu1 %v6115_v28 }
 0x9fa   :  { %5241 = vmatmul.mubr.msk.bf16.vlgmr.msra.gmra.mrb[32].mxu1 %vm565_vm1, %v1398_v16 }
 0x9fb   :  { %5251 = vmatpush3.bf16.msra.mxu1 %v6472_v27  ;;  %5254 = vmatprep.mubr.msk.bf16.mxu1 %vm6116_vm0, %v6115_v28 }
 0x9fc   :  { %5252 = vmatprep.subr.bf16.mxu1 %v6115_v28 }
 0x9ff   :  { %5253 = vmatpush3.bf16.msra.mxu1 %v6475_v21 }
 0xa00   :  { %5266 = vmatprep.subr.bf16.mxu1 %v6115_v28 }
 0xabd   :  { %v1213_v19 = vpop.f32.mrb[24].mxu1 }
 0xabe   :  { %v5216_v20 = vpop.f32.mrb[25].mxu1 }
 0xabf   :  { %v1216_v23 = vpop.f32.mrb[26].mxu1 }
 0xac0   :  { %v1220_v24 = vpack.c.bf16 %v1216_v23, %v1213_v19  ;;  %v5217_v27 = vpop.f32.mrb[27].mxu1 }
 0xac2   :  { %5223 = vmatmul.mubr.msk.bf16.vlgmr.msra.gmra.mrb[28].mxu0 %vm565_vm1, %v1220_v24 }
 0xac3   :  { %5233 = vmatpush3.bf16.msra.mxu0 %v6440_v37  ;;  %5234 = vmatprep.mubr.msk.bf16.mxu0 %vm6116_vm0, %v6115_v28 }
 0xac4   :  { %5244 = vmatprep.subr.bf16.mxu0 %v6115_v28 }
 0xac5   :  { %v1321_v21 = vpop.f32.mrb[28].mxu1 }
 0xac6   :  { %v5230_v25 = vpop.f32.mrb[29].mxu1  ;;  %v1328_v26 = vsel %vm613_vm2, %v1321_v21, -inf }
 0xac7   :  { %1329 = vmax.xlane.f32.xlu1 %v1328_v26  ;;  %v1324_v22 = vpop.f32.mrb[30].mxu1 }
 0xac8   :  { %v5231_v29 = vpop.f32.mrb[31].mxu1  ;;  %v1331_v31 = vsel %vm613_vm2, %v1324_v22, -inf }
 0xac9   :  { %1332 = vmax.xlane.f32.xlu0 %v1331_v31 }
 0xacd   :  { %v1442_v33 = vpop.f32.mrb[32].mxu1 }
 0xace   :  { %v5242_v34 = vpop.f32.mrb[33].mxu1  ;;  %v1449_v32 = vsel %vm613_vm2, %v1442_v33, -inf }
 0xacf   :  { %1450 = vmax.xlane.f32.xlu0 %v1449_v32  ;;  %v1445_v36 = vpop.f32.mrb[34].mxu1 }
 0xad0   :  { %v5243_v40 = vpop.f32.mrb[35].mxu1  ;;  %v1452_v42 = vsel %vm613_vm2, %v1445_v36, -inf }
 0xad3   :  { %1453 = vmax.xlane.f32.xlu0 %v1452_v42 }
 0xb54   :  { %v1330_v44 = vpop.xlane.xlu1 %1329 }
 0xb55   :  { %v1334_v46 = vsub.f32 %v1321_v21, %v1330_v44 }
 0xb56   :  { %v1333_v47 = vpop.xlane.xlu0 %1332 }
 0xb57   :  { %v1336_v48 = vmul.f32 1.442695, %v1334_v46  ;;  %v1335_v49 = vsub.f32 %v1324_v22, %v1333_v47 }
 0xb59   :  { %5709 = vpow2.f32 %v1336_v48  ;;  %v1338_v50 = vmul.f32 1.442695, %v1335_v49 }
 0xb5b   :  { %5711 = vpow2.f32 %v1338_v50 }
 0xb5c   :  { %v1451_v51 = vpop.xlane.xlu0 %1450 }
 0xb5d   :  { %v1455_v52 = vsub.f32 %v1442_v33, %v1451_v51 }
 0xb5f   :  { %v1457_v53 = vmul.f32 1.442695, %v1455_v52 }
 0xb60   :  { %v1454_v54 = vpop.xlane.xlu0 %1453 }
 0xb61   :  { %5713 = vpow2.f32 %v1457_v53  ;;  %v1456_v55 = vsub.f32 %v1445_v36, %v1454_v54 }
 0xb63   :  { %v5710_v56 = vpop.eup %5709  ;;  %v1459_v57 = vmul.f32 1.442695, %v1456_v55 }
 0xb64   :  { %v1340_v58 = vsel %vm613_vm2, %v5710_v56, 0.0 }
 0xb65   :  { %v5712_v59 = vpop.eup %5711  ;;  %5715 = vpow2.f32 %v1459_v57  ;;  %1341 = vadd.xlane.f32.xlu1 %v1340_v58 }
 0xb66   :  { %v1343_v60 = vsel %vm613_vm2, %v5712_v59, 0.0 }
 0xb67   :  { %1344 = vadd.xlane.f32.xlu0 %v1343_v60 }
 0xb6b   :  { %v5714_v61 = vpop.eup %5713 }
 0xb6c   :  { %v1461_v63 = vsel %vm613_vm2, %v5714_v61, 0.0 }
 0xb6d   :  { %1462 = vadd.xlane.f32.xlu1 %v1461_v63 }
 0xb6f   :  { %v5716_v1 = vpop.eup %5715 }
 0xb70   :  { %v1464_v4 = vsel %vm613_vm2, %v5716_v1, 0.0 }
 0xb71   :  { %1465 = vadd.xlane.f32.xlu0 %v1464_v4 }
 0xb7e   :  { %1473 = vrot.lane.b32.xlu1 %v6440_v37, %s6117_s11 }
 0xb82   :  { %1609 = vrot.lane.b32.xlu1 %v6446_v43, %s7323_s24 }
 0xb87   :  { %1611 = vrot.lane.b32.xlu0 %v6448_v45, %s7323_s24 }
 0xb95   :  { %v1270_v5 = vpop.f32.mrb[28].mxu0 }
 0xb96   :  { %v6601_v7 = vadd.f32 %v1270_v5, %v6550_v3  ;;  %v5224_v39 = vpop.f32.mrb[29].mxu0 }
 0xb97   :  { %v1273_v8 = vpop.f32.mrb[30].mxu0 }
 0xb98   :  { %v6604_v9 = vadd.f32 %v1273_v8, %v6555_v6  ;;  %v5225_v62 = vpop.f32.mrb[31].mxu0 }
 0xbf2   :  { %v1342_v10 = vpop.xlane.xlu1 %1341 }
 0xbf3   :  { %5717 = vrcp.f32 %v1342_v10 }
 0xbf4   :  { %v1345_v11 = vpop.xlane.xlu0 %1344 }
 0xbf5   :  { %5719 = vrcp.f32 %v1345_v11 }
 0xbfa   :  { %v1463_v12 = vpop.xlane.xlu1 %1462 }
 0xbfb   :  { %5721 = vrcp.f32 %v1463_v12 }
 0xbfd   :  { %v5718_v13 = vpop.eup %5717 }
 0xbfe   :  { %v1466_v2 = vpop.xlane.xlu0 %1465  ;;  %v1348_v15 = vmul.f32 %v5718_v13, %v5710_v56  ;;  %v1474_v19 = vpop.permute.xlu1 %1473 }
 0xbff   :  { %v5720_v14 = vpop.eup %5719  ;;  %5723 = vrcp.f32 %v1466_v2 }
 0xc00   :  { %v1349_v16 = vmul.f32 %v5720_v14, %v5712_v59 }
 0xc02   :  { %v1350_v3 = vpack.c.bf16 %v1349_v16, %v1348_v15  ;;  %v1612_v33 = vpop.permute.xlu0 %1611  ;;  %v1610_v40 = vpop.permute.xlu1 %1609 }
 0xc04   :  { %5235 = vmatmul.mubr.msk.bf16.vlgmr.msra.gmra.mrb[32].mxu0 %vm613_vm2, %v1350_v3 }
 0xc05   :  { %5245 = vmatpush3.bf16.msra.mxu0 %v1474_v19  ;;  %5246 = vmatprep.mubr.msk.bf16.mxu0 %vm6116_vm0, %v6115_v28  ;;  %v5722_v6 = vpop.eup %5721 }
 0xc06   :  { %5258 = vmatprep.subr.bf16.mxu0 %v6115_v28  ;;  %v1469_v23 = vmul.f32 %v5722_v6, %v5714_v61 }
 0xc09   :  { %v5724_v20 = vpop.eup %5723 }
 0xc0a   :  { %v1470_v24 = vmul.f32 %v5724_v20, %v5716_v1 }
 0xc0c   :  { %v1471_v27 = vpack.c.bf16 %v1470_v24, %v1469_v23 }
 0xc0e   :  { %5247 = vmatmul.mubr.msk.bf16.vlgmr.msra.gmra.mrb[36].mxu0 %vm613_vm2, %v1471_v27 }
 0xc0f   :  { %5259 = vmatpush3.bf16.msra.mxu0 %v6481_v38  ;;  %5262 = vmatprep.mubr.msk.bf16.mxu0 %vm6116_vm0, %v6115_v28 }
 0xc10   :  { %5260 = vmatprep.subr.bf16.mxu0 %v6115_v28 }
 0xc13   :  { %5261 = vmatpush3.bf16.msra.mxu0 %v6485_v41  ;;  %v1617_v41 = vsel %vm565_vm1, %v1612_v33, 0 }
 0xc14   :  { %5272 = vmatprep.subr.bf16.mxu0 %v6115_v28 }
 0xcd7   :  { %v1388_v21 = vpop.f32.mrb[32].mxu0 }
 0xcd8   :  { %v5236_v25 = vpop.f32.mrb[33].mxu0 }
 0xcd9   :  { %v1391_v26 = vpop.f32.mrb[34].mxu0 }
 0xcda   :  { %v1395_v22 = vpack.c.bf16 %v1391_v26, %v1388_v21  ;;  %v5237_v29 = vpop.f32.mrb[35].mxu0 }
 0xcdb   :  { %v6669_v29 = vld [vmem:[%s7278_s6] ss:$0 sm:$0xff] }
 0xcdc   :  { %5263 = vmatmul.mubr.msk.bf16.vlgmr.msra.gmra.mrb[40].mxu0 %vm565_vm1, %v1395_v22 }
 0xcdd   :  { %5274 = vmatprep.mubr.msk.bf16.mxu0 %vm6116_vm0, %v6115_v28 }
 0xce1   :  { %v1513_v38 = vpop.f32.mrb[36].mxu0 }
 0xce2   :  { %v5248_v31 = vpop.f32.mrb[37].mxu0 }
 0xce3   :  { %v1516_v34 = vpop.f32.mrb[38].mxu0 }
 0xce4   :  { %v1520_v32 = vpack.c.bf16 %v1516_v34, %v1513_v38  ;;  %v5249_v36 = vpop.f32.mrb[39].mxu0 }
 0xce6   :  { %5255 = vmatmul.mubr.msk.bf16.vlgmr.msra.gmra.mrb[36].mxu1 %vm565_vm1, %v1520_v32 }
 0xce7   :  { %5267 = vmatpush3.bf16.xpose.msra.mxu1 %v1617_v41  ;;  %5268 = vmatprep.mubr.msk.bf16.mxu1 %vm6116_vm0, %v6115_v28 }
 0xce8   :  { %5278 = vmatprep.subr.bf16.mxu1 %v6115_v28 }
 0xcee   :  { %5269 = vmatmul.mubr.msk.bf16.vlgmr.msra.gmra.mrb[40].mxu1 %vm565_vm1, %v1610_v40 }
 0xcef   :  { %5279 = vmatpush3.bf16.msra.mxu1 %v6518_v30  ;;  %5282 = vmatprep.mubr.msk.bf16.mxu1 %vm6116_vm0, %v6115_v28 }
 0xcf0   :  { %5280 = vmatprep.subr.bf16.mxu1 %v6115_v28 }
 0xcf3   :  { %5281 = vmatpush3.bf16.msra.mxu1 %v6530_v35 }
 0xcf4   :  { %5292 = vmatprep.subr.bf16.mxu1 %v6115_v28 }
 0xdaf   :  { %v1602_v42 = vpop.f32.mrb[40].mxu0 }
 0xdb0   :  { %v5264_v44 = vpop.f32.mrb[41].mxu0 }
 0xdb1   :  { %v1605_v46 = vpop.f32.mrb[42].mxu0 }
 0xdb2   :  { %v5265_v47 = vpop.f32.mrb[43].mxu0 }
 0xdb3   :  { %v6680_v47 = vld [vmem:[#allocation6 + $0x8] sm:$0xff] }
 0xdb9   :  { %v1558_v48 = vpop.f32.mrb[36].mxu1 }
 0xdba   :  { %v6632_v49 = vadd.f32 %v1602_v42, %v1558_v48  ;;  %v5256_v50 = vpop.f32.mrb[37].mxu1 }
 0xdbb   :  { %v1561_v51 = vpop.f32.mrb[38].mxu1  ;;  %v1979_v50 = vmul.f32 %v6680_v47, %v6680_v47 }
 0xdbc   :  { %v6634_v52 = vadd.f32 %v1605_v46, %v1561_v51  ;;  %v5257_v30 = vpop.f32.mrb[39].mxu1  ;;  %v6677_v46 = vld [vmem:[#allocation6] sm:$0xff]  ;;  %v5862_v51 = vld [vmem:[#allocation3 + $0x8] sm:$0xff] }
 0xdbd   :  { %v1978_v48 = vmul.f32 %v6677_v46, %v6677_v46  ;;  %v1952_v30 = vadd.f32 %v5862_v51, %v6604_v9 }
 0xdc1   :  { %v1653_v53 = vpop.f32.mrb[40].mxu1 }
 0xdc2   :  { %v5270_v54 = vpop.f32.mrb[41].mxu1  ;;  %v1660_v55 = vsel %vm613_vm2, %v1653_v53, -inf }
 0xdc3   :  { %1661 = vmax.xlane.f32.xlu1 %v1660_v55  ;;  %v1656_v35 = vpop.f32.mrb[42].mxu1 }
 0xdc4   :  { %v5271_v56 = vpop.f32.mrb[43].mxu1  ;;  %v1663_v57 = vsel %vm613_vm2, %v1656_v35, -inf }
 0xdc5   :  { %1664 = vmax.xlane.f32.xlu0 %v1663_v57 }
 0xe50   :  { %v1662_v58 = vpop.xlane.xlu1 %1661 }
 0xe51   :  { %v1666_v59 = vsub.f32 %v1653_v53, %v1662_v58  ;;  %v6689_v53 = vadd.f32 %v6669_v29, %v1952_v30 }
 0xe52   :  { %v1665_v60 = vpop.xlane.xlu0 %1664 }
 0xe53   :  { %v1668_v61 = vmul.f32 1.442695, %v1666_v59  ;;  %v1667_v63 = vsub.f32 %v1656_v35, %v1665_v60  ;;  %v2057_v55 = vmul.f32 %v6689_v53, %v6689_v53 }
 0xe55   :  { %5725 = vpow2.f32 %v1668_v61  ;;  %v1670_v1 = vmul.f32 1.442695, %v1667_v63 }
 0xe57   :  { %5727 = vpow2.f32 %v1670_v1 }
 0xe5f   :  { %v5726_v4 = vpop.eup %5725 }
 0xe60   :  { %v1672_v5 = vsel %vm613_vm2, %v5726_v4, 0.0 }
 0xe61   :  { %v5728_v39 = vpop.eup %5727  ;;  %1673 = vadd.xlane.f32.xlu0 %v1672_v5 }
 0xe62   :  { %v1675_v8 = vsel %vm613_vm2, %v5728_v39, 0.0 }
 0xe63   :  { %1676 = vadd.xlane.f32.xlu1 %v1675_v8 }
 0xe74   :  { %1779 = vrot.lane.b32.xlu1 %v6448_v45, %s6118_s17 }
 0xe77   :  { %1683 = vrot.lane.b32.xlu0 %v6440_v37, %s7323_s24 }
 0xe78   :  { %1777 = vrot.lane.b32.xlu1 %v6446_v43, %s6118_s17 }
 0xeee   :  { %v1674_v62 = vpop.xlane.xlu0 %1673 }
 0xeef   :  { %5729 = vrcp.f32 %v1674_v62 }
 0xef0   :  { %v1677_v10 = vpop.xlane.xlu1 %1676 }
 0xef1   :  { %5731 = vrcp.f32 %v1677_v10 }
 0xef2   :  { %v1684_v11 = vpop.permute.xlu0 %1683 }
 0xef3   :  { %5273 = vmatpush3.bf16.msra.mxu0 %v1684_v11 }
 0xef4   :  { %5286 = vmatprep.subr.bf16.mxu0 %v6115_v28  ;;  %v1780_v15 = vpop.permute.xlu1 %1779 }
 0xef5   :  { %v1785_v16 = vsel %vm565_vm1, %v1780_v15, 0 }
 0xef8   :  { %v1778_v43 = vpop.permute.xlu1 %1777 }
 0xef9   :  { %v5730_v12 = vpop.eup %5729 }
 0xefa   :  { %v1680_v2 = vmul.f32 %v5730_v12, %v5726_v4 }
 0xefb   :  { %v5732_v13 = vpop.eup %5731 }
 0xefc   :  { %v1681_v14 = vmul.f32 %v5732_v13, %v5728_v39 }
 0xefe   :  { %v1682_v45 = vpack.c.bf16 %v1681_v14, %v1680_v2 }
 0xf00   :  { %5275 = vmatmul.mubr.msk.bf16.vlgmr.msra.gmra.mrb[44].mxu0 %vm613_vm2, %v1682_v45 }
 0xf01   :  { %5287 = vmatpush3.bf16.xpose.msra.mxu0 %v1785_v16  ;;  %5288 = vmatprep.mubr.msk.bf16.mxu0 %vm6116_vm0, %v6115_v28 }
 0xf02   :  { %5298 = vmatprep.subr.bf16.mxu0 %v6115_v28 }
 0xf08   :  { %5289 = vmatmul.mubr.msk.bf16.vlgmr.msra.gmra.mrb[48].mxu0 %vm565_vm1, %v1778_v43 }
 0xf09   :  { %5299 = vmatpush3.bf16.msra.mxu0 %v6547_v0  ;;  %5302 = vmatprep.mubr.msk.bf16.mxu0 %vm6116_vm0, %v6115_v28 }
 0xf0a   :  { %5300 = vmatprep.subr.bf16.mxu0 %v6115_v28 }
 0xf0d   :  { %5301 = vmatpush3.bf16.msra.mxu0 %v6577_v18  ;;  %v5861_v18 = vld [vmem:[#allocation3] sm:$0xff] }
 0xf0e   :  { %v1951_v22 = vadd.f32 %v5861_v18, %v6601_v7 }
 0xf10   :  { %v6672_v38 = vadd.f32 %v6669_v29, %v1951_v22 }
 0xf12   :  { %v2056_v54 = vmul.f32 %v6672_v38, %v6672_v38 }
 0xfd3   :  { %v1723_v3 = vpop.f32.mrb[44].mxu0 }
 0xfd4   :  { %v5276_v19 = vpop.f32.mrb[45].mxu0 }
 0xfd5   :  { %v1726_v6 = vpop.f32.mrb[46].mxu0 }
 0xfd6   :  { %v1730_v20 = vpack.c.bf16 %v1726_v6, %v1723_v3  ;;  %v5277_v23 = vpop.f32.mrb[47].mxu0 }
 0xfd8   :  { %5283 = vmatmul.mubr.msk.bf16.vlgmr.msra.gmra.mrb[44].mxu1 %vm565_vm1, %v1730_v20 }
 0xfd9   :  { %5294 = vmatprep.mubr.msk.bf16.mxu1 %vm6116_vm0, %v6115_v28 }
 0xfdb   :  { %v1821_v24 = vpop.f32.mrb[48].mxu0 }
 0xfdc   :  { %v5290_v27 = vpop.f32.mrb[49].mxu0  ;;  %v1828_v0 = vsel %vm613_vm2, %v1821_v24, -inf }
 0xfdd   :  { %1829 = vmax.xlane.f32.xlu1 %v1828_v0  ;;  %v1824_v21 = vpop.f32.mrb[50].mxu0 }
 0xfde   :  { %v5291_v25 = vpop.f32.mrb[51].mxu0  ;;  %v1831_v26 = vsel %vm613_vm2, %v1824_v21, -inf }
 0xfdf   :  { %1832 = vmax.xlane.f32.xlu0 %v1831_v26 }
 0xfee   :  { %1851 = vrot.lane.b32.xlu1 %v6440_v37, %s6118_s17 }
0x1012   :  { %2044 = vadd.xlane.f32.xlu1 %v6672_v38 }
0x106a   :  { %v1830_v31 = vpop.xlane.xlu1 %1829 }
0x106b   :  { %v1834_v33 = vsub.f32 %v1821_v24, %v1830_v31 }
0x106c   :  { %v1833_v34 = vpop.xlane.xlu0 %1832 }
0x106d   :  { %v1836_v32 = vmul.f32 1.442695, %v1834_v33  ;;  %v1835_v36 = vsub.f32 %v1824_v21, %v1833_v34 }
0x106e   :  { %v1852_v41 = vpop.permute.xlu1 %1851 }
0x106f   :  { %5733 = vpow2.f32 %v1836_v32  ;;  %v1838_v37 = vmul.f32 1.442695, %v1835_v36  ;;  %5293 = vmatpush3.bf16.msra.mxu1 %v1852_v41  ;;  %v6715_v36 = vld [vmem:[%s7281_s9] ss:$0 sm:$0xff] }
0x1071   :  { %5735 = vpow2.f32 %v1838_v37 }
0x1079   :  { %v5734_v7 = vpop.eup %5733 }
0x107a   :  { %v1840_v40 = vsel %vm613_vm2, %v5734_v7, 0.0 }
0x107b   :  { %v5736_v42 = vpop.eup %5735  ;;  %1841 = vadd.xlane.f32.xlu0 %v1840_v40 }
0x107c   :  { %v1843_v44 = vsel %vm613_vm2, %v5736_v42, 0.0 }
0x107f   :  { %1844 = vadd.xlane.f32.xlu0 %v1843_v44 }
0x1083   :  { %1966 = vadd.xlane.f32.xlu0 %v6677_v46 }
0x1087   :  { %1968 = vadd.xlane.f32.xlu0 %v6680_v47 }
0x108b   :  { %1982 = vadd.xlane.f32.xlu0 %v1978_v48 }
0x108f   :  { %1984 = vadd.xlane.f32.xlu0 %v1979_v50 }
0x1093   :  { %2046 = vadd.xlane.f32.xlu0 %v6689_v53 }
0x1097   :  { %2060 = vadd.xlane.f32.xlu0 %v2056_v54 }
0x109b   :  { %2062 = vadd.xlane.f32.xlu0 %v2057_v55 }
0x109f   :  { %v2045_v45 = vpop.xlane.xlu1 %2044 }
0x10a0   :  { %v2052_v3 = vmul.f32 0.0078125, %v2045_v45 }
0x10a2   :  { %v2072_v6 = vmul.f32 %v2052_v3, %v2052_v3  ;;  %v2084_v33 = vsub.f32 %v6672_v38, %v2052_v3  ;;  %v5563_v3 = vld [vmem:[#allocation12 + $0x44] ss:$8 sps:$4 sm:$0xff]  }
0x10ab   :  { %v1768_v35 = vpop.f32.mrb[44].mxu1 }
0x10ac   :  { %v6697_v56 = vadd.f32 %v1768_v35, %v6632_v49  ;;  %v5284_v57 = vpop.f32.mrb[45].mxu1 }
0x10ad   :  { %v1771_v9 = vpop.f32.mrb[46].mxu1 }
0x10ae   :  { %v6700_v58 = vadd.f32 %v1771_v9, %v6634_v52  ;;  %v5285_v59 = vpop.f32.mrb[47].mxu1 }
0x1108   :  { %v1842_v60 = vpop.xlane.xlu0 %1841 }
0x1109   :  { %5737 = vrcp.f32 %v1842_v60 }
0x110c   :  { %v1845_v61 = vpop.xlane.xlu0 %1844 }
0x110d   :  { %5739 = vrcp.f32 %v1845_v61 }
0x1110   :  { %v1967_v63 = vpop.xlane.xlu0 %1966 }
0x1111   :  { %v6702_v1 = vmul.f32 0.0078125, %v1967_v63 }
0x1113   :  { %v5738_v5 = vpop.eup %5737  ;;  %v1994_v49 = vmul.f32 %v6702_v1, %v6702_v1 }
0x1114   :  { %v1969_v4 = vpop.xlane.xlu0 %1968  ;;  %v1848_v62 = vmul.f32 %v5738_v5, %v5734_v7 }
0x1115   :  { %v6706_v8 = vmul.f32 0.0078125, %v1969_v4  ;;  %v2006_v4 = vsub.f32 %v6677_v46, %v6702_v1  ;;  %v6741_v46 = vld [vmem:[%s7280_s8] ss:$0 sm:$0xff] }
0x1117   :  { %v5740_v39 = vpop.eup %5739  ;;  %v1995_v13 = vmul.f32 %v6706_v8, %v6706_v8  ;;  %v2007_v5 = vsub.f32 %v6680_v47, %v6706_v8  ;;  %v5555_v8 = vld [vmem:[#allocation12 + $0x20] ss:$8 sps:$4 sm:$0xff]  }
0x1118   :  { %v1849_v10 = vmul.f32 %v5740_v39, %v5736_v42  ;;  %v1983_v52 = vpop.xlane.xlu0 %1982  ;;  %v6722_v42 = vld [vmem:[%s7282_s10] ss:$0 sm:$0xff] }
0x1119   :  { %v1990_v11 = vmul.f32 0.0078125, %v1983_v52 }
0x111a   :  { %v1850_v12 = vpack.c.bf16 %v1849_v10, %v1848_v62  ;;  %v5551_v62 = vld [vmem:[#allocation12 + $0x4] ss:$8 sps:$4 sm:$0xff]  }
0x111b   :  { %v1998_v2 = vsub.f32 %v1990_v11, %v1994_v49  ;;  %v5549_v49 = vld [vmem:[#allocation12] ss:$8 sps:$4 sm:$0xff]   ;;  %v5554_v11 = vld [vmem:[#allocation12 + $0x14] ss:$8 sps:$4 sm:$0xff]   ;;  %2335 = vmatprep.subr.bf16.mxu0 %v5551_v62 }
0x111c   :  { %5295 = vmatmul.mubr.msk.bf16.vlgmr.msra.gmra.mrb[48].mxu1 %vm613_vm2, %v1850_v12  ;;  %v1985_v14 = vpop.xlane.xlu0 %1984  ;;  %v5552_v12 = vld [vmem:[#allocation12 + $0x10] ss:$8 sps:$4 sm:$0xff]  }
0x111d   :  { %v1991_v15 = vmul.f32 0.0078125, %v1985_v14  ;;  %v2002_v9 = vmax.f32 %v1998_v2, 0.0  ;;  %v6736_v2 = vld [vmem:[%s7279_s7] ss:$0 sm:$0xff]  ;;  %v5560_v14 = vld [vmem:[#allocation12 + $0x34] ss:$8 sps:$4 sm:$0xff]  }
0x111f   :  { %v1999_v16 = vsub.f32 %v1991_v15, %v1995_v13  ;;  %v2010_v60 = vadd.f32 1e-05, %v2002_v9  ;;  %v5557_v13 = vld [vmem:[#allocation12 + $0x24] ss:$8 sps:$4 sm:$0xff]  }
0x1120   :  { %v2047_v43 = vpop.xlane.xlu0 %2046 }
0x1121   :  { %v2053_v20 = vmul.f32 0.0078125, %v2047_v43  ;;  %v2003_v59 = vmax.f32 %v1999_v16, 0.0  ;;  %v5558_v43 = vld [vmem:[#allocation12 + $0x30] ss:$8 sps:$4 sm:$0xff]  }
0x1123   :  { %v2073_v0 = vmul.f32 %v2053_v20, %v2053_v20  ;;  %v2085_v41 = vsub.f32 %v6689_v53, %v2053_v20  ;;  %v2011_v61 = vadd.f32 1e-05, %v2003_v59  ;;  %v5564_v20 = vld [vmem:[#allocation12 + $0x50] ss:$8 sps:$4 sm:$0xff]  }
0x1124   :  { %v2061_v19 = vpop.xlane.xlu0 %2060 }
0x1125   :  { %v2068_v23 = vmul.f32 0.0078125, %v2061_v19  ;;  %v5561_v19 = vld [vmem:[#allocation12 + $0x40] ss:$8 sps:$4 sm:$0xff]  }
0x1127   :  { %v2076_v24 = vsub.f32 %v2068_v23, %v2072_v6  ;;  %v5566_v6 = vld [vmem:[#allocation12 + $0x54] ss:$8 sps:$4 sm:$0xff]   ;;  %v5569_v23 = vld [vmem:[#allocation12 + $0x64] ss:$8 sps:$4 sm:$0xff]  }
0x1128   :  { %v2063_v27 = vpop.xlane.xlu0 %2062 }
0x1129   :  { %v2080_v21 = vmax.f32 %v2076_v24, 0.0  ;;  %v2069_v25 = vmul.f32 0.0078125, %v2063_v27  ;;  %v5567_v24 = vld [vmem:[#allocation12 + $0x60] ss:$8 sps:$4 sm:$0xff]   ;;  %v5572_v27 = vld [vmem:[#allocation12 + $0x74] ss:$8 sps:$4 sm:$0xff]  }
0x112b   :  { %v2088_v26 = vadd.f32 1e-05, %v2080_v21  ;;  %v2077_v18 = vsub.f32 %v2069_v25, %v2073_v0  ;;  %v5570_v0 = vld [vmem:[#allocation12 + $0x70] ss:$8 sps:$4 sm:$0xff]  }
0x112d   :  { %5741 = vrsqrt.f32 %v2088_v26  ;;  %v2081_v22 = vmax.f32 %v2077_v18, 0.0 }
0x112f   :  { %v2089_v31 = vadd.f32 1e-05, %v2081_v22  ;;  %v5863_v22 = vld [vmem:[#allocation3 + $0x10] sm:$0xff] }
0x1131   :  { %5743 = vrsqrt.f32 %v2089_v31 }
0x1132   :  { %5745 = vrsqrt.f32 %v2010_v60 }
0x1133   :  { %5747 = vrsqrt.f32 %v2011_v61 }
0x1137   :  { %v5742_v34 = vpop.eup %5741 }
0x1138   :  { %v2096_v32 = vmul.f32 %v5742_v34, %v2084_v33 }
0x113a   :  { %v2107_v40 = vmul.f32 %v6715_v36, %v2096_v32 }
0x113b   :  { %v5744_v37 = vpop.eup %5743 }
0x113c   :  { %v2097_v7 = vmul.f32 %v5744_v37, %v2085_v41  ;;  %v2118_v48 = vadd.f32 %v6722_v42, %v2107_v40  ;;  %v5746_v63 = vpop.eup %5745  ;;  %v5864_v41 = vld [vmem:[#allocation3 + $0x18] sm:$0xff]  ;;  %v5573_v40 = vld [vmem:[#allocation11] sm:$0xff]  }
0x113d   :  { %v5748_v39 = vpop.eup %5747  ;;  %v2018_v10 = vmul.f32 %v5746_v63, %v2006_v4  ;;  %5306 = vmatprep.subr.bf16.mxu1 %v5573_v40 }
0x113e   :  { %v2108_v44 = vmul.f32 %v6715_v36, %v2097_v7  ;;  %v2019_v52 = vmul.f32 %v5748_v39, %v2007_v5  ;;  %5307 = vmatpush3.bf16.msra.mxu1 %v5573_v40 }
0x113f   :  { %v2029_v47 = vmul.f32 %v6736_v2, %v2018_v10 }
0x1140   :  { %v2119_v50 = vadd.f32 %v6722_v42, %v2108_v44  ;;  %v2030_v1 = vmul.f32 %v6736_v2, %v2019_v52  ;;  %v5574_v44 = vld [vmem:[#allocation11 + $0x8] sm:$0xff]  }
0x1141   :  { %v2040_v15 = vadd.f32 %v6741_v46, %v2029_v47  ;;  %5308 = vmatprep.subr.bf16.mxu1 %v5574_v44 }
0x1142   :  { %v2122_v51 = vpack.c.bf16 %v2119_v50, %v2118_v48  ;;  %v2041_v45 = vadd.f32 %v6741_v46, %v2030_v1  ;;  %5309 = vmatpush3.bf16.msra.mxu1 %v5574_v44  ;;  %v5575_v48 = vld [vmem:[#allocation11 + $0x10] sm:$0xff]   ;;  %v5577_v50 = vld [vmem:[#allocation11 + $0x20] sm:$0xff]  }
0x1143   :  { %5310 = vmatprep.subr.bf16.mxu1 %v5575_v48 }
0x1144   :  { %5322 = vmatprep.mubr.bf16.mxu1 %v2122_v51  ;;  %v2237_v16 = vpack.c.bf16 %v2041_v45, %v2040_v15  ;;  %v5578_v51 = vld [vmem:[#allocation11 + $0x28] sm:$0xff]  }
0x1146   :  { %5311 = vmatpush3.bf16.msra.mxu1 %v5575_v48 }
0x11ef   :  { %v1891_v30 = vpop.f32.mrb[48].mxu1 }
0x11f0   :  { %v5296_v54 = vpop.f32.mrb[49].mxu1 }
0x11f1   :  { %v1894_v55 = vpop.f32.mrb[50].mxu1  ;;  %v5580_v54 = vld [vmem:[#allocation11 + $0x38] sm:$0xff]  }
0x11f2   :  { %v1898_v35 = vpack.c.bf16 %v1894_v55, %v1891_v30  ;;  %v5297_v57 = vpop.f32.mrb[51].mxu1  ;;  %v5579_v30 = vld [vmem:[#allocation11 + $0x30] sm:$0xff]  }
0x11f3   :  { %v6764_v55 = vld [vmem:[#allocation6 + $0x10] sm:$0xff]  ;;  %v6769_v57 = vld [vmem:[#allocation6 + $0x18] sm:$0xff] }
0x11f4   :  { %5303 = vmatmul.mubr.msk.bf16.vlgmr.msra.gmra.mrb[52].mxu0 %vm565_vm1, %v1898_v35  ;;  %v1980_v35 = vmul.f32 %v6764_v55, %v6764_v55  ;;  %v1981_v9 = vmul.f32 %v6769_v57, %v6769_v57 }
0x11f5   :  { %2367 = vmatprep.mubr.bf16.mxu0 %v6114_v17  ;;  %2336 = vmatpush1.bf16.msra.mxu0 %v5549_v49 }
0x11f6   :  { %2337 = vmatprep.subr.bf16.mxu0 %v5554_v11  ;;  %1986 = vadd.xlane.f32.xlu1 %v1980_v35 }
0x11f9   :  { %2338 = vmatpush1.bf16.msra.mxu0 %v5552_v12 }
0x11fa   :  { %2339 = vmatprep.subr.bf16.mxu0 %v5557_v13 }
0x11fd   :  { %2340 = vmatpush1.bf16.msra.mxu0 %v5555_v8 }
0x11fe   :  { %2341 = vmatprep.subr.bf16.mxu0 %v5560_v14 }
0x1201   :  { %2342 = vmatpush1.bf16.msra.mxu0 %v5558_v43 }
0x1202   :  { %2343 = vmatprep.subr.bf16.mxu0 %v5563_v3 }
0x1205   :  { %2344 = vmatpush1.bf16.msra.mxu0 %v5561_v19 }
0x1206   :  { %2345 = vmatprep.subr.bf16.mxu0 %v5566_v6 }
0x1209   :  { %2346 = vmatpush1.bf16.msra.mxu0 %v5564_v20 }
0x120a   :  { %2347 = vmatprep.subr.bf16.mxu0 %v5569_v23 }
0x120d   :  { %2348 = vmatpush1.bf16.msra.mxu0 %v5567_v24 }
0x120e   :  { %2349 = vmatprep.subr.bf16.mxu0 %v5572_v27 }
0x1211   :  { %2350 = vmatpush1.bf16.msra.mxu0 %v5570_v0 }
0x1212   :  { %5338 = vmatprep.subr.bf16.mxu0 %v6115_v28 }
0x1214   :  { %2368 = vmatmul.mubr.bf16.vlgmr.msra.gmra.mrb[56].mxu0 %v2237_v16 }
0x1215   :  { %2377 = vmatprep.mubr.bf16.mxu0 %v6114_v17 }
0x12c7   :  { %v1936_v21 = vpop.f32.mrb[52].mxu0 }
0x12c8   :  { %v1943_v25 = vadd.f32 %v1936_v21, %v6697_v56  ;;  %v5304_v26 = vpop.f32.mrb[53].mxu0 }
0x12c9   :  { %v1939_v18 = vpop.f32.mrb[54].mxu0 }
0x12ca   :  { %v1953_v31 = vadd.f32 %v5863_v22, %v1943_v25  ;;  %v1944_v33 = vadd.f32 %v1939_v18, %v6700_v58  ;;  %v5305_v34 = vpop.f32.mrb[55].mxu0 }
0x12cc   :  { %v6752_v32 = vadd.f32 %v6669_v29, %v1953_v31  ;;  %v1954_v37 = vadd.f32 %v5864_v41, %v1944_v33  ;;  %v1987_v31 = vpop.xlane.xlu1 %1986 }
0x12cd   :  { %v1992_v34 = vmul.f32 0.0078125, %v1987_v31 }
0x12ce   :  { %2048 = vadd.xlane.f32.xlu0 %v6752_v32  ;;  %v6756_v7 = vadd.f32 %v6669_v29, %v1954_v37  ;;  %v2058_v56 = vmul.f32 %v6752_v32, %v6752_v32  ;;  %v5576_v29 = vld [vmem:[#allocation11 + $0x18] sm:$0xff]  }
0x12cf   :  { %5312 = vmatprep.subr.bf16.mxu1 %v5576_v29 }
0x12d0   :  { %v2059_v58 = vmul.f32 %v6756_v7, %v6756_v7  ;;  %5313 = vmatpush3.bf16.msra.mxu1 %v5576_v29 }
0x12d1   :  { %5314 = vmatprep.subr.bf16.mxu1 %v5577_v50 }
0x12d2   :  { %2050 = vadd.xlane.f32.xlu0 %v6756_v7 }
0x12d4   :  { %5315 = vmatpush3.bf16.msra.mxu1 %v5577_v50 }
0x12d5   :  { %5316 = vmatprep.subr.bf16.mxu1 %v5578_v51 }
0x12d6   :  { %2064 = vadd.xlane.f32.xlu0 %v2058_v56 }
0x12d8   :  { %5317 = vmatpush3.bf16.msra.mxu1 %v5578_v51 }
0x12d9   :  { %5318 = vmatprep.subr.bf16.mxu1 %v5579_v30 }
0x12da   :  { %2066 = vadd.xlane.f32.xlu0 %v2059_v58 }
0x12dc   :  { %5319 = vmatpush3.bf16.msra.mxu1 %v5579_v30 }
0x12dd   :  { %5320 = vmatprep.subr.bf16.mxu1 %v5580_v54 }
0x12de   :  { %1970 = vadd.xlane.f32.xlu0 %v6764_v55 }
0x12e0   :  { %5321 = vmatpush3.bf16.msra.mxu1 %v5580_v54 }
0x12e1   :  { %5326 = vmatprep.subr.bf16.mxu1 %v6115_v28 }
0x12e2   :  { %1972 = vadd.xlane.f32.xlu0 %v6769_v57 }
0x12e6   :  { %1988 = vadd.xlane.f32.xlu0 %v1981_v9 }
0x12e7   :  { %v2369_v59 = vpop.f32.mrb[56].mxu0 }
0x12e8   :  { %v2371_v60 = vpop.f32.mrb[57].mxu0 }
0x12e9   :  { %v2373_v61 = vpop.f32.mrb[58].mxu0 }
0x12ea   :  { %v6774_v63 = vpack.c.bf16 %v2373_v61, %v2369_v59  ;;  %v2375_v4 = vpop.f32.mrb[59].mxu0 }
0x12eb   :  { %v6776_v5 = vpack.c.bf16 %v2375_v4, %v2371_v60 }
0x12ec   :  { %2529 = vrot.lane.b32.xlu1 %v6774_v63, %s6117_s11  ;;  %v2414_v18 = vsel %vm565_vm1, %v6774_v63, 0 }
0x135b   :  { %v2049_v39 = vpop.xlane.xlu0 %2048 }
0x135c   :  { %v2054_v62 = vmul.f32 0.0078125, %v2049_v39 }
0x135e   :  { %v2074_v52 = vmul.f32 %v2054_v62, %v2054_v62  ;;  %v2086_v3 = vsub.f32 %v6752_v32, %v2054_v62  ;;  %v2530_v37 = vpop.permute.xlu1 %2529 }
0x135f   :  { %v2051_v49 = vpop.xlane.xlu0 %2050  ;;  %v2535_v58 = vsel %vm565_vm1, %v2530_v37, 0 }
0x1360   :  { %v2055_v11 = vmul.f32 0.0078125, %v2051_v49  ;;  %5339 = vmatpush3.bf16.xpose.msra.mxu0 %v2535_v58 }
0x1361   :  { %5350 = vmatprep.subr.bf16.mxu0 %v6115_v28 }
0x1362   :  { %v2075_v1 = vmul.f32 %v2055_v11, %v2055_v11  ;;  %v2087_v20 = vsub.f32 %v6756_v7, %v2055_v11 }
0x1363   :  { %v2065_v10 = vpop.xlane.xlu0 %2064 }
0x1364   :  { %v2070_v12 = vmul.f32 0.0078125, %v2065_v10 }
0x1366   :  { %v2078_v13 = vsub.f32 %v2070_v12, %v2074_v52 }
0x1367   :  { %v2067_v47 = vpop.xlane.xlu0 %2066 }
0x1368   :  { %v2082_v8 = vmax.f32 %v2078_v13, 0.0  ;;  %v2071_v14 = vmul.f32 0.0078125, %v2067_v47 }
0x136a   :  { %v2090_v15 = vadd.f32 1e-05, %v2082_v8  ;;  %v2079_v45 = vsub.f32 %v2071_v14, %v2075_v1 }
0x136b   :  { %v1971_v22 = vpop.xlane.xlu0 %1970 }
0x136c   :  { %5749 = vrsqrt.f32 %v2090_v15  ;;  %v2083_v16 = vmax.f32 %v2079_v45, 0.0  ;;  %v1976_v33 = vmul.f32 0.0078125, %v1971_v22 }
0x136e   :  { %v2091_v43 = vadd.f32 1e-05, %v2083_v16  ;;  %v2008_v35 = vsub.f32 %v6764_v55, %v1976_v33 }
0x136f   :  { %v1973_v41 = vpop.xlane.xlu0 %1972 }
0x1370   :  { %5751 = vrsqrt.f32 %v2091_v43  ;;  %v1977_v56 = vmul.f32 0.0078125, %v1973_v41 }
0x1372   :  { %v1997_v40 = vmul.f32 %v1977_v56, %v1977_v56  ;;  %v2009_v60 = vsub.f32 %v6769_v57, %v1977_v56 }
0x1373   :  { %v1989_v48 = vpop.xlane.xlu0 %1988 }
0x1374   :  { %v1993_v50 = vmul.f32 0.0078125, %v1989_v48 }
0x1376   :  { %v5750_v19 = vpop.eup %5749  ;;  %v2001_v51 = vsub.f32 %v1993_v50, %v1997_v40 }
0x1377   :  { %v2098_v6 = vmul.f32 %v5750_v19, %v2086_v3 }
0x1378   :  { %v2005_v30 = vmax.f32 %v2001_v51, 0.0 }
0x1379   :  { %v2109_v27 = vmul.f32 %v6715_v36, %v2098_v6 }
0x137a   :  { %v5752_v23 = vpop.eup %5751  ;;  %v2013_v54 = vadd.f32 1e-05, %v2005_v30 }
0x137b   :  { %v2099_v24 = vmul.f32 %v5752_v23, %v2087_v20  ;;  %v2120_v21 = vadd.f32 %v6722_v42, %v2109_v27 }
0x137d   :  { %v2110_v0 = vmul.f32 %v6715_v36, %v2099_v24  ;;  %v1996_v36 = vmul.f32 %v1976_v33, %v1976_v33 }
0x137f   :  { %v2121_v25 = vadd.f32 %v6722_v42, %v2110_v0  ;;  %v2000_v42 = vsub.f32 %v1992_v34, %v1996_v36 }
0x1381   :  { %v2123_v26 = vpack.c.bf16 %v2121_v25, %v2120_v21  ;;  %v2004_v44 = vmax.f32 %v2000_v42, 0.0 }
0x1383   :  { %5323 = vmatmul.mubr.bf16.vlgmr.msra.gmra.mrb[52].mxu1 %v2123_v26  ;;  %v2012_v29 = vadd.f32 1e-05, %v2004_v44 }
0x1384   :  { %5327 = vmatpush3.bf16.xpose.msra.mxu1 %v2414_v18  ;;  %5328 = vmatprep.mubr.msk.bf16.mxu1 %vm6116_vm0, %v6115_v28 }
0x1385   :  { %5332 = vmatprep.subr.bf16.mxu1 %v6115_v28  ;;  %5753 = vrsqrt.f32 %v2012_v29 }
0x1386   :  { %5755 = vrsqrt.f32 %v2013_v54 }
0x138f   :  { %v5754_v9 = vpop.eup %5753 }
0x1390   :  { %v2020_v59 = vmul.f32 %v5754_v9, %v2008_v35  ;;  %v5756_v4 = vpop.eup %5755 }
0x1391   :  { %v2021_v39 = vmul.f32 %v5756_v4, %v2009_v60 }
0x1392   :  { %v2031_v61 = vmul.f32 %v6736_v2, %v2020_v59 }
0x1393   :  { %v2032_v49 = vmul.f32 %v6736_v2, %v2021_v39 }
0x1394   :  { %v2042_v62 = vadd.f32 %v6741_v46, %v2031_v61 }
0x1395   :  { %v2043_v10 = vadd.f32 %v6741_v46, %v2032_v49  ;;  %v6837_v49 = vld [vmem:[#allocation14 + $0x10] sm:$0xff]  }
0x1397   :  { %v2238_v52 = vpack.c.bf16 %v2043_v10, %v2042_v62  ;;  %v6840_v62 = vld [vmem:[#allocation14 + $0x18] sm:$0xff]  }
0x1399   :  { %2378 = vmatmul.mubr.bf16.gmra.mrb[60].mxu0 %v2238_v52 }
0x139a   :  { %5340 = vmatprep.mubr.msk.bf16.mxu0 %vm6116_vm0, %v6115_v28 }
0x1456   :  { %v5324_v55 = vpop.f32.mrb[52].mxu1 }
0x1457   :  { %v2222_v11 = vpop.f32.mrb[53].mxu1 }
0x1458   :  { %v5325_v12 = vpop.f32.mrb[54].mxu1 }
0x1459   :  { %v6801_v13 = vpack.c.bf16 %v5325_v12, %v5324_v55  ;;  %v2225_v57 = vpop.f32.mrb[55].mxu1 }
0x145a   :  { %v6803_v47 = vpack.c.bf16 %v2225_v57, %v2222_v11 }
0x145c   :  { %2526 = vrot.lane.b32.xlu0 %v6803_v47, %s6117_s11  ;;  %5329 = vmatmul.mubr.msk.bf16.vlgmr.msra.gmra.mrb[56].mxu1 %vm565_vm1, %v6803_v47 }
0x145d   :  { %5333 = vmatpush3.bf16.msra.mxu1 %v6776_v5  ;;  %5334 = vmatprep.mubr.msk.bf16.mxu1 %vm6116_vm0, %v6115_v28 }
0x145e   :  { %5344 = vmatprep.subr.bf16.mxu1 %v6115_v28 }
0x146c   :  { %v2379_v46 = vpop.f32.mrb[60].mxu0 }
0x146d   :  { %v2381_v1 = vpop.f32.mrb[61].mxu0 }
0x146e   :  { %v2383_v8 = vpop.f32.mrb[62].mxu0 }
0x146f   :  { %v6816_v14 = vpack.c.bf16 %v2383_v8, %v2379_v46  ;;  %v2385_v15 = vpop.f32.mrb[63].mxu0  ;;  %v6846_v46 = vld [vmem:[#allocation14] sm:$0xff]   ;;  %v6850_v8 = vld [vmem:[#allocation14 + $0x8] sm:$0xff]  }
0x1470   :  { %v6818_v45 = vpack.c.bf16 %v2385_v15, %v2381_v1 }
0x14ce   :  { %v2527_v2 = vpop.permute.xlu0 %2526 }
0x14cf   :  { %5341 = vmatmul.mubr.msk.bf16.vlgmr.msra.gmra.mrb[64].mxu0 %vm565_vm1, %v2527_v2 }
0x14d0   :  { %5354 = vmatprep.mubr.msk.bf16.mxu0 %vm6116_vm0, %v6115_v28  ;;  %5351 = vmatpush3.bf16.msra.mxu0 %v6837_v49 }
0x14d1   :  { %5352 = vmatprep.subr.bf16.mxu0 %v6115_v28 }
0x14d4   :  { %5353 = vmatpush3.bf16.msra.mxu0 %v6840_v62 }
0x14d5   :  { %5366 = vmatprep.subr.bf16.mxu0 %v6115_v28 }
0x152f   :  { %v2450_v16 = vpop.f32.mrb[56].mxu1 }
0x1530   :  { %v5330_v43 = vpop.f32.mrb[57].mxu1  ;;  %v2457_v3 = vsel %vm613_vm2, %v2450_v16, -inf }
0x1531   :  { %2458 = vmax.xlane.f32.xlu1 %v2457_v3  ;;  %v2453_v19 = vpop.f32.mrb[58].mxu1 }
0x1532   :  { %v5331_v6 = vpop.f32.mrb[59].mxu1  ;;  %v2460_v20 = vsel %vm613_vm2, %v2453_v19, -inf }
0x1533   :  { %2461 = vmax.xlane.f32.xlu0 %v2460_v20 }
0x15a2   :  { %v2571_v23 = vpop.f32.mrb[64].mxu0 }
0x15a3   :  { %v5342_v24 = vpop.f32.mrb[65].mxu0  ;;  %v2578_v27 = vsel %vm613_vm2, %v2571_v23, -inf }
0x15a4   :  { %v2574_v0 = vpop.f32.mrb[66].mxu0  ;;  %2579 = vmax.xlane.f32.xlu1 %v2578_v27 }
0x15a5   :  { %v5343_v21 = vpop.f32.mrb[67].mxu0  ;;  %v2581_v25 = vsel %vm613_vm2, %v2574_v0, -inf }
0x15a6   :  { %2582 = vmax.xlane.f32.xlu0 %v2581_v25 }
0x15be   :  { %v2459_v26 = vpop.xlane.xlu1 %2458 }
0x15bf   :  { %v2463_v18 = vsub.f32 %v2450_v16, %v2459_v26 }
0x15c0   :  { %v2462_v22 = vpop.xlane.xlu0 %2461 }
0x15c1   :  { %v2465_v31 = vmul.f32 1.442695, %v2463_v18  ;;  %v2464_v33 = vsub.f32 %v2453_v19, %v2462_v22 }
0x15c3   :  { %5757 = vpow2.f32 %v2465_v31  ;;  %v2467_v34 = vmul.f32 1.442695, %v2464_v33 }
0x15c5   :  { %5759 = vpow2.f32 %v2467_v34 }
0x15cd   :  { %v5758_v36 = vpop.eup %5757 }
0x15ce   :  { %v2469_v41 = vsel %vm613_vm2, %v5758_v36, 0.0 }
0x15cf   :  { %v5760_v37 = vpop.eup %5759  ;;  %2470 = vadd.xlane.f32.xlu1 %v2469_v41 }
0x15d0   :  { %v2472_v56 = vsel %vm613_vm2, %v5760_v37, 0.0 }
0x15d1   :  { %2473 = vadd.xlane.f32.xlu0 %v2472_v56 }
0x1631   :  { %v2580_v42 = vpop.xlane.xlu1 %2579 }
0x1632   :  { %v2584_v58 = vsub.f32 %v2571_v23, %v2580_v42 }
0x1633   :  { %v2583_v40 = vpop.xlane.xlu0 %2582 }
0x1634   :  { %v2586_v44 = vmul.f32 1.442695, %v2584_v58  ;;  %v2585_v48 = vsub.f32 %v2574_v0, %v2583_v40 }
0x1636   :  { %5761 = vpow2.f32 %v2586_v44  ;;  %v2588_v29 = vmul.f32 1.442695, %v2585_v48 }
0x1638   :  { %5763 = vpow2.f32 %v2588_v29 }
0x1640   :  { %v5762_v50 = vpop.eup %5761 }
0x1641   :  { %v2590_v51 = vsel %vm613_vm2, %v5762_v50, 0.0 }
0x1642   :  { %v5764_v30 = vpop.eup %5763  ;;  %2591 = vadd.xlane.f32.xlu1 %v2590_v51 }
0x1643   :  { %v2593_v54 = vsel %vm613_vm2, %v5764_v30, 0.0 }
0x1644   :  { %2594 = vadd.xlane.f32.xlu0 %v2593_v54 }
0x1653   :  { %2602 = vrot.lane.b32.xlu1 %v6776_v5, %s6117_s11 }
0x1657   :  { %2762 = vrot.lane.b32.xlu1 %v6803_v47, %s7323_s24 }
0x165a   :  { %2764 = vrot.lane.b32.xlu0 %v6774_v63, %s7323_s24 }
0x165c   :  { %v2471_v35 = vpop.xlane.xlu1 %2470 }
0x165d   :  { %5765 = vrcp.f32 %v2471_v35 }
0x165e   :  { %v2474_v9 = vpop.xlane.xlu0 %2473 }
0x165f   :  { %5767 = vrcp.f32 %v2474_v9 }
0x1667   :  { %v5766_v59 = vpop.eup %5765 }
0x1668   :  { %v2477_v61 = vmul.f32 %v5766_v59, %v5758_v36 }
0x1669   :  { %v5768_v60 = vpop.eup %5767 }
0x166a   :  { %v2478_v4 = vmul.f32 %v5768_v60, %v5760_v37 }
0x166c   :  { %v2479_v39 = vpack.c.bf16 %v2478_v4, %v2477_v61 }
0x166e   :  { %5335 = vmatmul.mubr.msk.bf16.vlgmr.msra.gmra.mrb[60].mxu1 %vm613_vm2, %v2479_v39  ;;  %v6882_v39 = vld [vmem:[#allocation14 + $0x20] sm:$0xff]  }
0x166f   :  { %5346 = vmatprep.mubr.msk.bf16.mxu1 %vm6116_vm0, %v6115_v28 }
0x16cf   :  { %v2592_v10 = vpop.xlane.xlu1 %2591 }
0x16d0   :  { %5769 = vrcp.f32 %v2592_v10 }
0x16d1   :  { %v2595_v52 = vpop.xlane.xlu0 %2594 }
0x16d2   :  { %5771 = vrcp.f32 %v2595_v52 }
0x16d3   :  { %v2603_v55 = vpop.permute.xlu1 %2602 }
0x16d4   :  { %5345 = vmatpush3.bf16.msra.mxu1 %v2603_v55 }
0x16d5   :  { %5358 = vmatprep.subr.bf16.mxu1 %v6115_v28  ;;  %v2765_v23 = vpop.permute.xlu0 %2764 }
0x16d6   :  { %v2770_v21 = vsel %vm565_vm1, %v2765_v23, 0 }
0x16d7   :  { %v2763_v25 = vpop.permute.xlu1 %2762 }
0x16da   :  { %v5770_v11 = vpop.eup %5769 }
0x16db   :  { %v2598_v57 = vmul.f32 %v5770_v11, %v5762_v50 }
0x16dc   :  { %v5772_v12 = vpop.eup %5771 }
0x16dd   :  { %v2599_v2 = vmul.f32 %v5772_v12, %v5764_v30 }
0x16df   :  { %v2600_v1 = vpack.c.bf16 %v2599_v2, %v2598_v57 }
0x16e1   :  { %5347 = vmatmul.mubr.msk.bf16.vlgmr.msra.gmra.mrb[64].mxu1 %vm613_vm2, %v2600_v1 }
0x16e2   :  { %5359 = vmatpush3.bf16.msra.mxu1 %v6846_v46  ;;  %5362 = vmatprep.mubr.msk.bf16.mxu1 %vm6116_vm0, %v6115_v28 }
0x16e3   :  { %5360 = vmatprep.subr.bf16.mxu1 %v6115_v28 }
0x16e6   :  { %5361 = vmatpush3.bf16.msra.mxu1 %v6850_v8 }
0x16e7   :  { %5372 = vmatprep.subr.bf16.mxu1 %v6115_v28 }
0x1741   :  { %v2517_v15 = vpop.f32.mrb[60].mxu1 }
0x1742   :  { %v5336_v16 = vpop.f32.mrb[61].mxu1 }
0x1743   :  { %v2520_v43 = vpop.f32.mrb[62].mxu1  ;;  %v6895_v16 = vld [vmem:[#allocation14 + $0x28] sm:$0xff]  }
0x1744   :  { %v2524_v3 = vpack.c.bf16 %v2520_v43, %v2517_v15  ;;  %v5337_v19 = vpop.f32.mrb[63].mxu1 }
0x1746   :  { %5363 = vmatmul.mubr.msk.bf16.vlgmr.msra.gmra.mrb[68].mxu1 %vm565_vm1, %v2524_v3 }
0x1747   :  { %5374 = vmatprep.mubr.msk.bf16.mxu1 %vm6116_vm0, %v6115_v28 }
0x17b4   :  { %v2642_v6 = vpop.f32.mrb[64].mxu1 }
0x17b5   :  { %v5348_v20 = vpop.f32.mrb[65].mxu1 }
0x17b6   :  { %v2645_v24 = vpop.f32.mrb[66].mxu1 }
0x17b7   :  { %v2649_v27 = vpack.c.bf16 %v2645_v24, %v2642_v6  ;;  %v5349_v0 = vpop.f32.mrb[67].mxu1 }
0x17b9   :  { %5355 = vmatmul.mubr.msk.bf16.vlgmr.msra.gmra.mrb[68].mxu0 %vm565_vm1, %v2649_v27 }
0x17ba   :  { %5367 = vmatpush3.bf16.xpose.msra.mxu0 %v2770_v21  ;;  %5368 = vmatprep.mubr.msk.bf16.mxu0 %vm6116_vm0, %v6115_v28 }
0x17bb   :  { %5378 = vmatprep.subr.bf16.mxu0 %v6115_v28 }
0x17c1   :  { %5369 = vmatmul.mubr.msk.bf16.vlgmr.msra.gmra.mrb[72].mxu0 %vm565_vm1, %v2763_v25 }
0x17c2   :  { %5382 = vmatprep.mubr.msk.bf16.mxu0 %vm6116_vm0, %v6115_v28  ;;  %5379 = vmatpush3.bf16.msra.mxu0 %v6882_v39 }
0x17c3   :  { %5380 = vmatprep.subr.bf16.mxu0 %v6115_v28 }
0x17c6   :  { %5381 = vmatpush3.bf16.msra.mxu0 %v6895_v16 }
0x17c7   :  { %5392 = vmatprep.subr.bf16.mxu0 %v6115_v28 }
0x1819   :  { %v2755_v26 = vpop.f32.mrb[68].mxu1 }
0x181a   :  { %v5364_v18 = vpop.f32.mrb[69].mxu1 }
0x181b   :  { %v2758_v22 = vpop.f32.mrb[70].mxu1 }
0x181c   :  { %v5365_v31 = vpop.f32.mrb[71].mxu1 }
0x188c   :  { %v2699_v33 = vpop.f32.mrb[68].mxu0 }
0x188d   :  { %v6868_v34 = vadd.f32 %v2755_v26, %v2699_v33  ;;  %v5356_v36 = vpop.f32.mrb[69].mxu0 }
0x188e   :  { %v2702_v41 = vpop.f32.mrb[70].mxu0 }
0x188f   :  { %v6870_v37 = vadd.f32 %v2758_v22, %v2702_v41  ;;  %v5357_v56 = vpop.f32.mrb[71].mxu0 }
0x1894   :  { %v2806_v42 = vpop.f32.mrb[72].mxu0 }
0x1895   :  { %v5370_v58 = vpop.f32.mrb[73].mxu0  ;;  %v2813_v40 = vsel %vm613_vm2, %v2806_v42, -inf }
0x1896   :  { %2814 = vmax.xlane.f32.xlu1 %v2813_v40  ;;  %v2809_v44 = vpop.f32.mrb[74].mxu0 }
0x1897   :  { %v5371_v48 = vpop.f32.mrb[75].mxu0  ;;  %v2816_v29 = vsel %vm613_vm2, %v2809_v44, -inf }
0x1898   :  { %2817 = vmax.xlane.f32.xlu0 %v2816_v29  ;;  %v6916_v29 = vld [vmem:[#allocation14 + $0x30] sm:$0xff]  }
0x1923   :  { %v2815_v50 = vpop.xlane.xlu1 %2814 }
0x1924   :  { %v2819_v51 = vsub.f32 %v2806_v42, %v2815_v50 }
0x1925   :  { %v2818_v30 = vpop.xlane.xlu0 %2817 }
0x1926   :  { %v2821_v54 = vmul.f32 1.442695, %v2819_v51  ;;  %v2820_v35 = vsub.f32 %v2809_v44, %v2818_v30 }
0x1928   :  { %5773 = vpow2.f32 %v2821_v54  ;;  %v2823_v9 = vmul.f32 1.442695, %v2820_v35 }
0x192a   :  { %5775 = vpow2.f32 %v2823_v9 }
0x1932   :  { %v5774_v59 = vpop.eup %5773 }
0x1933   :  { %v2825_v60 = vsel %vm613_vm2, %v5774_v59, 0.0 }
0x1934   :  { %v5776_v61 = vpop.eup %5775  ;;  %2826 = vadd.xlane.f32.xlu0 %v2825_v60 }
0x1935   :  { %v2828_v4 = vsel %vm613_vm2, %v5776_v61, 0.0 }
0x1936   :  { %2829 = vadd.xlane.f32.xlu1 %v2828_v4 }
0x1947   :  { %2944 = vrot.lane.b32.xlu1 %v6774_v63, %s6118_s17 }
0x194a   :  { %2836 = vrot.lane.b32.xlu0 %v6776_v5, %s7323_s24 }
0x194b   :  { %2942 = vrot.lane.b32.xlu1 %v6803_v47, %s6118_s17 }
0x19c1   :  { %v2827_v10 = vpop.xlane.xlu0 %2826 }
0x19c2   :  { %5777 = vrcp.f32 %v2827_v10 }
0x19c3   :  { %v2830_v52 = vpop.xlane.xlu1 %2829 }
0x19c4   :  { %5779 = vrcp.f32 %v2830_v52 }
0x19c5   :  { %v2837_v55 = vpop.permute.xlu0 %2836 }
0x19c6   :  { %5373 = vmatpush3.bf16.msra.mxu1 %v2837_v55  ;;  %v6942_v55 = vld [vmem:[#allocation14 + $0x38] sm:$0xff]  }
0x19c7   :  { %5386 = vmatprep.subr.bf16.mxu1 %v6115_v28  ;;  %v2945_v2 = vpop.permute.xlu1 %2944 }
0x19c8   :  { %v2950_v1 = vsel %vm565_vm1, %v2945_v2, 0 }
0x19cb   :  { %v2943_v15 = vpop.permute.xlu1 %2942 }
0x19cc   :  { %v5778_v63 = vpop.eup %5777 }
0x19cd   :  { %v2833_v12 = vmul.f32 %v5778_v63, %v5774_v59 }
0x19ce   :  { %v5780_v11 = vpop.eup %5779 }
0x19cf   :  { %v2834_v57 = vmul.f32 %v5780_v11, %v5776_v61 }
0x19d1   :  { %v2835_v47 = vpack.c.bf16 %v2834_v57, %v2833_v12 }
0x19d3   :  { %5375 = vmatmul.mubr.msk.bf16.vlgmr.msra.gmra.mrb[72].mxu1 %vm613_vm2, %v2835_v47 }
0x19d4   :  { %5387 = vmatpush3.bf16.xpose.msra.mxu1 %v2950_v1  ;;  %5388 = vmatprep.mubr.msk.bf16.mxu1 %vm6116_vm0, %v6115_v28 }
0x19d5   :  { %5398 = vmatprep.subr.bf16.mxu1 %v6115_v28 }
0x19db   :  { %5389 = vmatmul.mubr.msk.bf16.vlgmr.msra.gmra.mrb[76].mxu1 %vm565_vm1, %v2943_v15 }
0x19dc   :  { %5402 = vmatprep.mubr.msk.bf16.mxu1 %vm6116_vm0, %v6115_v28  ;;  %5399 = vmatpush3.bf16.msra.mxu1 %v6916_v29 }
0x19dd   :  { %5400 = vmatprep.subr.bf16.mxu1 %v6115_v28 }
0x19e0   :  { %5401 = vmatpush3.bf16.msra.mxu1 %v6942_v55 }
0x19e1   :  { %5412 = vmatprep.subr.bf16.mxu1 %v6115_v28 }
0x1aa6   :  { %v2876_v43 = vpop.f32.mrb[72].mxu1 }
0x1aa7   :  { %v5376_v3 = vpop.f32.mrb[73].mxu1 }
0x1aa8   :  { %v2879_v19 = vpop.f32.mrb[74].mxu1 }
0x1aa9   :  { %v2883_v6 = vpack.c.bf16 %v2879_v19, %v2876_v43  ;;  %v5377_v20 = vpop.f32.mrb[75].mxu1 }
0x1aab   :  { %5383 = vmatmul.mubr.msk.bf16.vlgmr.msra.gmra.mrb[76].mxu0 %vm565_vm1, %v2883_v6 }
0x1aac   :  { %5394 = vmatprep.mubr.msk.bf16.mxu0 %vm6116_vm0, %v6115_v28 }
0x1aae   :  { %v2986_v23 = vpop.f32.mrb[76].mxu1 }
0x1aaf   :  { %v5390_v24 = vpop.f32.mrb[77].mxu1  ;;  %v2993_v27 = vsel %vm613_vm2, %v2986_v23, -inf }
0x1ab0   :  { %2994 = vmax.xlane.f32.xlu0 %v2993_v27  ;;  %v2989_v0 = vpop.f32.mrb[78].mxu1 }
0x1ab1   :  { %v5391_v21 = vpop.f32.mrb[79].mxu1  ;;  %v2996_v25 = vsel %vm613_vm2, %v2989_v0, -inf }
0x1ab2   :  { %2997 = vmax.xlane.f32.xlu1 %v2996_v25 }
0x1ac3   :  { %3016 = vrot.lane.b32.xlu1 %v6776_v5, %s6118_s17 }
0x1ac7   :  { %3240 = vrot.lane.b32.xlu1 %v6801_v13, %s6117_s11 }
0x1b3d   :  { %v2995_v26 = vpop.xlane.xlu0 %2994 }
0x1b3e   :  { %v2999_v18 = vsub.f32 %v2986_v23, %v2995_v26 }
0x1b3f   :  { %v2998_v22 = vpop.xlane.xlu1 %2997 }
0x1b40   :  { %v3001_v31 = vmul.f32 1.442695, %v2999_v18  ;;  %v3000_v33 = vsub.f32 %v2989_v0, %v2998_v22 }
0x1b42   :  { %5781 = vpow2.f32 %v3001_v31  ;;  %v3003_v36 = vmul.f32 1.442695, %v3000_v33 }
0x1b43   :  { %v3017_v41 = vpop.permute.xlu1 %3016 }
0x1b44   :  { %5783 = vpow2.f32 %v3003_v36  ;;  %5393 = vmatpush3.bf16.msra.mxu0 %v3017_v41 }
0x1b45   :  { %5406 = vmatprep.subr.bf16.mxu0 %v6115_v28 }
0x1b47   :  { %v3241_v52 = vpop.permute.xlu1 %3240 }
0x1b4c   :  { %v5782_v56 = vpop.eup %5781 }
0x1b4d   :  { %v3005_v42 = vsel %vm613_vm2, %v5782_v56, 0.0 }
0x1b4e   :  { %v5784_v58 = vpop.eup %5783  ;;  %3006 = vadd.xlane.f32.xlu0 %v3005_v42 }
0x1b4f   :  { %v3008_v5 = vsel %vm613_vm2, %v5784_v58, 0.0 }
0x1b52   :  { %3009 = vadd.xlane.f32.xlu0 %v3008_v5 }
0x1b68   :  { %3243 = vrot.lane.b32.xlu0 %v6816_v14, %s6117_s11 }
0x1b7e   :  { %v2933_v40 = vpop.f32.mrb[76].mxu0 }
0x1b7f   :  { %v6914_v44 = vadd.f32 %v2933_v40, %v6868_v34  ;;  %v5384_v48 = vpop.f32.mrb[77].mxu0 }
0x1b80   :  { %v2936_v50 = vpop.f32.mrb[78].mxu0 }
0x1b81   :  { %v6919_v51 = vadd.f32 %v2936_v50, %v6870_v37  ;;  %v5385_v30 = vpop.f32.mrb[79].mxu0  ;;  %v3128_v37 = vsel %vm565_vm1, %v6816_v14, 0 }
0x1bdb   :  { %v3007_v54 = vpop.xlane.xlu0 %3006 }
0x1bdc   :  { %5785 = vrcp.f32 %v3007_v54 }
0x1bdf   :  { %v3010_v35 = vpop.xlane.xlu0 %3009 }
0x1be0   :  { %5787 = vrcp.f32 %v3010_v35 }
0x1be3   :  { %v3244_v4 = vpop.permute.xlu0 %3243 }
0x1be4   :  { %v3249_v10 = vsel %vm565_vm1, %v3244_v4, 0 }
0x1be6   :  { %v5786_v9 = vpop.eup %5785 }
0x1be7   :  { %v3013_v34 = vmul.f32 %v5786_v9, %v5782_v56 }
0x1bea   :  { %v5788_v59 = vpop.eup %5787 }
0x1beb   :  { %v3014_v60 = vmul.f32 %v5788_v59, %v5784_v58 }
0x1bed   :  { %v3015_v61 = vpack.c.bf16 %v3014_v60, %v3013_v34 }
0x1bef   :  { %5395 = vmatmul.mubr.msk.bf16.vlgmr.msra.gmra.mrb[80].mxu0 %vm613_vm2, %v3015_v61 }
0x1bf0   :  { %5407 = vmatpush3.bf16.xpose.msra.mxu0 %v3128_v37  ;;  %5408 = vmatprep.mubr.msk.bf16.mxu0 %vm6116_vm0, %v6115_v28 }
0x1bf1   :  { %5418 = vmatprep.subr.bf16.mxu0 %v6115_v28 }
0x1bf7   :  { %5409 = vmatmul.mubr.msk.bf16.vlgmr.msra.gmra.mrb[84].mxu0 %vm565_vm1, %v6801_v13 }
0x1bf8   :  { %5419 = vmatpush3.bf16.xpose.msra.mxu0 %v3249_v10  ;;  %5420 = vmatprep.mubr.msk.bf16.mxu0 %vm6116_vm0, %v6115_v28 }
0x1bf9   :  { %5430 = vmatprep.subr.bf16.mxu0 %v6115_v28 }
0x1bff   :  { %5421 = vmatmul.mubr.msk.bf16.vlgmr.msra.gmra.mrb[88].mxu0 %vm565_vm1, %v3241_v52 }
0x1c00   :  { %5431 = vmatpush3.bf16.msra.mxu0 %v6837_v49  ;;  %5434 = vmatprep.mubr.msk.bf16.mxu0 %vm6116_vm0, %v6115_v28 }
0x1c01   :  { %5432 = vmatprep.subr.bf16.mxu0 %v6115_v28 }
0x1c04   :  { %5433 = vmatpush3.bf16.msra.mxu0 %v6840_v62 }
0x1c05   :  { %5446 = vmatprep.subr.bf16.mxu0 %v6115_v28 }
0x1cc2   :  { %v3056_v63 = vpop.f32.mrb[80].mxu0 }
0x1cc3   :  { %v5396_v11 = vpop.f32.mrb[81].mxu0 }
0x1cc4   :  { %v3059_v12 = vpop.f32.mrb[82].mxu0 }
0x1cc5   :  { %v3063_v57 = vpack.c.bf16 %v3059_v12, %v3056_v63  ;;  %v5397_v49 = vpop.f32.mrb[83].mxu0 }
0x1cc7   :  { %5403 = vmatmul.mubr.msk.bf16.vlgmr.msra.gmra.mrb[80].mxu1 %vm565_vm1, %v3063_v57 }
0x1cc8   :  { %5413 = vmatpush3.bf16.msra.mxu1 %v6818_v45  ;;  %5414 = vmatprep.mubr.msk.bf16.mxu1 %vm6116_vm0, %v6115_v28 }
0x1cc9   :  { %5424 = vmatprep.subr.bf16.mxu1 %v6115_v28 }
0x1cca   :  { %v3164_v62 = vpop.f32.mrb[84].mxu0 }
0x1ccb   :  { %v5410_v2 = vpop.f32.mrb[85].mxu0  ;;  %v3171_v47 = vsel %vm613_vm2, %v3164_v62, -inf }
0x1ccc   :  { %3172 = vmax.xlane.f32.xlu1 %v3171_v47  ;;  %v3167_v1 = vpop.f32.mrb[86].mxu0 }
0x1ccd   :  { %v5411_v15 = vpop.f32.mrb[87].mxu0  ;;  %v3174_v43 = vsel %vm613_vm2, %v3167_v1, -inf }
0x1cce   :  { %3175 = vmax.xlane.f32.xlu0 %v3174_v43 }
0x1cd2   :  { %v3285_v3 = vpop.f32.mrb[88].mxu0 }
0x1cd3   :  { %v5422_v19 = vpop.f32.mrb[89].mxu0  ;;  %v3292_v6 = vsel %vm613_vm2, %v3285_v3, -inf }
0x1cd4   :  { %3293 = vmax.xlane.f32.xlu0 %v3292_v6  ;;  %v3288_v20 = vpop.f32.mrb[90].mxu0 }
0x1cd5   :  { %v5423_v23 = vpop.f32.mrb[91].mxu0  ;;  %v3295_v24 = vsel %vm613_vm2, %v3288_v20, -inf }
0x1cd6   :  { %3296 = vmax.xlane.f32.xlu1 %v3295_v24 }
0x1d59   :  { %v3173_v27 = vpop.xlane.xlu1 %3172 }
0x1d5a   :  { %v3177_v0 = vsub.f32 %v3164_v62, %v3173_v27 }
0x1d5b   :  { %v3176_v21 = vpop.xlane.xlu0 %3175 }
0x1d5c   :  { %v3179_v25 = vmul.f32 1.442695, %v3177_v0  ;;  %v3178_v26 = vsub.f32 %v3167_v1, %v3176_v21 }
0x1d5e   :  { %5789 = vpow2.f32 %v3179_v25  ;;  %v3181_v18 = vmul.f32 1.442695, %v3178_v26 }
0x1d60   :  { %5791 = vpow2.f32 %v3181_v18 }
0x1d61   :  { %v3294_v22 = vpop.xlane.xlu0 %3293 }
0x1d62   :  { %v3298_v31 = vsub.f32 %v3285_v3, %v3294_v22 }
0x1d63   :  { %v3297_v33 = vpop.xlane.xlu1 %3296 }
0x1d64   :  { %v3300_v36 = vmul.f32 1.442695, %v3298_v31  ;;  %v3299_v41 = vsub.f32 %v3288_v20, %v3297_v33 }
0x1d66   :  { %5793 = vpow2.f32 %v3300_v36  ;;  %v3302_v56 = vmul.f32 1.442695, %v3299_v41 }
0x1d68   :  { %v5790_v42 = vpop.eup %5789  ;;  %5795 = vpow2.f32 %v3302_v56 }
0x1d69   :  { %v3183_v58 = vsel %vm613_vm2, %v5790_v42, 0.0 }
0x1d6a   :  { %v5792_v5 = vpop.eup %5791  ;;  %3184 = vadd.xlane.f32.xlu0 %v3183_v58 }
0x1d6b   :  { %v3186_v40 = vsel %vm613_vm2, %v5792_v5, 0.0 }
0x1d6c   :  { %3187 = vadd.xlane.f32.xlu1 %v3186_v40 }
0x1d70   :  { %v5794_v48 = vpop.eup %5793 }
0x1d71   :  { %v3304_v50 = vsel %vm613_vm2, %v5794_v48, 0.0 }
0x1d72   :  { %v5796_v30 = vpop.eup %5795  ;;  %3305 = vadd.xlane.f32.xlu0 %v3304_v50 }
0x1d73   :  { %v3307_v54 = vsel %vm613_vm2, %v5796_v30, 0.0 }
0x1d74   :  { %3308 = vadd.xlane.f32.xlu1 %v3307_v54 }
0x1d85   :  { %3454 = vrot.lane.b32.xlu1 %v6816_v14, %s7323_s24 }
0x1d88   :  { %3316 = vrot.lane.b32.xlu0 %v6818_v45, %s6117_s11 }
0x1d89   :  { %3452 = vrot.lane.b32.xlu1 %v6801_v13, %s7323_s24 }
0x1d9a   :  { %v3113_v35 = vpop.f32.mrb[80].mxu1 }
0x1d9b   :  { %v6966_v9 = vadd.f32 %v3113_v35, %v6914_v44  ;;  %v5404_v59 = vpop.f32.mrb[81].mxu1 }
0x1d9c   :  { %v3116_v34 = vpop.f32.mrb[82].mxu1 }
0x1d9d   :  { %v6969_v60 = vadd.f32 %v3116_v34, %v6919_v51  ;;  %v5405_v61 = vpop.f32.mrb[83].mxu1 }
0x1df7   :  { %v3185_v37 = vpop.xlane.xlu0 %3184 }
0x1df8   :  { %5797 = vrcp.f32 %v3185_v37 }
0x1df9   :  { %v3188_v4 = vpop.xlane.xlu1 %3187 }
0x1dfa   :  { %5799 = vrcp.f32 %v3188_v4 }
0x1dff   :  { %v3306_v10 = vpop.xlane.xlu0 %3305 }
0x1e00   :  { %5801 = vrcp.f32 %v3306_v10 }
0x1e01   :  { %v3309_v52 = vpop.xlane.xlu1 %3308 }
0x1e02   :  { %v5798_v63 = vpop.eup %5797  ;;  %5803 = vrcp.f32 %v3309_v52 }
0x1e03   :  { %v3191_v12 = vmul.f32 %v5798_v63, %v5790_v42  ;;  %v3317_v49 = vpop.permute.xlu0 %3316 }
0x1e04   :  { %v5800_v11 = vpop.eup %5799 }
0x1e05   :  { %v3192_v57 = vmul.f32 %v5800_v11, %v5792_v5  ;;  %v3455_v23 = vpop.permute.xlu1 %3454 }
0x1e07   :  { %v3193_v44 = vpack.c.bf16 %v3192_v57, %v3191_v12 }
0x1e09   :  { %5415 = vmatmul.mubr.msk.bf16.vlgmr.msra.gmra.mrb[84].mxu1 %vm613_vm2, %v3193_v44  ;;  %v3453_v21 = vpop.permute.xlu1 %3452 }
0x1e0a   :  { %v5802_v62 = vpop.eup %5801  ;;  %5425 = vmatpush3.bf16.msra.mxu1 %v3317_v49  ;;  %5426 = vmatprep.mubr.msk.bf16.mxu1 %vm6116_vm0, %v6115_v28 }
0x1e0b   :  { %5438 = vmatprep.subr.bf16.mxu1 %v6115_v28  ;;  %v3312_v2 = vmul.f32 %v5802_v62, %v5794_v48 }
0x1e0c   :  { %v5804_v51 = vpop.eup %5803 }
0x1e0d   :  { %v3313_v47 = vmul.f32 %v5804_v51, %v5796_v30 }
0x1e0f   :  { %v3314_v1 = vpack.c.bf16 %v3313_v47, %v3312_v2 }
0x1e11   :  { %5427 = vmatmul.mubr.msk.bf16.vlgmr.msra.gmra.mrb[88].mxu1 %vm613_vm2, %v3314_v1 }
0x1e12   :  { %5439 = vmatpush3.bf16.msra.mxu1 %v6846_v46  ;;  %5442 = vmatprep.mubr.msk.bf16.mxu1 %vm6116_vm0, %v6115_v28 }
0x1e13   :  { %5440 = vmatprep.subr.bf16.mxu1 %v6115_v28 }
0x1e16   :  { %5441 = vmatpush3.bf16.msra.mxu1 %v6850_v8  ;;  %v3460_v8 = vsel %vm565_vm1, %v3455_v23, 0 }
0x1e17   :  { %5452 = vmatprep.subr.bf16.mxu1 %v6115_v28 }
0x1edc   :  { %v3231_v15 = vpop.f32.mrb[84].mxu1 }
0x1edd   :  { %v5416_v43 = vpop.f32.mrb[85].mxu1 }
0x1ede   :  { %v3234_v3 = vpop.f32.mrb[86].mxu1 }
0x1edf   :  { %v3238_v19 = vpack.c.bf16 %v3234_v3, %v3231_v15  ;;  %v5417_v6 = vpop.f32.mrb[87].mxu1 }
0x1ee1   :  { %5443 = vmatmul.mubr.msk.bf16.vlgmr.msra.gmra.mrb[92].mxu1 %vm565_vm1, %v3238_v19 }
0x1ee2   :  { %5454 = vmatprep.mubr.msk.bf16.mxu1 %vm6116_vm0, %v6115_v28 }
0x1ee4   :  { %v3356_v46 = vpop.f32.mrb[88].mxu1 }
0x1ee5   :  { %v5428_v20 = vpop.f32.mrb[89].mxu1 }
0x1ee6   :  { %v3359_v24 = vpop.f32.mrb[90].mxu1 }
0x1ee7   :  { %v3363_v27 = vpack.c.bf16 %v3359_v24, %v3356_v46  ;;  %v5429_v0 = vpop.f32.mrb[91].mxu1 }
0x1ee9   :  { %5435 = vmatmul.mubr.msk.bf16.vlgmr.msra.gmra.mrb[92].mxu0 %vm565_vm1, %v3363_v27 }
0x1eea   :  { %5447 = vmatpush3.bf16.xpose.msra.mxu0 %v3460_v8  ;;  %5448 = vmatprep.mubr.msk.bf16.mxu0 %vm6116_vm0, %v6115_v28 }
0x1eeb   :  { %5458 = vmatprep.subr.bf16.mxu0 %v6115_v28 }
0x1ef1   :  { %5449 = vmatmul.mubr.msk.bf16.vlgmr.msra.gmra.mrb[96].mxu0 %vm565_vm1, %v3453_v21 }
0x1ef2   :  { %5459 = vmatpush3.bf16.msra.mxu0 %v6882_v39  ;;  %5462 = vmatprep.mubr.msk.bf16.mxu0 %vm6116_vm0, %v6115_v28 }
0x1ef3   :  { %5460 = vmatprep.subr.bf16.mxu0 %v6115_v28 }
0x1ef6   :  { %5461 = vmatpush3.bf16.msra.mxu0 %v6895_v16 }
0x1ef7   :  { %5472 = vmatprep.subr.bf16.mxu0 %v6115_v28 }
0x1fb4   :  { %v3445_v25 = vpop.f32.mrb[92].mxu1 }
0x1fb5   :  { %v5444_v26 = vpop.f32.mrb[93].mxu1 }
0x1fb6   :  { %v3448_v18 = vpop.f32.mrb[94].mxu1  ;;  %v3794_v26 = vadd.f32 %v6966_v9, %v6672_v38 }
0x1fb7   :  { %v5445_v22 = vpop.f32.mrb[95].mxu1 }
0x1fbc   :  { %v3401_v31 = vpop.f32.mrb[92].mxu0 }
0x1fbd   :  { %v6997_v33 = vadd.f32 %v3445_v25, %v3401_v31  ;;  %v5436_v36 = vpop.f32.mrb[93].mxu0 }
0x1fbe   :  { %v3404_v41 = vpop.f32.mrb[94].mxu0  ;;  %v3795_v36 = vadd.f32 %v6969_v60, %v6689_v53 }
0x1fbf   :  { %v6999_v56 = vadd.f32 %v3448_v18, %v3404_v41  ;;  %v5437_v39 = vpop.f32.mrb[95].mxu0  ;;  %v7034_v18 = vld [vmem:[%s7286_s14] ss:$0 sm:$0xff] }
0x1fc0   :  { %v7038_v31 = vadd.f32 %v7034_v18, %v3794_v26  ;;  %v7044_v41 = vadd.f32 %v7034_v18, %v3795_v36  ;;  %v7073_v36 = vld [vmem:[%s7288_s16] ss:$0 sm:$0xff] }
0x1fc2   :  { %v3821_v38 = vmul.f32 %v7038_v31, %v7038_v31  ;;  %v3822_v9 = vmul.f32 %v7044_v41, %v7044_v41 }
0x1fc4   :  { %v3496_v42 = vpop.f32.mrb[96].mxu0 }
0x1fc5   :  { %v5450_v58 = vpop.f32.mrb[97].mxu0  ;;  %v3503_v5 = vsel %vm613_vm2, %v3496_v42, -inf }
0x1fc6   :  { %3504 = vmax.xlane.f32.xlu0 %v3503_v5  ;;  %v3499_v16 = vpop.f32.mrb[98].mxu0 }
0x1fc7   :  { %v5451_v40 = vpop.f32.mrb[99].mxu0  ;;  %v3506_v48 = vsel %vm613_vm2, %v3499_v16, -inf }
0x1fc8   :  { %3507 = vmax.xlane.f32.xlu1 %v3506_v48  ;;  %v5591_v48 = vld [vmem:[#allocation15 + $0x4] ss:$16 sps:$4 sm:$0xff]  }
0x1fd9   :  { %3526 = vrot.lane.b32.xlu1 %v6818_v45, %s7323_s24 }
0x1fdd   :  { %3620 = vrot.lane.b32.xlu1 %v6801_v13, %s6118_s17 }
0x2053   :  { %v3505_v50 = vpop.xlane.xlu0 %3504 }
0x2054   :  { %v3509_v30 = vsub.f32 %v3496_v42, %v3505_v50 }
0x2055   :  { %v3508_v54 = vpop.xlane.xlu1 %3507 }
0x2056   :  { %v3511_v35 = vmul.f32 1.442695, %v3509_v30  ;;  %v3510_v59 = vsub.f32 %v3499_v16, %v3508_v54 }
0x2058   :  { %5805 = vpow2.f32 %v3511_v35  ;;  %v3513_v34 = vmul.f32 1.442695, %v3510_v59 }
0x2059   :  { %v3527_v61 = vpop.permute.xlu1 %3526 }
0x205a   :  { %5807 = vpow2.f32 %v3513_v34  ;;  %5453 = vmatpush3.bf16.msra.mxu1 %v3527_v61 }
0x205b   :  { %5466 = vmatprep.subr.bf16.mxu1 %v6115_v28 }
0x2062   :  { %v5806_v37 = vpop.eup %5805 }
0x2063   :  { %v3515_v4 = vsel %vm613_vm2, %v5806_v37, 0.0 }
0x2064   :  { %v5808_v10 = vpop.eup %5807  ;;  %3516 = vadd.xlane.f32.xlu0 %v3515_v4 }
0x2065   :  { %v3518_v52 = vsel %vm613_vm2, %v5808_v10, 0.0 }
0x2068   :  { %3519 = vadd.xlane.f32.xlu0 %v3518_v52 }
0x207e   :  { %3622 = vrot.lane.b32.xlu0 %v6816_v14, %s6118_s17  ;;  %v3621_v14 = vpop.permute.xlu1 %3620 }
0x20f1   :  { %v3517_v13 = vpop.xlane.xlu0 %3516 }
0x20f2   :  { %5809 = vrcp.f32 %v3517_v13  ;;  %v5594_v13 = vld [vmem:[#allocation15 + $0x24] ss:$16 sps:$4 sm:$0xff]  }
0x20f5   :  { %v3520_v63 = vpop.xlane.xlu0 %3519 }
0x20f6   :  { %5811 = vrcp.f32 %v3520_v63 }
0x20f9   :  { %v3623_v49 = vpop.permute.xlu0 %3622 }
0x20fa   :  { %v3628_v51 = vsel %vm565_vm1, %v3623_v49, 0  ;;  %v5592_v49 = vld [vmem:[#allocation15 + $0x20] ss:$16 sps:$4 sm:$0xff]  }
0x20fc   :  { %v5810_v11 = vpop.eup %5809 }
0x20fd   :  { %v3523_v57 = vmul.f32 %v5810_v11, %v5806_v37 }
0x2100   :  { %v5812_v12 = vpop.eup %5811 }
0x2101   :  { %v3524_v44 = vmul.f32 %v5812_v12, %v5808_v10  ;;  %v5589_v10 = vld [vmem:[#allocation15] ss:$16 sps:$4 sm:$0xff]  }
0x2103   :  { %v3525_v62 = vpack.c.bf16 %v3524_v44, %v3523_v57 }
0x2105   :  { %5455 = vmatmul.mubr.msk.bf16.vlgmr.msra.gmra.mrb[96].mxu1 %vm613_vm2, %v3525_v62  ;;  %v5597_v62 = vld [vmem:[#allocation15 + $0x44] ss:$16 sps:$4 sm:$0xff]  }
0x2106   :  { %5467 = vmatpush3.bf16.xpose.msra.mxu1 %v3628_v51  ;;  %5468 = vmatprep.mubr.msk.bf16.mxu1 %vm6116_vm0, %v6115_v28 }
0x2107   :  { %5478 = vmatprep.subr.bf16.mxu1 %v6115_v28 }
0x210d   :  { %5469 = vmatmul.mubr.msk.bf16.vlgmr.msra.gmra.mrb[100].mxu1 %vm565_vm1, %v3621_v14 }
0x210e   :  { %5479 = vmatpush3.bf16.msra.mxu1 %v6916_v29  ;;  %5482 = vmatprep.mubr.msk.bf16.mxu1 %vm6116_vm0, %v6115_v28 }
0x210f   :  { %5480 = vmatprep.subr.bf16.mxu1 %v6115_v28 }
0x2112   :  { %5481 = vmatpush3.bf16.msra.mxu1 %v6942_v55 }
0x21d8   :  { %v3566_v2 = vpop.f32.mrb[96].mxu1 }
0x21d9   :  { %v5456_v47 = vpop.f32.mrb[97].mxu1 }
0x21da   :  { %v3569_v1 = vpop.f32.mrb[98].mxu1  ;;  %v5595_v47 = vld [vmem:[#allocation15 + $0x40] ss:$16 sps:$4 sm:$0xff]  }
0x21db   :  { %v3573_v15 = vpack.c.bf16 %v3569_v1, %v3566_v2  ;;  %v5457_v43 = vpop.f32.mrb[99].mxu1  ;;  %v5600_v1 = vld [vmem:[#allocation15 + $0x64] ss:$16 sps:$4 sm:$0xff]  }
0x21dc   :  { %v5598_v43 = vld [vmem:[#allocation15 + $0x60] ss:$16 sps:$4 sm:$0xff]  }
0x21dd   :  { %5463 = vmatmul.mubr.msk.bf16.vlgmr.msra.gmra.mrb[100].mxu0 %vm565_vm1, %v3573_v15 }
0x21de   :  { %5474 = vmatprep.mubr.msk.bf16.mxu0 %vm6116_vm0, %v6115_v28 }
0x21e0   :  { %v3664_v3 = vpop.f32.mrb[100].mxu1 }
0x21e1   :  { %v5470_v19 = vpop.f32.mrb[101].mxu1  ;;  %v3671_v29 = vsel %vm613_vm2, %v3664_v3, -inf }
0x21e2   :  { %3672 = vmax.xlane.f32.xlu1 %v3671_v29  ;;  %v3667_v6 = vpop.f32.mrb[102].mxu1  ;;  %v5601_v19 = vld [vmem:[#allocation15 + $0x80] ss:$16 sps:$4 sm:$0xff]   ;;  %v5606_v29 = vld [vmem:[#allocation15 + $0xa4] ss:$16 sps:$4 sm:$0xff]  }
0x21e3   :  { %v5471_v46 = vpop.f32.mrb[103].mxu1  ;;  %v3674_v20 = vsel %vm613_vm2, %v3667_v6, -inf }
0x21e4   :  { %3675 = vmax.xlane.f32.xlu0 %v3674_v20  ;;  %v5604_v46 = vld [vmem:[#allocation15 + $0xa0] ss:$16 sps:$4 sm:$0xff]  }
0x226f   :  { %v3673_v55 = vpop.xlane.xlu1 %3672 }
0x2270   :  { %v3677_v23 = vsub.f32 %v3664_v3, %v3673_v55  ;;  %v5603_v3 = vld [vmem:[#allocation15 + $0x84] ss:$16 sps:$4 sm:$0xff]  }
0x2271   :  { %v3676_v24 = vpop.xlane.xlu0 %3675 }
0x2272   :  { %v3679_v27 = vmul.f32 1.442695, %v3677_v23  ;;  %v3678_v0 = vsub.f32 %v3667_v6, %v3676_v24  ;;  %v5609_v23 = vld [vmem:[#allocation15 + $0xc4] ss:$16 sps:$4 sm:$0xff]  }
0x2274   :  { %5813 = vpow2.f32 %v3679_v27  ;;  %v3681_v8 = vmul.f32 1.442695, %v3678_v0 }
0x2276   :  { %5815 = vpow2.f32 %v3681_v8  ;;  %v5607_v8 = vld [vmem:[#allocation15 + $0xc0] ss:$16 sps:$4 sm:$0xff]  }
0x227e   :  { %v5814_v21 = vpop.eup %5813 }
0x227f   :  { %v3683_v28 = vsel %vm613_vm2, %v5814_v21, 0.0 }
0x2280   :  { %v5816_v25 = vpop.eup %5815  ;;  %3684 = vadd.xlane.f32.xlu0 %v3683_v28  ;;  %v5612_v28 = vld [vmem:[#allocation15 + $0xe4] ss:$16 sps:$4 sm:$0xff]  }
0x2281   :  { %v3686_v22 = vsel %vm613_vm2, %v5816_v25, 0.0 }
0x2282   :  { %3687 = vadd.xlane.f32.xlu1 %v3686_v22  ;;  %v5610_v22 = vld [vmem:[#allocation15 + $0xe0] ss:$16 sps:$4 sm:$0xff]  }
0x2286   :  { %3809 = vadd.xlane.f32.xlu1 %v7038_v31 }
0x228a   :  { %3811 = vadd.xlane.f32.xlu1 %v7044_v41 }
0x228e   :  { %3825 = vadd.xlane.f32.xlu1 %v3821_v38 }
0x2292   :  { %3827 = vadd.xlane.f32.xlu1 %v3822_v9 }
0x2296   :  { %3694 = vrot.lane.b32.xlu0 %v6818_v45, %s6118_s17 }
0x22b0   :  { %v3611_v39 = vpop.f32.mrb[100].mxu0 }
0x22b1   :  { %v7054_v53 = vadd.f32 %v3611_v39, %v6997_v33  ;;  %v5464_v60 = vpop.f32.mrb[101].mxu0 }
0x22b2   :  { %v3614_v42 = vpop.f32.mrb[102].mxu0  ;;  %v5615_v60 = vld [vmem:[#allocation15 + $0xc] ss:$16 sps:$4 sm:$0xff]  }
0x22b3   :  { %v7057_v58 = vadd.f32 %v3614_v42, %v6999_v56  ;;  %v5465_v5 = vpop.f32.mrb[103].mxu0  ;;  %4156 = vmatprep.subr.bf16.mxu1 %v5615_v60 }
0x230d   :  { %v3685_v16 = vpop.xlane.xlu0 %3684 }
0x230e   :  { %5817 = vrcp.f32 %v3685_v16 }
0x230f   :  { %v3688_v40 = vpop.xlane.xlu1 %3687 }
0x2310   :  { %5819 = vrcp.f32 %v3688_v40  ;;  %v5613_v40 = vld [vmem:[#allocation15 + $0x8] ss:$16 sps:$4 sm:$0xff]  }
0x2311   :  { %v3695_v50 = vpop.permute.xlu0 %3694 }
0x2312   :  { %5473 = vmatpush3.bf16.msra.mxu0 %v3695_v50 }
0x2313   :  { %v3810_v30 = vpop.xlane.xlu1 %3809  ;;  %4103 = vmatprep.subr.bf16.mxu0 %v5591_v48 }
0x2314   :  { %v3817_v35 = vmul.f32 0.0078125, %v3810_v30  ;;  %v5618_v30 = vld [vmem:[#allocation15 + $0x2c] ss:$16 sps:$4 sm:$0xff]  }
0x2316   :  { %v3837_v37 = vmul.f32 %v3817_v35, %v3817_v35  ;;  %v3849_v20 = vsub.f32 %v7038_v31, %v3817_v35  ;;  %v5619_v35 = vld [vmem:[#allocation15 + $0x48] ss:$16 sps:$4 sm:$0xff]  }
0x2317   :  { %v3812_v45 = vpop.xlane.xlu1 %3811 }
0x2318   :  { %v5818_v54 = vpop.eup %5817  ;;  %v3818_v56 = vmul.f32 0.0078125, %v3812_v45  ;;  %v5616_v45 = vld [vmem:[#allocation15 + $0x28] ss:$16 sps:$4 sm:$0xff]  }
0x2319   :  { %v3691_v59 = vmul.f32 %v5818_v54, %v5814_v21  ;;  %v7066_v21 = vld [vmem:[%s7287_s15] ss:$0 sm:$0xff]  ;;  %v5621_v54 = vld [vmem:[#allocation15 + $0x4c] ss:$16 sps:$4 sm:$0xff]  }
0x231a   :  { %v5820_v33 = vpop.eup %5819  ;;  %v3838_v12 = vmul.f32 %v3818_v56, %v3818_v56  ;;  %v3850_v55 = vsub.f32 %v7044_v41, %v3818_v56  ;;  %v5630_v56 = vld [vmem:[#allocation15 + $0xac] ss:$16 sps:$4 sm:$0xff]  }
0x231b   :  { %v3692_v34 = vmul.f32 %v5820_v33, %v5816_v25  ;;  %v3826_v61 = vpop.xlane.xlu1 %3825  ;;  %v5624_v33 = vld [vmem:[#allocation15 + $0x6c] ss:$16 sps:$4 sm:$0xff]  }
0x231c   :  { %v3833_v4 = vmul.f32 0.0078125, %v3826_v61  ;;  %v3923_v61 = vlaneseq }
0x231d   :  { %v3693_v52 = vpack.c.bf16 %v3692_v34, %v3691_v59  ;;  %v5622_v59 = vld [vmem:[#allocation15 + $0x68] ss:$16 sps:$4 sm:$0xff]   ;;  %v5627_v34 = vld [vmem:[#allocation15 + $0x8c] ss:$16 sps:$4 sm:$0xff]  }
0x231e   :  { %v3841_v63 = vsub.f32 %v3833_v4, %v3837_v37  ;;  %v5625_v37 = vld [vmem:[#allocation15 + $0x88] ss:$16 sps:$4 sm:$0xff]   ;;  %v7080_v4 = vshrl.u32 %v3923_v61, 7 }
0x231f   :  { %v3828_v11 = vpop.xlane.xlu1 %3827  ;;  %5475 = vmatmul.mubr.msk.bf16.vlgmr.msra.gmra.mrb[104].mxu0 %vm613_vm2, %v3693_v52  ;;  %v5633_v52 = vld [vmem:[#allocation15 + $0xcc] ss:$16 sps:$4 sm:$0xff]  }
0x2320   :  { %v3845_v57 = vmax.f32 %v3841_v63, 0.0  ;;  %v3834_v44 = vmul.f32 0.0078125, %v3828_v11  ;;  %4104 = vmatpush1.bf16.msra.mxu0 %v5589_v10  ;;  %4135 = vmatprep.mubr.bf16.mxu0 %v6114_v17  ;;  %v5628_v10 = vld [vmem:[#allocation15 + $0xa8] ss:$16 sps:$4 sm:$0xff]   ;;  %v7086_v11 = vld [vmem:[%s7326_s30] sm:$0xf] }
0x2321   :  { %4105 = vmatprep.subr.bf16.mxu0 %v5594_v13  ;;  %v3925_v13 = vsub.s32 0, %v7080_v4  ;;  %v5631_v63 = vld [vmem:[#allocation15 + $0xc8] ss:$16 sps:$4 sm:$0xff]  }
0x2322   :  { %v3853_v51 = vadd.f32 1e-05, %v3845_v57  ;;  %v3842_v14 = vsub.f32 %v3834_v44, %v3838_v12  ;;  %v3929_v12 = vsub.s32 1, %v7080_v4  ;;  %v5636_v57 = vld [vmem:[#allocation15 + $0xec] ss:$16 sps:$4 sm:$0xff]  }
0x2323   :  { %v7090_v44 = vrot.slane %v7086_v11, %v3925_v13 }
0x2324   :  { %v3846_v2 = vmax.f32 %v3842_v14, 0.0  ;;  %4106 = vmatpush1.bf16.msra.mxu0 %v5592_v49  ;;  %5821 = vrsqrt.f32 %v3853_v51  ;;  %v7093_v49 = vrot.slane %v7086_v11, %v3929_v12 }
0x2325   :  { %4107 = vmatprep.subr.bf16.mxu0 %v5597_v62  ;;  %v5634_v62 = vld [vmem:[#allocation15 + $0xe8] ss:$16 sps:$4 sm:$0xff]  }
0x2326   :  { %v3854_v15 = vadd.f32 1e-05, %v3846_v2 }
0x2328   :  { %5823 = vrsqrt.f32 %v3854_v15  ;;  %4108 = vmatpush1.bf16.msra.mxu0 %v5595_v47 }
0x2329   :  { %4109 = vmatprep.subr.bf16.mxu0 %v5600_v1 }
0x232c   :  { %4110 = vmatpush1.bf16.msra.mxu0 %v5598_v43 }
0x232d   :  { %4111 = vmatprep.subr.bf16.mxu0 %v5603_v3 }
0x232e   :  { %v5822_v6 = vpop.eup %5821 }
0x232f   :  { %v3861_v27 = vmul.f32 %v5822_v6, %v3849_v20 }
0x2330   :  { %4112 = vmatpush1.bf16.msra.mxu0 %v5601_v19 }
0x2331   :  { %4113 = vmatprep.subr.bf16.mxu0 %v5606_v29  ;;  %v3872_v26 = vmul.f32 %v7066_v21, %v3861_v27 }
0x2332   :  { %v5824_v24 = vpop.eup %5823 }
0x2333   :  { %v3862_v0 = vmul.f32 %v5824_v24, %v3850_v55  ;;  %v3883_v9 = vadd.f32 %v7073_v36, %v3872_v26 }
0x2334   :  { %4114 = vmatpush1.bf16.msra.mxu0 %v5604_v46 }
0x2335   :  { %4115 = vmatprep.subr.bf16.mxu0 %v5609_v23  ;;  %v3873_v25 = vmul.f32 %v7066_v21, %v3862_v0 }
0x2337   :  { %v3884_v38 = vadd.f32 %v7073_v36, %v3873_v25 }
0x2338   :  { %4116 = vmatpush1.bf16.msra.mxu0 %v5607_v8 }
0x2339   :  { %4117 = vmatprep.subr.bf16.mxu0 %v5612_v28  ;;  %v3887_v39 = vpack.c.bf16 %v3884_v38, %v3883_v9 }
0x233c   :  { %4118 = vmatpush1.bf16.msra.mxu0 %v5610_v22 }
0x233f   :  { %4136 = vmatmul.mubr.bf16.vlgmr.msra.gmra.mrb[108].mxu0 %v3887_v39 }
0x2340   :  { %4145 = vmatprep.mubr.bf16.mxu0 %v6114_v17 }
0x23f2   :  { %v3734_v42 = vpop.f32.mrb[104].mxu0 }
0x23f3   :  { %v5476_v5 = vpop.f32.mrb[105].mxu0 }
0x23f4   :  { %v3737_v16 = vpop.f32.mrb[106].mxu0 }
0x23f5   :  { %v3741_v48 = vpack.c.bf16 %v3737_v16, %v3734_v42  ;;  %v5477_v50 = vpop.f32.mrb[107].mxu0 }
0x23f7   :  { %5483 = vmatmul.mubr.msk.bf16.vlgmr.msra.gmra.mrb[104].mxu1 %vm565_vm1, %v3741_v48 }
0x23f8   :  { %4157 = vmatpush1.bf16.msra.mxu1 %v5613_v40  ;;  %4188 = vmatprep.mubr.bf16.mxu1 %v6114_v17 }
0x23f9   :  { %4158 = vmatprep.subr.bf16.mxu1 %v5618_v30 }
0x23fc   :  { %4159 = vmatpush1.bf16.msra.mxu1 %v5616_v45 }
0x23fd   :  { %4160 = vmatprep.subr.bf16.mxu1 %v5621_v54 }
0x2400   :  { %4161 = vmatpush1.bf16.msra.mxu1 %v5619_v35 }
0x2401   :  { %4162 = vmatprep.subr.bf16.mxu1 %v5624_v33 }
0x2404   :  { %4163 = vmatpush1.bf16.msra.mxu1 %v5622_v59 }
0x2405   :  { %4164 = vmatprep.subr.bf16.mxu1 %v5627_v34 }
0x2408   :  { %4165 = vmatpush1.bf16.msra.mxu1 %v5625_v37 }
0x2409   :  { %4166 = vmatprep.subr.bf16.mxu1 %v5630_v56 }
0x240c   :  { %4167 = vmatpush1.bf16.msra.mxu1 %v5628_v10 }
0x240d   :  { %4168 = vmatprep.subr.bf16.mxu1 %v5633_v52 }
0x2410   :  { %4169 = vmatpush1.bf16.msra.mxu1 %v5631_v63 }
0x2411   :  { %4170 = vmatprep.subr.bf16.mxu1 %v5636_v57 }
0x2412   :  { %v4137_v51 = vpop.f32.mrb[108].mxu0 }
0x2413   :  { %v4138_v14 = vadd.f32 %v4137_v51, %v7090_v44  ;;  %v4139_v2 = vpop.f32.mrb[109].mxu0 }
0x2414   :  { %v4140_v47 = vadd.f32 %v4139_v2, %v7093_v49  ;;  %v4141_v1 = vpop.f32.mrb[110].mxu0  ;;  %4171 = vmatpush1.bf16.msra.mxu1 %v5634_v62 }
0x2415   :  { %v4209_v15 = vmul.f32 %v4138_v14, %v4138_v14  ;;  %v4142_v43 = vadd.f32 %v4141_v1, %v7090_v44  ;;  %v4143_v3 = vpop.f32.mrb[111].mxu0 }
0x2416   :  { %v4210_v19 = vmul.f32 %v4140_v47, %v4140_v47  ;;  %v4144_v29 = vadd.f32 %v4143_v3, %v7093_v49  ;;  %v5637_v3 = vld [vmem:[#allocation17 + $0x40] sm:$0xff]  }
0x2417   :  { %v4225_v6 = vmul.f32 %v4209_v15, %v4138_v14  ;;  %v4213_v46 = vmul.f32 %v4142_v43, %v4142_v43  ;;  %4189 = vmatmul.mubr.bf16.vlgmr.msra.gmra.mrb[108].mxu1 %v3887_v39  ;;  %5070 = vmatprep.subr.bf16.mxu0 %v5637_v3  ;;  %v5657_v3 = vld [vmem:[#allocation17 + $0x68] sm:$0xff]  }
0x2418   :  { %v4226_v20 = vmul.f32 %v4210_v19, %v4140_v47  ;;  %v4214_v55 = vmul.f32 %v4144_v29, %v4144_v29  ;;  %4198 = vmatprep.mubr.bf16.mxu1 %v6114_v17 }
0x2419   :  { %v4241_v23 = vmul.f32 0.044715, %v4225_v6  ;;  %v4229_v24 = vmul.f32 %v4213_v46, %v4142_v43  ;;  %v5640_v6 = vld [vmem:[#allocation17 + $0x80] sm:$0xff]  }
0x241a   :  { %v4242_v27 = vmul.f32 0.044715, %v4226_v20  ;;  %v4230_v0 = vmul.f32 %v4214_v55, %v4144_v29 }
0x241b   :  { %v4257_v8 = vadd.f32 %v4241_v23, %v4138_v14  ;;  %v4245_v28 = vmul.f32 0.044715, %v4229_v24 }
0x241c   :  { %v4258_v25 = vadd.f32 %v4242_v27, %v4140_v47  ;;  %v4246_v26 = vmul.f32 0.044715, %v4230_v0  ;;  %v5641_v27 = vld [vmem:[#allocation17 + $0x48] sm:$0xff]  }
0x241d   :  { %v4273_v22 = vmul.f32 0.7978846, %v4257_v8  ;;  %v4261_v38 = vadd.f32 %v4245_v28, %v4142_v43  ;;  %v5642_v0 = vld [vmem:[#allocation17 + $0xc8] sm:$0xff]  }
0x241e   :  { %v4274_v9 = vmul.f32 0.7978846, %v4258_v25  ;;  %v4262_v60 = vadd.f32 %v4246_v26, %v4144_v29  ;;  %v5643_v25 = vld [vmem:[#allocation17 + $0x8] sm:$0xff]  }
0x241f   :  { %5825 = vtanh.f32 %v4273_v22  ;;  %v4277_v42 = vmul.f32 0.7978846, %v4261_v38  ;;  %v5644_v26 = vld [vmem:[#allocation17 + $0x88] sm:$0xff]  }
0x2420   :  { %5827 = vtanh.f32 %v4274_v9  ;;  %v4278_v39 = vmul.f32 0.7978846, %v4262_v60  ;;  %v5645_v9 = vld [vmem:[#allocation17 + $0x50] sm:$0xff]  }
0x2421   :  { %5829 = vtanh.f32 %v4277_v42  ;;  %v5646_v60 = vld [vmem:[#allocation17 + $0xd0] sm:$0xff]  }
0x2422   :  { %5831 = vtanh.f32 %v4278_v39 }
0x2429   :  { %v5826_v5 = vpop.eup %5825 }
0x242a   :  { %v5828_v17 = vpop.eup %5827  ;;  %v4305_v16 = vadd.f32 1.0, %v5826_v5  ;;  %v5647_v5 = vld [vmem:[#allocation17 + $0x10] sm:$0xff]  }
0x242b   :  { %v5830_v40 = vpop.eup %5829  ;;  %v4306_v48 = vadd.f32 1.0, %v5828_v17  ;;  %v5648_v17 = vld [vmem:[#allocation17 + $0x90] sm:$0xff]  }
0x242c   :  { %v5832_v50 = vpop.eup %5831  ;;  %v4321_v30 = vmul.f32 0.5, %v4305_v16  ;;  %v4309_v45 = vadd.f32 1.0, %v5830_v40 }
0x242d   :  { %v4310_v54 = vadd.f32 1.0, %v5832_v50  ;;  %v4322_v35 = vmul.f32 0.5, %v4306_v48  ;;  %v5649_v48 = vld [vmem:[#allocation17 + $0x58] sm:$0xff]  }
0x242e   :  { %v4325_v33 = vmul.f32 0.5, %v4309_v45  ;;  %v7100_v34 = vmul.f32 %v4321_v30, %v4138_v14  ;;  %v5650_v50 = vld [vmem:[#allocation17 + $0xd8] sm:$0xff]  }
0x242f   :  { %v4326_v59 = vmul.f32 0.5, %v4310_v54  ;;  %v7104_v37 = vmul.f32 %v4322_v35, %v4140_v47 }
0x2430   :  { %v7102_v61 = vmul.f32 %v4325_v33, %v4142_v43 }
0x2431   :  { %v7106_v56 = vmul.f32 %v4326_v59, %v4144_v29  ;;  %v5639_v29 = vld [vmem:[#allocation17] sm:$0xff]  }
0x2432   :  { %v4353_v10 = vpack.c.bf16 %v7102_v61, %v7100_v34  ;;  %5071 = vmatpush3.bf16.msra.mxu0 %v5639_v29  ;;  %v5660_v29 = vld [vmem:[#allocation17 + $0xa8] sm:$0xff]  }
0x2433   :  { %v4354_v52 = vpack.c.bf16 %v7106_v56, %v7104_v37  ;;  %5072 = vmatprep.subr.bf16.mxu0 %v5641_v27  ;;  %v5663_v27 = vld [vmem:[#allocation17 + $0x30] sm:$0xff]  }
0x2436   :  { %5073 = vmatpush3.bf16.msra.mxu0 %v5643_v25 }
0x2437   :  { %5074 = vmatprep.subr.bf16.mxu0 %v5645_v9 }
0x243a   :  { %5075 = vmatpush3.bf16.msra.mxu0 %v5647_v5 }
0x243b   :  { %5076 = vmatprep.subr.bf16.mxu0 %v5649_v48 }
0x24ca   :  { %v3779_v13 = vpop.f32.mrb[104].mxu1 }
0x24cb   :  { %v3786_v63 = vadd.f32 %v3779_v13, %v7054_v53  ;;  %v5484_v12 = vpop.f32.mrb[105].mxu1  ;;  %v3933_v53 = vsub.s32 2, %v7080_v4  ;;  %v5651_v13 = vld [vmem:[#allocation17 + $0x18] sm:$0xff]  }
0x24cc   :  { %v3782_v57 = vpop.f32.mrb[106].mxu1  ;;  %5077 = vmatpush3.bf16.msra.mxu0 %v5651_v13 }
0x24cd   :  { %v3796_v62 = vadd.f32 %v3786_v63, %v6752_v32  ;;  %v3787_v51 = vadd.f32 %v3782_v57, %v7057_v58  ;;  %v5485_v14 = vpop.f32.mrb[107].mxu1  ;;  %v3937_v58 = vsub.s32 3, %v7080_v4  ;;  %v5652_v63 = vld [vmem:[#allocation17 + $0x98] sm:$0xff]  }
0x24cf   :  { %v7116_v2 = vadd.f32 %v7034_v18, %v3796_v62  ;;  %v3797_v47 = vadd.f32 %v3787_v51, %v6756_v7  ;;  %v7131_v7 = vrot.slane %v7086_v11, %v3933_v53  ;;  %v7134_v43 = vrot.slane %v7086_v11, %v3937_v58  ;;  %v5653_v62 = vld [vmem:[#allocation17 + $0x60] sm:$0xff]  }
0x24d0   :  { %v5654_v51 = vld [vmem:[#allocation17 + $0xe0] sm:$0xff]   ;;  %5078 = vmatprep.subr.bf16.mxu0 %v5653_v62 }
0x24d1   :  { %3813 = vadd.xlane.f32.xlu1 %v7116_v2  ;;  %v3823_v1 = vmul.f32 %v7116_v2, %v7116_v2  ;;  %v7123_v15 = vadd.f32 %v7034_v18, %v3797_v47  ;;  %v5638_v18 = vld [vmem:[#allocation17 + $0xc0] sm:$0xff]  }
0x24d2   :  { %5098 = vmatprep.subr.bf16.mxu1 %v5638_v18  ;;  %v5655_v53 = vld [vmem:[#allocation17 + $0x20] sm:$0xff]   ;;  %v5658_v18 = vld [vmem:[#allocation17 + $0xe8] sm:$0xff]  }
0x24d3   :  { %3829 = vadd.xlane.f32.xlu0 %v3823_v1  ;;  %v3824_v32 = vmul.f32 %v7123_v15, %v7123_v15  ;;  %5099 = vmatpush3.bf16.msra.mxu1 %v5640_v6  ;;  %v5656_v58 = vld [vmem:[#allocation17 + $0xa0] sm:$0xff]  }
0x24d4   :  { %5100 = vmatprep.subr.bf16.mxu1 %v5642_v0  ;;  %5079 = vmatpush3.bf16.msra.mxu0 %v5655_v53  ;;  %v5664_v0 = vld [vmem:[#allocation17 + $0xb0] sm:$0xff]  }
0x24d5   :  { %3815 = vadd.xlane.f32.xlu1 %v7123_v15  ;;  %5080 = vmatprep.subr.bf16.mxu0 %v5657_v3 }
0x24d7   :  { %5101 = vmatpush3.bf16.msra.mxu1 %v5644_v26  ;;  %v5665_v26 = vld [vmem:[#allocation17 + $0x78] sm:$0xff]  }
0x24d8   :  { %5102 = vmatprep.subr.bf16.mxu1 %v5646_v60 }
0x24d9   :  { %3831 = vadd.xlane.f32.xlu1 %v3824_v32 }
0x24db   :  { %5103 = vmatpush3.bf16.msra.mxu1 %v5648_v17 }
0x24dc   :  { %5104 = vmatprep.subr.bf16.mxu1 %v5650_v50 }
0x24df   :  { %5105 = vmatpush3.bf16.msra.mxu1 %v5652_v63 }
0x24e0   :  { %5106 = vmatprep.subr.bf16.mxu1 %v5654_v51 }
0x24e3   :  { %5107 = vmatpush3.bf16.msra.mxu1 %v5656_v58 }
0x24e4   :  { %5108 = vmatprep.subr.bf16.mxu1 %v5658_v18 }
0x24e7   :  { %5109 = vmatpush3.bf16.msra.mxu1 %v5660_v29 }
0x24ea   :  { %v4190_v19 = vpop.f32.mrb[108].mxu1 }
0x24eb   :  { %v7137_v46 = vadd.f32 %v4190_v19, %v7131_v7  ;;  %v4192_v20 = vpop.f32.mrb[109].mxu1  ;;  %v5659_v19 = vld [vmem:[#allocation17 + $0x28] sm:$0xff]  }
0x24ec   :  { %v7140_v55 = vadd.f32 %v4192_v20, %v7134_v43  ;;  %v4194_v4 = vpop.f32.mrb[110].mxu1  ;;  %5081 = vmatpush3.bf16.msra.mxu0 %v5659_v19  ;;  %v5661_v20 = vld [vmem:[#allocation17 + $0x70] sm:$0xff]  }
0x24ed   :  { %v4211_v11 = vmul.f32 %v7137_v46, %v7137_v46  ;;  %v7145_v23 = vadd.f32 %v4194_v4, %v7131_v7  ;;  %v4196_v24 = vpop.f32.mrb[111].mxu1  ;;  %v5662_v4 = vld [vmem:[#allocation17 + $0xf0] sm:$0xff]   ;;  %5082 = vmatprep.subr.bf16.mxu0 %v5661_v20 }
0x24ee   :  { %v4212_v8 = vmul.f32 %v7140_v55, %v7140_v55  ;;  %v7150_v28 = vadd.f32 %v4196_v24, %v7134_v43  ;;  %5110 = vmatprep.subr.bf16.mxu1 %v5662_v4 }
0x24ef   :  { %v4227_v22 = vmul.f32 %v4211_v11, %v7137_v46  ;;  %v4215_v38 = vmul.f32 %v7145_v23, %v7145_v23  ;;  %5111 = vmatpush3.bf16.msra.mxu1 %v5664_v0 }
0x24f0   :  { %v4228_v42 = vmul.f32 %v4212_v8, %v7140_v55  ;;  %v4216_v39 = vmul.f32 %v7150_v28, %v7150_v28  ;;  %5083 = vmatpush3.bf16.msra.mxu0 %v5663_v27 }
0x24f1   :  { %v4243_v16 = vmul.f32 0.044715, %v4227_v22  ;;  %v4231_v40 = vmul.f32 %v4215_v38, %v7145_v23  ;;  %v5666_v22 = vld [vmem:[#allocation17 + $0xf8] sm:$0xff]   ;;  %5084 = vmatprep.subr.bf16.mxu0 %v5665_v26 }
0x24f2   :  { %v4244_v30 = vmul.f32 0.044715, %v4228_v42  ;;  %v4232_v45 = vmul.f32 %v4216_v39, %v7150_v28  ;;  %v5667_v42 = vld [vmem:[#allocation17 + $0x38] sm:$0xff]   ;;  %5112 = vmatprep.subr.bf16.mxu1 %v5666_v22 }
0x24f3   :  { %v4259_v54 = vadd.f32 %v4243_v16, %v7137_v46  ;;  %v4247_v35 = vmul.f32 0.044715, %v4231_v40  ;;  %v5668_v39 = vld [vmem:[#allocation17 + $0xb8] sm:$0xff]  }
0x24f4   :  { %v4260_v33 = vadd.f32 %v4244_v30, %v7140_v55  ;;  %v4248_v59 = vmul.f32 0.044715, %v4232_v45  ;;  %5085 = vmatpush3.bf16.msra.mxu0 %v5667_v42  ;;  %5113 = vmatpush3.bf16.msra.mxu1 %v5668_v39 }
0x24f5   :  { %v4275_v12 = vmul.f32 0.7978846, %v4259_v54  ;;  %v4263_v57 = vadd.f32 %v4247_v35, %v7145_v23 }
0x24f6   :  { %v4276_v14 = vmul.f32 0.7978846, %v4260_v33  ;;  %v4264_v47 = vadd.f32 %v4248_v59, %v7150_v28 }
0x24f7   :  { %5833 = vtanh.f32 %v4275_v12  ;;  %v4279_v1 = vmul.f32 0.7978846, %v4263_v57 }
0x24f8   :  { %5835 = vtanh.f32 %v4276_v14  ;;  %v4280_v32 = vmul.f32 0.7978846, %v4264_v47 }
0x24f9   :  { %5837 = vtanh.f32 %v4279_v1 }
0x24fa   :  { %5839 = vtanh.f32 %v4280_v32 }
0x2501   :  { %v5834_v6 = vpop.eup %5833 }
0x2502   :  { %v5836_v11 = vpop.eup %5835  ;;  %v4307_v24 = vadd.f32 1.0, %v5834_v6 }
0x2503   :  { %v5838_v8 = vpop.eup %5837  ;;  %v4308_v25 = vadd.f32 1.0, %v5836_v11 }
0x2504   :  { %v5840_v38 = vpop.eup %5839  ;;  %v4323_v9 = vmul.f32 0.5, %v4307_v24  ;;  %v4311_v60 = vadd.f32 1.0, %v5838_v8 }
0x2505   :  { %v4312_v5 = vadd.f32 1.0, %v5840_v38  ;;  %v4324_v17 = vmul.f32 0.5, %v4308_v25 }
0x2506   :  { %v4327_v16 = vmul.f32 0.5, %v4311_v60  ;;  %v4339_v48 = vmul.f32 %v4323_v9, %v7137_v46 }
0x2507   :  { %v4328_v40 = vmul.f32 0.5, %v4312_v5  ;;  %v4340_v30 = vmul.f32 %v4324_v17, %v7140_v55 }
0x2508   :  { %v4343_v50 = vmul.f32 %v4327_v16, %v7145_v23 }
0x2509   :  { %v4344_v45 = vmul.f32 %v4328_v40, %v7150_v28 }
0x250a   :  { %v4355_v54 = vpack.c.bf16 %v4343_v50, %v4339_v48 }
0x250b   :  { %v4356_v35 = vpack.c.bf16 %v4344_v45, %v4340_v30 }
0x255e   :  { %v3814_v33 = vpop.xlane.xlu1 %3813 }
0x255f   :  { %v3819_v59 = vmul.f32 0.0078125, %v3814_v33 }
0x2560   :  { %v3830_v13 = vpop.xlane.xlu0 %3829 }
0x2561   :  { %v3839_v63 = vmul.f32 %v3819_v59, %v3819_v59  ;;  %v3835_v12 = vmul.f32 0.0078125, %v3830_v13  ;;  %v3851_v58 = vsub.f32 %v7116_v2, %v3819_v59 }
0x2562   :  { %v3816_v57 = vpop.xlane.xlu1 %3815 }
0x2563   :  { %v3843_v62 = vsub.f32 %v3835_v12, %v3839_v63  ;;  %v3820_v51 = vmul.f32 0.0078125, %v3816_v57 }
0x2565   :  { %v3847_v14 = vmax.f32 %v3843_v62, 0.0  ;;  %v3840_v23 = vmul.f32 %v3820_v51, %v3820_v51  ;;  %v3852_v18 = vsub.f32 %v7123_v15, %v3820_v51 }
0x2566   :  { %v3832_v46 = vpop.xlane.xlu1 %3831 }
0x2567   :  { %v3855_v47 = vadd.f32 1e-05, %v3847_v14  ;;  %v3836_v1 = vmul.f32 0.0078125, %v3832_v46 }
0x2569   :  { %5841 = vrsqrt.f32 %v3855_v47  ;;  %v3844_v32 = vsub.f32 %v3836_v1, %v3840_v23 }
0x256b   :  { %v3848_v55 = vmax.f32 %v3844_v32, 0.0 }
0x256d   :  { %v3856_v53 = vadd.f32 1e-05, %v3848_v55 }
0x256f   :  { %5843 = vrsqrt.f32 %v3856_v53 }
0x2573   :  { %v5842_v28 = vpop.eup %5841 }
0x2574   :  { %v3863_v3 = vmul.f32 %v5842_v28, %v3851_v58 }
0x2576   :  { %v3874_v6 = vmul.f32 %v7066_v21, %v3863_v3 }
0x2578   :  { %v3885_v4 = vadd.f32 %v7073_v36, %v3874_v6 }
0x2579   :  { %v5844_v19 = vpop.eup %5843 }
0x257a   :  { %v3864_v29 = vmul.f32 %v5844_v19, %v3852_v18 }
0x257c   :  { %v3875_v20 = vmul.f32 %v7066_v21, %v3864_v29 }
0x257e   :  { %v3886_v11 = vadd.f32 %v7073_v36, %v3875_v20 }
0x2580   :  { %v3888_v24 = vpack.c.bf16 %v3886_v11, %v3885_v4 }
0x2582   :  { %4146 = vmatmul.mubr.bf16.gmra.mrb[112].mxu0 %v3888_v24  ;;  %4199 = vmatmul.mubr.bf16.gmra.mrb[112].mxu1 %v3888_v24 }
0x2583   :  { %4656 = vmatprep.mubr.bf16.mxu0 %v4354_v52  ;;  %4705 = vmatprep.mubr.bf16.mxu1 %v4356_v35 }
0x258a   :  { %4657 = vmatmul.mubr.bf16.vlgmr.msra.gmra.mrb[116].mxu0 %v4353_v10  ;;  %4706 = vmatmul.mubr.bf16.vlgmr.msra.gmra.mrb[116].mxu1 %v4355_v54 }
0x2655   :  { %v4147_v27 = vpop.f32.mrb[112].mxu0  ;;  %v4200_v0 = vpop.f32.mrb[112].mxu1 }
0x2656   :  { %v7181_v21 = vadd.f32 %v4147_v27, %v7090_v44  ;;  %v7184_v36 = vadd.f32 %v4200_v0, %v7131_v7  ;;  %v4149_v8 = vpop.f32.mrb[113].mxu0  ;;  %v4202_v25 = vpop.f32.mrb[113].mxu1  ;;  %v7239_v27 = vld [vmem:[%s7327_s19] ss:$0 sm:$0xff] }
0x2657   :  { %v7187_v26 = vadd.f32 %v4149_v8, %v7093_v49  ;;  %v7190_v37 = vadd.f32 %v4202_v25, %v7134_v43  ;;  %v4151_v56 = vpop.f32.mrb[114].mxu0  ;;  %v4204_v34 = vpop.f32.mrb[114].mxu1 }
0x2658   :  { %v4217_v61 = vmul.f32 %v7181_v21, %v7181_v21  ;;  %v4219_v10 = vmul.f32 %v7184_v36, %v7184_v36  ;;  %v7197_v52 = vadd.f32 %v4151_v56, %v7090_v44  ;;  %v7200_v22 = vadd.f32 %v4204_v34, %v7131_v7  ;;  %v4153_v38 = vpop.f32.mrb[115].mxu0  ;;  %v4206_v9 = vpop.f32.mrb[115].mxu1 }
0x2659   :  { %v4218_v60 = vmul.f32 %v7187_v26, %v7187_v26  ;;  %v4220_v42 = vmul.f32 %v7190_v37, %v7190_v37  ;;  %v7207_v39 = vadd.f32 %v4153_v38, %v7093_v49  ;;  %v7210_v5 = vadd.f32 %v4206_v9, %v7134_v43 }
0x265a   :  { %v4233_v44 = vmul.f32 %v4217_v61, %v7181_v21  ;;  %v4235_v17 = vmul.f32 %v4219_v10, %v7184_v36  ;;  %v4221_v7 = vmul.f32 %v7197_v52, %v7197_v52  ;;  %v4223_v16 = vmul.f32 %v7200_v22, %v7200_v22 }
0x265b   :  { %v4234_v40 = vmul.f32 %v4218_v60, %v7187_v26  ;;  %v4236_v48 = vmul.f32 %v4220_v42, %v7190_v37  ;;  %v4222_v49 = vmul.f32 %v7207_v39, %v7207_v39  ;;  %v4224_v43 = vmul.f32 %v7210_v5, %v7210_v5 }
0x265c   :  { %v4249_v50 = vmul.f32 0.044715, %v4233_v44  ;;  %v4251_v30 = vmul.f32 0.044715, %v4235_v17  ;;  %v4237_v45 = vmul.f32 %v4221_v7, %v7197_v52  ;;  %v4239_v54 = vmul.f32 %v4223_v16, %v7200_v22 }
0x265d   :  { %v4250_v35 = vmul.f32 0.044715, %v4234_v40  ;;  %v4252_v33 = vmul.f32 0.044715, %v4236_v48  ;;  %v4238_v59 = vmul.f32 %v4222_v49, %v7207_v39  ;;  %v4240_v13 = vmul.f32 %v4224_v43, %v7210_v5  ;;  %v5086_v63 = vpop.f32.mrb[116].mxu0  ;;  %v5114_v12 = vpop.f32.mrb[116].mxu1 }
0x265e   :  { %v4265_v57 = vadd.f32 %v4249_v50, %v7181_v21  ;;  %v4267_v62 = vadd.f32 %v4251_v30, %v7184_v36  ;;  %v4253_v51 = vmul.f32 0.044715, %v4237_v45  ;;  %v4255_v14 = vmul.f32 0.044715, %v4239_v54  ;;  %v5087_v46 = vpop.f32.mrb[117].mxu0  ;;  %v5115_v47 = vpop.f32.mrb[117].mxu1 }
0x265f   :  { %v4266_v23 = vadd.f32 %v4250_v35, %v7187_v26  ;;  %v4268_v1 = vadd.f32 %v4252_v33, %v7190_v37  ;;  %v4254_v32 = vmul.f32 0.044715, %v4238_v59  ;;  %v4256_v55 = vmul.f32 0.044715, %v4240_v13  ;;  %v5089_v53 = vpop.f32.mrb[118].mxu0  ;;  %v5117_v28 = vpop.f32.mrb[118].mxu1 }
0x2660   :  { %v4281_v58 = vmul.f32 0.7978846, %v4265_v57  ;;  %v4283_v3 = vmul.f32 0.7978846, %v4267_v62  ;;  %v4269_v18 = vadd.f32 %v4253_v51, %v7197_v52  ;;  %v4271_v19 = vadd.f32 %v4255_v14, %v7200_v22  ;;  %v5090_v29 = vpop.f32.mrb[119].mxu0  ;;  %v5118_v6 = vpop.f32.mrb[119].mxu1 }
0x2661   :  { %v4282_v20 = vmul.f32 0.7978846, %v4266_v23  ;;  %v4284_v4 = vmul.f32 0.7978846, %v4268_v1  ;;  %v4270_v11 = vadd.f32 %v4254_v32, %v7207_v39  ;;  %v4272_v24 = vadd.f32 %v4256_v55, %v7210_v5 }
0x2662   :  { %5845 = vtanh.f32 %v4281_v58  ;;  %v4285_v0 = vmul.f32 0.7978846, %v4269_v18  ;;  %v5088_v8 = vadd.f32 %v5087_v46, %v5086_v63  ;;  %v4287_v25 = vmul.f32 0.7978846, %v4271_v19 }
0x2663   :  { %5847 = vtanh.f32 %v4283_v3  ;;  %v4286_v56 = vmul.f32 0.7978846, %v4270_v11  ;;  %v5116_v34 = vadd.f32 %v5115_v47, %v5114_v12  ;;  %v5091_v10 = vadd.f32 %v5090_v29, %v5089_v53 }
0x2664   :  { %5849 = vtanh.f32 %v4282_v20  ;;  %v4659_v61 = vadd.f32 %v5088_v8, %v7239_v27  ;;  %v5119_v38 = vadd.f32 %v5118_v6, %v5117_v28  ;;  %v4288_v9 = vmul.f32 0.7978846, %v4272_v24 }
0x2665   :  { %5851 = vtanh.f32 %v4284_v4  ;;  %v4662_v42 = vadd.f32 %v5091_v10, %v7239_v27 }
0x2666   :  { %5853 = vtanh.f32 %v4285_v0  ;;  %v4708_v60 = vadd.f32 %v5116_v34, %v4659_v61 }
0x2667   :  { %5855 = vtanh.f32 %v4287_v25  ;;  %v4711_v17 = vadd.f32 %v5119_v38, %v4662_v42 }
0x2668   :  { %5857 = vtanh.f32 %v4286_v56  ;;  %v4722_v44 = vadd.f32 %v4708_v60, %v7038_v31 }
0x2669   :  { %5859 = vtanh.f32 %v4288_v9  ;;  %v4723_v7 = vadd.f32 %v4711_v17, %v7044_v41 }
0x266a   :  { %4726 = vst [vmem:[#allocation18] sm:$0xff] %v4722_v44 }
0x266b   :  { %4727 = vst [vmem:[#allocation18 + $0x8] sm:$0xff] %v4723_v7 }
0x266c   :  { %v5846_v16 = vpop.eup %5845 }
0x266d   :  { %v5848_v40 = vpop.eup %5847  ;;  %v4313_v48 = vadd.f32 1.0, %v5846_v16 }
0x266e   :  { %v5850_v49 = vpop.eup %5849  ;;  %v4315_v43 = vadd.f32 1.0, %v5848_v40 }
0x266f   :  { %v5852_v50 = vpop.eup %5851  ;;  %v4314_v30 = vadd.f32 1.0, %v5850_v49  ;;  %v4329_v59 = vmul.f32 0.5, %v4313_v48 }
0x2670   :  { %v5854_v45 = vpop.eup %5853  ;;  %v4316_v54 = vadd.f32 1.0, %v5852_v50  ;;  %v4331_v63 = vmul.f32 0.5, %v4315_v43 }
0x2671   :  { %v5856_v35 = vpop.eup %5855  ;;  %v4317_v33 = vadd.f32 1.0, %v5854_v45  ;;  %v4330_v62 = vmul.f32 0.5, %v4314_v30  ;;  %v4345_v23 = vmul.f32 %v4329_v59, %v7181_v21 }
0x2672   :  { %v5858_v13 = vpop.eup %5857  ;;  %v4319_v31 = vadd.f32 1.0, %v5856_v35  ;;  %v4332_v14 = vmul.f32 0.5, %v4316_v54  ;;  %v4347_v55 = vmul.f32 %v4331_v63, %v7184_v36 }
0x2673   :  { %v5860_v12 = vpop.eup %5859  ;;  %v4318_v57 = vadd.f32 1.0, %v5858_v13  ;;  %v4333_v41 = vmul.f32 0.5, %v4317_v33  ;;  %v4346_v28 = vmul.f32 %v4330_v62, %v7187_v26 }
0x2674   :  { %v4320_v51 = vadd.f32 1.0, %v5860_v12  ;;  %v4335_v46 = vmul.f32 0.5, %v4319_v31  ;;  %v4348_v18 = vmul.f32 %v4332_v14, %v7190_v37 }
0x2675   :  { %v4334_v47 = vmul.f32 0.5, %v4318_v57  ;;  %v4349_v1 = vmul.f32 %v4333_v41, %v7197_v52 }
0x2676   :  { %v4336_v32 = vmul.f32 0.5, %v4320_v51  ;;  %v4351_v53 = vmul.f32 %v4335_v46, %v7200_v22 }
0x2677   :  { %v4350_v58 = vmul.f32 %v4334_v47, %v7207_v39  ;;  %v4357_v3 = vpack.c.bf16 %v4349_v1, %v4345_v23 }
0x2678   :  { %v4352_v19 = vmul.f32 %v4336_v32, %v7210_v5  ;;  %v4359_v29 = vpack.c.bf16 %v4351_v53, %v4347_v55 }
0x2679   :  { %v4358_v6 = vpack.c.bf16 %v4350_v58, %v4346_v28 }
0x267a   :  { %v4360_v20 = vpack.c.bf16 %v4352_v19, %v4348_v18 }
0x267b   :  { %4664 = vmatprep.mubr.bf16.mxu0 %v4358_v6 }
0x267c   :  { %4713 = vmatprep.mubr.bf16.mxu1 %v4360_v20  ;;  %4665 = vmatmul.mubr.bf16.gmra.mrb[120].mxu0 %v4357_v3 }
0x267d   :  { %4714 = vmatmul.mubr.bf16.gmra.mrb[120].mxu1 %v4359_v29 }
0x274f   :  { %v5092_v21 = vpop.f32.mrb[120].mxu0 }
0x2750   :  { %v5120_v36 = vpop.f32.mrb[120].mxu1  ;;  %v5093_v52 = vpop.f32.mrb[121].mxu0 }
0x2751   :  { %v5094_v22 = vadd.f32 %v5093_v52, %v5092_v21  ;;  %v5121_v4 = vpop.f32.mrb[121].mxu1  ;;  %v5095_v26 = vpop.f32.mrb[122].mxu0 }
0x2752   :  { %v5122_v11 = vadd.f32 %v5121_v4, %v5120_v36  ;;  %v5123_v39 = vpop.f32.mrb[122].mxu1  ;;  %v5096_v24 = vpop.f32.mrb[123].mxu0 }
0x2753   :  { %v4667_v37 = vadd.f32 %v5094_v22, %v7239_v27  ;;  %v5097_v0 = vadd.f32 %v5096_v24, %v5095_v26  ;;  %v5124_v5 = vpop.f32.mrb[123].mxu1 }
0x2754   :  { %v5125_v8 = vadd.f32 %v5124_v5, %v5123_v39 }
0x2755   :  { %v4716_v25 = vadd.f32 %v5122_v11, %v4667_v37  ;;  %v4670_v56 = vadd.f32 %v5097_v0, %v7239_v27 }
0x2757   :  { %v4724_v34 = vadd.f32 %v4716_v25, %v7116_v2  ;;  %v4719_v61 = vadd.f32 %v5125_v8, %v4670_v56 }
0x2759   :  { %4728 = vst [vmem:[#allocation18 + $0x10] sm:$0xff] %v4724_v34  ;;  %v4725_v10 = vadd.f32 %v4719_v61, %v7123_v15 }
0x275b   :  { %4729 = vst [vmem:[#allocation18 + $0x18] sm:$0xff] %v4725_v10 }
0x275c   :  { %6074 = shalt.err (!%p6071_p6)
}
0x275d   :  { %s7328_s11 = sld [smem:[#allocation33_spill]] }
0x2763   :  { %s6075_s17 = scalar_lea.hbm %s7328_s11, 512 }
0x2764   :  { %p6076_p7 = scmp.ne.s32.totalorder %s7328_s11, %s6075_s17  ;;  %p6079_p8 = scmp.lt.u32.totalorder %s6075_s17, %s7328_s11 }
0x2766   :  { %p6081_p9 = pnand %p6079_p8, %p6076_p7 }
0x2768   :  { %6084 = shalt.err (!%p6081_p9)
}
0x2769   :  { %4741 = dma.vmem_to_hbm [thread:$0]  %s4736_s25, 512, %s7328_s11, [#allocation5], %s7319_s2, %s7319_s2, %s7318_s0  }
0x276a   :  { %6095 = dma.done.wait [#allocation5], 512  }
0x276b   :  { %6096 = vsyncadd [#allocation5], 4294966784 }
0x276c   :  { %4745 = vsyncpa [#allocation4], 1 }
0x276d   :  { %4746 = vsyncpa [#allocation7], 1 }
0x276e   :  { %4747 = vsyncpa [#allocation10], 1 }
0x276f   :  { %4748 = vsyncpa [#allocation13], 1 }
0x2770   :  { %4749 = vsyncpa [#allocation16], 1 }
0x2771   :  { %4750 = vsyncpa [#allocation5], 1 }

</bundles_post_ra>
